<compile_context>
chip_gen: v7x
topology: tpu7x:2x2x1
jax: 0.10.0
libtpu: 0.0.40
codegen_flags: <defaults>
</compile_context>

<pallas_src>
import jax
import jax.numpy as jnp
from jax import lax
from jax.experimental import pallas as pl
from jax.experimental.pallas import tpu as pltpu

BN_EPS = 1e-5
# Left pad of the W axis inside the padded VMEM scratch.  Using 8 (one sublane
# tile) instead of 1 keeps the interior store tile-aligned; only the columns at
# PAD_W-1 and PAD_W+W act as the conv halo, the rest is alignment slack (the
# physical layout pads the sublane axis to a multiple of 8 anyway).
PAD_W = 8


def _bn_relu(acc, gamma, beta, inv_r):
    """Training-mode BatchNorm (+ReLU) over axis 0 of a (rows, C) block.

    Single-pass statistics: sum and sum-of-squares -> mean / biased variance.
    """
    s1 = jnp.sum(acc, axis=0, keepdims=True)
    s2 = jnp.sum(acc * acc, axis=0, keepdims=True)
    mean = s1 * inv_r
    var = s2 * inv_r - mean * mean
    y = (acc - mean) * (lax.rsqrt(var + BN_EPS) * gamma) + beta
    return jnp.maximum(y, 0.0)


def _conv3x3_from_padded(pad_ref, w_ref, N, H, W, Cin):
    """3x3 'same' conv from a zero-padded VMEM scratch.

    pad_ref: (N, H+2, W+2*PAD_W, Cpad) with the wanted input occupying the
             first Cin channels; interior at [:, 1:H+1, PAD_W:PAD_W+W, :Cin].
    w_ref:   (3, 3*Cin, Cout)  -- HWIO with the kw taps folded into K.
    returns: (N*H*W, Cout) float32
    """
    Cout = w_ref.shape[-1]
    R = N * H * W
    xpad = pad_ref[:, :, :, :Cin]                        # single lane-aligned load
    acc = jnp.zeros((R, Cout), jnp.float32)
    for kh in range(3):
        taps = [
            xpad[:, kh:kh + H, PAD_W + kw - 1:PAD_W + kw - 1 + W, :]
            .reshape(R, Cin)
            for kw in range(3)
        ]
        patch = jnp.concatenate(taps, axis=-1)           # (R, 3*Cin), lane-aligned
        acc = acc + jnp.dot(patch, w_ref[kh],
                            preferred_element_type=jnp.float32)
    return acc


def wcmf_kernel(ms_ref, pan_ref,
                wd1_ref, gd1_ref, bd1_ref,
                wd2_ref, gd2_ref, bd2_ref,
                wc1_ref, gc1_ref, bc1_ref,
                wc2_ref, gc2_ref, bc2_ref,
                o_ref,
                pad_ref):
    N, H, W, C = ms_ref.shape
    R = N * H * W
    inv_r = 1.0 / R

    # ---- 1x1 conv branches + BN + ReLU (conv bias omitted: cancels under BN) --
    ms1 = _bn_relu(
        jnp.dot(ms_ref[...].reshape(R, C), wd1_ref[...],
                preferred_element_type=jnp.float32),
        gd1_ref[...], bd1_ref[...], inv_r)
    pan1 = _bn_relu(
        jnp.dot(pan_ref[...].reshape(R, C), wd2_ref[...],
                preferred_element_type=jnp.float32),
        gd2_ref[...], bd2_ref[...], inv_r)

    # ---- channel concat + in-kernel zero padding into the shared scratch -----
    pad_ref[...] = jnp.zeros(pad_ref.shape, pad_ref.dtype)
    pad_ref[:, 1:H + 1, PAD_W:PAD_W + W, :] = jnp.concatenate(
        [ms1.reshape(N, H, W, C), pan1.reshape(N, H, W, C)], axis=-1)

    # ---- conv_c1: 3x3 conv (Cin = 2C) + BN + ReLU -----------------------------
    c1 = _bn_relu(_conv3x3_from_padded(pad_ref, wc1_ref, N, H, W, 2 * C),
                  gc1_ref[...], bc1_ref[...], inv_r)

    # Reuse the same padded scratch for conv_c2: overwrite channel block [0, C)
    # of the interior; halo rows/cols are still zero from the initial fill and
    # were never written.  (conv_c1 already loaded its input into a value.)
    pad_ref[:, 1:H + 1, PAD_W:PAD_W + W, :C] = c1.reshape(N, H, W, C)

    # ---- conv_c2: 3x3 conv (Cin = C) + BN + ReLU -> fusion weights ------------
    f = _bn_relu(_conv3x3_from_padded(pad_ref, wc2_ref, N, H, W, C),
                 gc2_ref[...], bc2_ref[...], inv_r)

    # ---- fusion: w1*ms + w2*pan + (w1*ms)*(w2*pan) ----------------------------
    a = f[:, 0:1] * ms1
    b = f[:, 1:2] * pan1
    o_ref[...] = (a + b + a * b).reshape(N, H, W, C)


_VMEM = pl.BlockSpec(memory_space=pltpu.MemorySpace.VMEM)


def wcmf_forward(ms_nchw, pan_nchw, p):
    """WCMF forward.  ms/pan: (N, C, H, W) float32; returns (N, C, H, W)."""
    ms = jnp.transpose(ms_nchw, (0, 2, 3, 1)).astype(jnp.float32)   # NHWC
    pan = jnp.transpose(pan_nchw, (0, 2, 3, 1)).astype(jnp.float32)
    N, H, W, C = ms.shape

    # 1x1 conv weights (Cout, Cin, 1, 1) -> (Cin, Cout)
    wd1 = jnp.transpose(p["w_d1"][:, :, 0, 0], (1, 0)).astype(jnp.float32)
    wd2 = jnp.transpose(p["w_d2"][:, :, 0, 0], (1, 0)).astype(jnp.float32)
    # 3x3 conv weights (Cout, Cin, 3, 3) -> HWIO -> (3, 3*Cin, Cout)
    wc1 = jnp.transpose(p["w_c1"], (2, 3, 1, 0)).reshape(3, 3 * 2 * C, C)
    wc1 = wc1.astype(jnp.float32)
    wc2 = jnp.transpose(p["w_c2"], (2, 3, 1, 0)).reshape(3, 3 * C, C)
    wc2 = wc2.astype(jnp.float32)
    row = lambda v: v.reshape(1, -1).astype(jnp.float32)

    out = pl.pallas_call(
        wcmf_kernel,
        out_shape=jax.ShapeDtypeStruct((N, H, W, C), jnp.float32),
        in_specs=[_VMEM] * 14,
        out_specs=_VMEM,
        scratch_shapes=[
            # one shared zero-padded scratch, sized for the wider (2C) conv
            pltpu.VMEM((N, H + 2, W + 2 * PAD_W, 2 * C), jnp.float32),
        ],
    )(ms, pan,
      wd1, row(p["g_d1"]), row(p["bt_d1"]),
      wd2, row(p["g_d2"]), row(p["bt_d2"]),
      wc1, row(p["g_c1"]), row(p["bt_c1"]),
      wc2, row(p["g_c2"]), row(p["bt_c2"]))

    return jnp.transpose(out, (0, 3, 1, 2))                         # back to NCHW


# ---------------------------------------------------------------------------
# Pure-JAX reference (correctness check only).  Includes the conv biases.
# ---------------------------------------------------------------------------
def _ref_conv_bn_relu(x, w_oihw, bias, gamma, beta):
    w = jnp.transpose(w_oihw, (2, 3, 1, 0))                         # HWIO
    y = lax.conv_general_dilated(
        x, w, window_strides=(1, 1), padding="SAME",
        dimension_numbers=("NHWC", "HWIO", "NHWC"),
        precision=lax.Precision.HIGHEST)
    y = y + bias.reshape(1, 1, 1, -1)
    mean = jnp.mean(y, axis=(0, 1, 2), keepdims=True)
    var = jnp.mean((y - mean) ** 2, axis=(0, 1, 2), keepdims=True)
    y = (y - mean) * lax.rsqrt(var + BN_EPS) * gamma.reshape(1, 1, 1, -1) \
        + beta.reshape(1, 1, 1, -1)
    return jnp.maximum(y, 0.0)


def wcmf_reference(ms_nchw, pan_nchw, p):
    ms = jnp.transpose(ms_nchw, (0, 2, 3, 1)).astype(jnp.float32)
    pan = jnp.transpose(pan_nchw, (0, 2, 3, 1)).astype(jnp.float32)
    ms1 = _ref_conv_bn_relu(ms, p["w_d1"], p["b_d1"], p["g_d1"], p["bt_d1"])
    pan1 = _ref_conv_bn_relu(pan, p["w_d2"], p["b_d2"], p["g_d2"], p["bt_d2"])
    f = jnp.concatenate([ms1, pan1], axis=-1)
    f = _ref_conv_bn_relu(f, p["w_c1"], p["b_c1"], p["g_c1"], p["bt_c1"])
    f = _ref_conv_bn_relu(f, p["w_c2"], p["b_c2"], p["g_c2"], p["bt_c2"])
    w1 = f[..., 0:1]
    w2 = f[..., 1:2]
    a = w1 * ms1
    b = w2 * pan1
    return jnp.transpose(a + b + a * b, (0, 3, 1, 2))


if __name__ == "__main__":
    # channel=128 is the module default (keeps channels lane-dense); small
    # batch/spatial keeps the test tiny.
    N, C, H, W = 2, 128, 8, 8

    key = jax.random.PRNGKey(0)
    ks = jax.random.split(key, 18)

    def nrm(k, shape, s=0.1):
        return (s * jax.random.normal(k, shape)).astype(jnp.float32)

    params = {
        # conv_d1 / conv_d2: 1x1 conv (OIHW) + BN affine
        "w_d1": nrm(ks[0], (C, C, 1, 1)), "b_d1": nrm(ks[1], (C,)),
        "g_d1": 1.0 + nrm(ks[2], (C,)), "bt_d1": nrm(ks[3], (C,)),
        "w_d2": nrm(ks[4], (C, C, 1, 1)), "b_d2": nrm(ks[5], (C,)),
        "g_d2": 1.0 + nrm(ks[6], (C,)), "bt_d2": nrm(ks[7], (C,)),
        # conv_c1: 3x3, Cin = 2C ; conv_c2: 3x3, Cin = C
        "w_c1": nrm(ks[8], (C, 2 * C, 3, 3)), "b_c1": nrm(ks[9], (C,)),
        "g_c1": 1.0 + nrm(ks[10], (C,)), "bt_c1": nrm(ks[11], (C,)),
        "w_c2": nrm(ks[12], (C, C, 3, 3)), "b_c2": nrm(ks[13], (C,)),
        "g_c2": 1.0 + nrm(ks[14], (C,)), "bt_c2": nrm(ks[15], (C,)),
    }
    ms = jax.random.normal(ks[16], (N, C, H, W), jnp.float32)
    pan = jax.random.normal(ks[17], (N, C, H, W), jnp.float32)

    out = jax.block_until_ready(jax.jit(wcmf_forward)(ms, pan, params))
    ref = jax.block_until_ready(wcmf_reference(ms, pan, params))

    assert out.shape == (N, C, H, W)
    max_err = float(jnp.max(jnp.abs(out - ref)))
    assert jnp.allclose(out, ref, rtol=1e-3, atol=1e-3), f"max abs err {max_err}"

    print("KERNEL_OK")
</pallas_src>

<mosaic_0001>
module attributes {stable_mosaic.version = 11 : i64} {
  func.func @wcmf_kernel(%arg0: memref<2x8x8x128xf32, #tpu.memory_space<vmem>>, %arg1: memref<2x8x8x128xf32, #tpu.memory_space<vmem>>, %arg2: memref<128x128xf32, #tpu.memory_space<vmem>>, %arg3: memref<1x128xf32, #tpu.memory_space<vmem>>, %arg4: memref<1x128xf32, #tpu.memory_space<vmem>>, %arg5: memref<128x128xf32, #tpu.memory_space<vmem>>, %arg6: memref<1x128xf32, #tpu.memory_space<vmem>>, %arg7: memref<1x128xf32, #tpu.memory_space<vmem>>, %arg8: memref<3x768x128xf32, #tpu.memory_space<vmem>>, %arg9: memref<1x128xf32, #tpu.memory_space<vmem>>, %arg10: memref<1x128xf32, #tpu.memory_space<vmem>>, %arg11: memref<3x384x128xf32, #tpu.memory_space<vmem>>, %arg12: memref<1x128xf32, #tpu.memory_space<vmem>>, %arg13: memref<1x128xf32, #tpu.memory_space<vmem>>, %arg14: memref<2x8x8x128xf32, #tpu.memory_space<vmem>>, %arg15: memref<2x10x24x256xf32, #tpu.memory_space<vmem>>) attributes {dimension_semantics = [], scalar_prefetch = 0 : i64, scratch_operands = 1 : i64, tpu.core_type = #tpu.core_type<tc>} {
    %c0 = arith.constant 0 : index
    %c0_0 = arith.constant 0 : index
    %c0_1 = arith.constant 0 : index
    %c0_2 = arith.constant 0 : index
    %0 = vector.load %arg0[%c0, %c0_0, %c0_1, %c0_2] : memref<2x8x8x128xf32, #tpu.memory_space<vmem>>, vector<2x8x8x128xf32>
    %1 = vector.shape_cast %0 : vector<2x8x8x128xf32> to vector<128x128xf32>
    %c0_3 = arith.constant 0 : index
    %c0_4 = arith.constant 0 : index
    %2 = vector.load %arg2[%c0_3, %c0_4] : memref<128x128xf32, #tpu.memory_space<vmem>>, vector<128x128xf32>
    %cst = arith.constant dense<0.000000e+00> : vector<128x128xf32>
    %3 = tpu.matmul %1, %2, %cst {dimension_numbers = #tpu.dot_dimension_numbers<[1], [0], [0], [1], [0, 0, 1, 1], [], []>} : vector<128x128xf32>, vector<128x128xf32>, vector<128x128xf32> -> vector<128x128xf32>
    %c0_5 = arith.constant 0 : index
    %c0_6 = arith.constant 0 : index
    %4 = vector.load %arg3[%c0_5, %c0_6] : memref<1x128xf32, #tpu.memory_space<vmem>>, vector<1x128xf32>
    %c0_7 = arith.constant 0 : index
    %c0_8 = arith.constant 0 : index
    %5 = vector.load %arg4[%c0_7, %c0_8] : memref<1x128xf32, #tpu.memory_space<vmem>>, vector<1x128xf32>
    %cst_9 = arith.constant dense<0.000000e+00> : vector<128xf32>
    %6 = vector.multi_reduction <add>, %3, %cst_9 [0] : vector<128x128xf32> to vector<128xf32>
    %7 = vector.shape_cast %6 : vector<128xf32> to vector<1x128xf32>
    %8 = arith.mulf %3, %3 : vector<128x128xf32>
    %cst_10 = arith.constant dense<0.000000e+00> : vector<128xf32>
    %9 = vector.multi_reduction <add>, %8, %cst_10 [0] : vector<128x128xf32> to vector<128xf32>
    %10 = vector.shape_cast %9 : vector<128xf32> to vector<1x128xf32>
    %cst_11 = arith.constant 7.812500e-03 : f32
    %11 = vector.broadcast %cst_11 : f32 to vector<1x128xf32>
    %12 = arith.mulf %7, %11 : vector<1x128xf32>
    %cst_12 = arith.constant 7.812500e-03 : f32
    %13 = vector.broadcast %cst_12 : f32 to vector<1x128xf32>
    %14 = arith.mulf %10, %13 : vector<1x128xf32>
    %15 = arith.mulf %12, %12 : vector<1x128xf32>
    %16 = arith.subf %14, %15 : vector<1x128xf32>
    %17 = vector.broadcast %12 : vector<1x128xf32> to vector<128x128xf32>
    %18 = arith.subf %3, %17 : vector<128x128xf32>
    %cst_13 = arith.constant 9.99999974E-6 : f32
    %19 = vector.broadcast %cst_13 : f32 to vector<1x128xf32>
    %20 = arith.addf %16, %19 : vector<1x128xf32>
    %21 = math.rsqrt %20 : vector<1x128xf32>
    %22 = arith.mulf %21, %4 : vector<1x128xf32>
    %23 = vector.broadcast %22 : vector<1x128xf32> to vector<128x128xf32>
    %24 = arith.mulf %18, %23 : vector<128x128xf32>
    %25 = vector.broadcast %5 : vector<1x128xf32> to vector<128x128xf32>
    %26 = arith.addf %24, %25 : vector<128x128xf32>
    %cst_14 = arith.constant 0.000000e+00 : f32
    %27 = vector.broadcast %cst_14 : f32 to vector<128x128xf32>
    %28 = arith.maximumf %26, %27 : vector<128x128xf32>
    %c0_15 = arith.constant 0 : index
    %c0_16 = arith.constant 0 : index
    %c0_17 = arith.constant 0 : index
    %c0_18 = arith.constant 0 : index
    %29 = vector.load %arg1[%c0_15, %c0_16, %c0_17, %c0_18] : memref<2x8x8x128xf32, #tpu.memory_space<vmem>>, vector<2x8x8x128xf32>
    %30 = vector.shape_cast %29 : vector<2x8x8x128xf32> to vector<128x128xf32>
    %c0_19 = arith.constant 0 : index
    %c0_20 = arith.constant 0 : index
    %31 = vector.load %arg5[%c0_19, %c0_20] : memref<128x128xf32, #tpu.memory_space<vmem>>, vector<128x128xf32>
    %cst_21 = arith.constant dense<0.000000e+00> : vector<128x128xf32>
    %32 = tpu.matmul %30, %31, %cst_21 {dimension_numbers = #tpu.dot_dimension_numbers<[1], [0], [0], [1], [0, 0, 1, 1], [], []>} : vector<128x128xf32>, vector<128x128xf32>, vector<128x128xf32> -> vector<128x128xf32>
    %c0_22 = arith.constant 0 : index
    %c0_23 = arith.constant 0 : index
    %33 = vector.load %arg6[%c0_22, %c0_23] : memref<1x128xf32, #tpu.memory_space<vmem>>, vector<1x128xf32>
    %c0_24 = arith.constant 0 : index
    %c0_25 = arith.constant 0 : index
    %34 = vector.load %arg7[%c0_24, %c0_25] : memref<1x128xf32, #tpu.memory_space<vmem>>, vector<1x128xf32>
    %cst_26 = arith.constant dense<0.000000e+00> : vector<128xf32>
    %35 = vector.multi_reduction <add>, %32, %cst_26 [0] : vector<128x128xf32> to vector<128xf32>
    %36 = vector.shape_cast %35 : vector<128xf32> to vector<1x128xf32>
    %37 = arith.mulf %32, %32 : vector<128x128xf32>
    %cst_27 = arith.constant dense<0.000000e+00> : vector<128xf32>
    %38 = vector.multi_reduction <add>, %37, %cst_27 [0] : vector<128x128xf32> to vector<128xf32>
    %39 = vector.shape_cast %38 : vector<128xf32> to vector<1x128xf32>
    %cst_28 = arith.constant 7.812500e-03 : f32
    %40 = vector.broadcast %cst_28 : f32 to vector<1x128xf32>
    %41 = arith.mulf %36, %40 : vector<1x128xf32>
    %cst_29 = arith.constant 7.812500e-03 : f32
    %42 = vector.broadcast %cst_29 : f32 to vector<1x128xf32>
    %43 = arith.mulf %39, %42 : vector<1x128xf32>
    %44 = arith.mulf %41, %41 : vector<1x128xf32>
    %45 = arith.subf %43, %44 : vector<1x128xf32>
    %46 = vector.broadcast %41 : vector<1x128xf32> to vector<128x128xf32>
    %47 = arith.subf %32, %46 : vector<128x128xf32>
    %cst_30 = arith.constant 9.99999974E-6 : f32
    %48 = vector.broadcast %cst_30 : f32 to vector<1x128xf32>
    %49 = arith.addf %45, %48 : vector<1x128xf32>
    %50 = math.rsqrt %49 : vector<1x128xf32>
    %51 = arith.mulf %50, %33 : vector<1x128xf32>
    %52 = vector.broadcast %51 : vector<1x128xf32> to vector<128x128xf32>
    %53 = arith.mulf %47, %52 : vector<128x128xf32>
    %54 = vector.broadcast %34 : vector<1x128xf32> to vector<128x128xf32>
    %55 = arith.addf %53, %54 : vector<128x128xf32>
    %cst_31 = arith.constant 0.000000e+00 : f32
    %56 = vector.broadcast %cst_31 : f32 to vector<128x128xf32>
    %57 = arith.maximumf %55, %56 : vector<128x128xf32>
    %cst_32 = arith.constant 0.000000e+00 : f32
    %58 = vector.broadcast %cst_32 : f32 to vector<2x10x24x256xf32>
    %c0_33 = arith.constant 0 : index
    %c0_34 = arith.constant 0 : index
    %c0_35 = arith.constant 0 : index
    %c0_36 = arith.constant 0 : index
    %59 = vector.load %arg15[%c0_33, %c0_34, %c0_35, %c0_36] : memref<2x10x24x256xf32, #tpu.memory_space<vmem>>, vector<2x10x24x256xf32>
    tpu.vector_store %arg15[%c0_33, %c0_34, %c0_35, %c0_36], %58 {strides = array<i32>} : memref<2x10x24x256xf32, #tpu.memory_space<vmem>>, vector<2x10x24x256xf32>,
    %60 = vector.shape_cast %28 : vector<128x128xf32> to vector<2x8x8x128xf32>
    %61 = vector.shape_cast %57 : vector<128x128xf32> to vector<2x8x8x128xf32>
    %62 = tpu.concatenate %60, %61 in 3 : vector<2x8x8x128xf32>, vector<2x8x8x128xf32> -> vector<2x8x8x256xf32>
    %c0_37 = arith.constant 0 : index
    %c1 = arith.constant 1 : index
    %c8 = arith.constant 8 : index
    %c0_38 = arith.constant 0 : index
    %63 = vector.load %arg15[%c0_37, %c1, %c8, %c0_38] : memref<2x10x24x256xf32, #tpu.memory_space<vmem>>, vector<2x8x8x256xf32>
    tpu.vector_store %arg15[%c0_37, %c1, %c8, %c0_38], %62 {strides = array<i32>} : memref<2x10x24x256xf32, #tpu.memory_space<vmem>>, vector<2x8x8x256xf32>,
    %c0_39 = arith.constant 0 : index
    %c0_40 = arith.constant 0 : index
    %c0_41 = arith.constant 0 : index
    %c0_42 = arith.constant 0 : index
    %64 = vector.load %arg15[%c0_39, %c0_40, %c0_41, %c0_42] : memref<2x10x24x256xf32, #tpu.memory_space<vmem>>, vector<2x10x24x256xf32>
    %cst_43 = arith.constant 0.000000e+00 : f32
    %65 = vector.broadcast %cst_43 : f32 to vector<128x128xf32>
    %66 = vector.extract_strided_slice %64 {offsets = [0, 0, 7, 0], sizes = [2, 8, 8, 256], strides = [1, 1, 1, 1]} : vector<2x10x24x256xf32> to vector<2x8x8x256xf32>
    %67 = vector.shape_cast %66 : vector<2x8x8x256xf32> to vector<128x256xf32>
    %68 = vector.extract_strided_slice %64 {offsets = [0, 0, 8, 0], sizes = [2, 8, 8, 256], strides = [1, 1, 1, 1]} : vector<2x10x24x256xf32> to vector<2x8x8x256xf32>
    %69 = vector.shape_cast %68 : vector<2x8x8x256xf32> to vector<128x256xf32>
    %70 = vector.extract_strided_slice %64 {offsets = [0, 0, 9, 0], sizes = [2, 8, 8, 256], strides = [1, 1, 1, 1]} : vector<2x10x24x256xf32> to vector<2x8x8x256xf32>
    %71 = vector.shape_cast %70 : vector<2x8x8x256xf32> to vector<128x256xf32>
    %72 = tpu.concatenate %67, %69, %71 in 1 : vector<128x256xf32>, vector<128x256xf32>, vector<128x256xf32> -> vector<128x768xf32>
    %c0_44 = arith.constant 0 : index
    %c0_45 = arith.constant 0 : index
    %c0_46 = arith.constant 0 : index
    %73 = vector.load %arg8[%c0_44, %c0_45, %c0_46] : memref<3x768x128xf32, #tpu.memory_space<vmem>>, vector<1x768x128xf32>
    %74 = vector.shape_cast %73 : vector<1x768x128xf32> to vector<768x128xf32>
    %cst_47 = arith.constant dense<0.000000e+00> : vector<128x128xf32>
    %75 = tpu.matmul %72, %74, %cst_47 {dimension_numbers = #tpu.dot_dimension_numbers<[1], [0], [0], [1], [0, 0, 1, 1], [], []>} : vector<128x768xf32>, vector<768x128xf32>, vector<128x128xf32> -> vector<128x128xf32>
    %76 = arith.addf %65, %75 : vector<128x128xf32>
    %77 = vector.extract_strided_slice %64 {offsets = [0, 1, 7, 0], sizes = [2, 8, 8, 256], strides = [1, 1, 1, 1]} : vector<2x10x24x256xf32> to vector<2x8x8x256xf32>
    %78 = vector.shape_cast %77 : vector<2x8x8x256xf32> to vector<128x256xf32>
    %79 = vector.extract_strided_slice %64 {offsets = [0, 1, 8, 0], sizes = [2, 8, 8, 256], strides = [1, 1, 1, 1]} : vector<2x10x24x256xf32> to vector<2x8x8x256xf32>
    %80 = vector.shape_cast %79 : vector<2x8x8x256xf32> to vector<128x256xf32>
    %81 = vector.extract_strided_slice %64 {offsets = [0, 1, 9, 0], sizes = [2, 8, 8, 256], strides = [1, 1, 1, 1]} : vector<2x10x24x256xf32> to vector<2x8x8x256xf32>
    %82 = vector.shape_cast %81 : vector<2x8x8x256xf32> to vector<128x256xf32>
    %83 = tpu.concatenate %78, %80, %82 in 1 : vector<128x256xf32>, vector<128x256xf32>, vector<128x256xf32> -> vector<128x768xf32>
    %c1_48 = arith.constant 1 : index
    %c0_49 = arith.constant 0 : index
    %c0_50 = arith.constant 0 : index
    %84 = vector.load %arg8[%c1_48, %c0_49, %c0_50] : memref<3x768x128xf32, #tpu.memory_space<vmem>>, vector<1x768x128xf32>
    %85 = vector.shape_cast %84 : vector<1x768x128xf32> to vector<768x128xf32>
    %cst_51 = arith.constant dense<0.000000e+00> : vector<128x128xf32>
    %86 = tpu.matmul %83, %85, %cst_51 {dimension_numbers = #tpu.dot_dimension_numbers<[1], [0], [0], [1], [0, 0, 1, 1], [], []>} : vector<128x768xf32>, vector<768x128xf32>, vector<128x128xf32> -> vector<128x128xf32>
    %87 = arith.addf %76, %86 : vector<128x128xf32>
    %88 = vector.extract_strided_slice %64 {offsets = [0, 2, 7, 0], sizes = [2, 8, 8, 256], strides = [1, 1, 1, 1]} : vector<2x10x24x256xf32> to vector<2x8x8x256xf32>
    %89 = vector.shape_cast %88 : vector<2x8x8x256xf32> to vector<128x256xf32>
    %90 = vector.extract_strided_slice %64 {offsets = [0, 2, 8, 0], sizes = [2, 8, 8, 256], strides = [1, 1, 1, 1]} : vector<2x10x24x256xf32> to vector<2x8x8x256xf32>
    %91 = vector.shape_cast %90 : vector<2x8x8x256xf32> to vector<128x256xf32>
    %92 = vector.extract_strided_slice %64 {offsets = [0, 2, 9, 0], sizes = [2, 8, 8, 256], strides = [1, 1, 1, 1]} : vector<2x10x24x256xf32> to vector<2x8x8x256xf32>
    %93 = vector.shape_cast %92 : vector<2x8x8x256xf32> to vector<128x256xf32>
    %94 = tpu.concatenate %89, %91, %93 in 1 : vector<128x256xf32>, vector<128x256xf32>, vector<128x256xf32> -> vector<128x768xf32>
    %c2 = arith.constant 2 : index
    %c0_52 = arith.constant 0 : index
    %c0_53 = arith.constant 0 : index
    %95 = vector.load %arg8[%c2, %c0_52, %c0_53] : memref<3x768x128xf32, #tpu.memory_space<vmem>>, vector<1x768x128xf32>
    %96 = vector.shape_cast %95 : vector<1x768x128xf32> to vector<768x128xf32>
    %cst_54 = arith.constant dense<0.000000e+00> : vector<128x128xf32>
    %97 = tpu.matmul %94, %96, %cst_54 {dimension_numbers = #tpu.dot_dimension_numbers<[1], [0], [0], [1], [0, 0, 1, 1], [], []>} : vector<128x768xf32>, vector<768x128xf32>, vector<128x128xf32> -> vector<128x128xf32>
    %98 = arith.addf %87, %97 : vector<128x128xf32>
    %c0_55 = arith.constant 0 : index
    %c0_56 = arith.constant 0 : index
    %99 = vector.load %arg9[%c0_55, %c0_56] : memref<1x128xf32, #tpu.memory_space<vmem>>, vector<1x128xf32>
    %c0_57 = arith.constant 0 : index
    %c0_58 = arith.constant 0 : index
    %100 = vector.load %arg10[%c0_57, %c0_58] : memref<1x128xf32, #tpu.memory_space<vmem>>, vector<1x128xf32>
    %cst_59 = arith.constant dense<0.000000e+00> : vector<128xf32>
    %101 = vector.multi_reduction <add>, %98, %cst_59 [0] : vector<128x128xf32> to vector<128xf32>
    %102 = vector.shape_cast %101 : vector<128xf32> to vector<1x128xf32>
    %103 = arith.mulf %98, %98 : vector<128x128xf32>
    %cst_60 = arith.constant dense<0.000000e+00> : vector<128xf32>
    %104 = vector.multi_reduction <add>, %103, %cst_60 [0] : vector<128x128xf32> to vector<128xf32>
    %105 = vector.shape_cast %104 : vector<128xf32> to vector<1x128xf32>
    %cst_61 = arith.constant 7.812500e-03 : f32
    %106 = vector.broadcast %cst_61 : f32 to vector<1x128xf32>
    %107 = arith.mulf %102, %106 : vector<1x128xf32>
    %cst_62 = arith.constant 7.812500e-03 : f32
    %108 = vector.broadcast %cst_62 : f32 to vector<1x128xf32>
    %109 = arith.mulf %105, %108 : vector<1x128xf32>
    %110 = arith.mulf %107, %107 : vector<1x128xf32>
    %111 = arith.subf %109, %110 : vector<1x128xf32>
    %112 = vector.broadcast %107 : vector<1x128xf32> to vector<128x128xf32>
    %113 = arith.subf %98, %112 : vector<128x128xf32>
    %cst_63 = arith.constant 9.99999974E-6 : f32
    %114 = vector.broadcast %cst_63 : f32 to vector<1x128xf32>
    %115 = arith.addf %111, %114 : vector<1x128xf32>
    %116 = math.rsqrt %115 : vector<1x128xf32>
    %117 = arith.mulf %116, %99 : vector<1x128xf32>
    %118 = vector.broadcast %117 : vector<1x128xf32> to vector<128x128xf32>
    %119 = arith.mulf %113, %118 : vector<128x128xf32>
    %120 = vector.broadcast %100 : vector<1x128xf32> to vector<128x128xf32>
    %121 = arith.addf %119, %120 : vector<128x128xf32>
    %cst_64 = arith.constant 0.000000e+00 : f32
    %122 = vector.broadcast %cst_64 : f32 to vector<128x128xf32>
    %123 = arith.maximumf %121, %122 : vector<128x128xf32>
    %124 = vector.shape_cast %123 : vector<128x128xf32> to vector<2x8x8x128xf32>
    %c0_65 = arith.constant 0 : index
    %c1_66 = arith.constant 1 : index
    %c8_67 = arith.constant 8 : index
    %c0_68 = arith.constant 0 : index
    %125 = vector.load %arg15[%c0_65, %c1_66, %c8_67, %c0_68] : memref<2x10x24x256xf32, #tpu.memory_space<vmem>>, vector<2x8x8x128xf32>
    tpu.vector_store %arg15[%c0_65, %c1_66, %c8_67, %c0_68], %124 {strides = array<i32>} : memref<2x10x24x256xf32, #tpu.memory_space<vmem>>, vector<2x8x8x128xf32>,
    %c0_69 = arith.constant 0 : index
    %c0_70 = arith.constant 0 : index
    %c0_71 = arith.constant 0 : index
    %c0_72 = arith.constant 0 : index
    %126 = vector.load %arg15[%c0_69, %c0_70, %c0_71, %c0_72] : memref<2x10x24x256xf32, #tpu.memory_space<vmem>>, vector<2x10x24x128xf32>
    %cst_73 = arith.constant 0.000000e+00 : f32
    %127 = vector.broadcast %cst_73 : f32 to vector<128x128xf32>
    %128 = vector.extract_strided_slice %126 {offsets = [0, 0, 7, 0], sizes = [2, 8, 8, 128], strides = [1, 1, 1, 1]} : vector<2x10x24x128xf32> to vector<2x8x8x128xf32>
    %129 = vector.shape_cast %128 : vector<2x8x8x128xf32> to vector<128x128xf32>
    %130 = vector.extract_strided_slice %126 {offsets = [0, 0, 8, 0], sizes = [2, 8, 8, 128], strides = [1, 1, 1, 1]} : vector<2x10x24x128xf32> to vector<2x8x8x128xf32>
    %131 = vector.shape_cast %130 : vector<2x8x8x128xf32> to vector<128x128xf32>
    %132 = vector.extract_strided_slice %126 {offsets = [0, 0, 9, 0], sizes = [2, 8, 8, 128], strides = [1, 1, 1, 1]} : vector<2x10x24x128xf32> to vector<2x8x8x128xf32>
    %133 = vector.shape_cast %132 : vector<2x8x8x128xf32> to vector<128x128xf32>
    %134 = tpu.concatenate %129, %131, %133 in 1 : vector<128x128xf32>, vector<128x128xf32>, vector<128x128xf32> -> vector<128x384xf32>
    %c0_74 = arith.constant 0 : index
    %c0_75 = arith.constant 0 : index
    %c0_76 = arith.constant 0 : index
    %135 = vector.load %arg11[%c0_74, %c0_75, %c0_76] : memref<3x384x128xf32, #tpu.memory_space<vmem>>, vector<1x384x128xf32>
    %136 = vector.shape_cast %135 : vector<1x384x128xf32> to vector<384x128xf32>
    %cst_77 = arith.constant dense<0.000000e+00> : vector<128x128xf32>
    %137 = tpu.matmul %134, %136, %cst_77 {dimension_numbers = #tpu.dot_dimension_numbers<[1], [0], [0], [1], [0, 0, 1, 1], [], []>} : vector<128x384xf32>, vector<384x128xf32>, vector<128x128xf32> -> vector<128x128xf32>
    %138 = arith.addf %127, %137 : vector<128x128xf32>
    %139 = vector.extract_strided_slice %126 {offsets = [0, 1, 7, 0], sizes = [2, 8, 8, 128], strides = [1, 1, 1, 1]} : vector<2x10x24x128xf32> to vector<2x8x8x128xf32>
    %140 = vector.shape_cast %139 : vector<2x8x8x128xf32> to vector<128x128xf32>
    %141 = vector.extract_strided_slice %126 {offsets = [0, 1, 8, 0], sizes = [2, 8, 8, 128], strides = [1, 1, 1, 1]} : vector<2x10x24x128xf32> to vector<2x8x8x128xf32>
    %142 = vector.shape_cast %141 : vector<2x8x8x128xf32> to vector<128x128xf32>
    %143 = vector.extract_strided_slice %126 {offsets = [0, 1, 9, 0], sizes = [2, 8, 8, 128], strides = [1, 1, 1, 1]} : vector<2x10x24x128xf32> to vector<2x8x8x128xf32>
    %144 = vector.shape_cast %143 : vector<2x8x8x128xf32> to vector<128x128xf32>
    %145 = tpu.concatenate %140, %142, %144 in 1 : vector<128x128xf32>, vector<128x128xf32>, vector<128x128xf32> -> vector<128x384xf32>
    %c1_78 = arith.constant 1 : index
    %c0_79 = arith.constant 0 : index
    %c0_80 = arith.constant 0 : index
    %146 = vector.load %arg11[%c1_78, %c0_79, %c0_80] : memref<3x384x128xf32, #tpu.memory_space<vmem>>, vector<1x384x128xf32>
    %147 = vector.shape_cast %146 : vector<1x384x128xf32> to vector<384x128xf32>
    %cst_81 = arith.constant dense<0.000000e+00> : vector<128x128xf32>
    %148 = tpu.matmul %145, %147, %cst_81 {dimension_numbers = #tpu.dot_dimension_numbers<[1], [0], [0], [1], [0, 0, 1, 1], [], []>} : vector<128x384xf32>, vector<384x128xf32>, vector<128x128xf32> -> vector<128x128xf32>
    %149 = arith.addf %138, %148 : vector<128x128xf32>
    %150 = vector.extract_strided_slice %126 {offsets = [0, 2, 7, 0], sizes = [2, 8, 8, 128], strides = [1, 1, 1, 1]} : vector<2x10x24x128xf32> to vector<2x8x8x128xf32>
    %151 = vector.shape_cast %150 : vector<2x8x8x128xf32> to vector<128x128xf32>
    %152 = vector.extract_strided_slice %126 {offsets = [0, 2, 8, 0], sizes = [2, 8, 8, 128], strides = [1, 1, 1, 1]} : vector<2x10x24x128xf32> to vector<2x8x8x128xf32>
    %153 = vector.shape_cast %152 : vector<2x8x8x128xf32> to vector<128x128xf32>
    %154 = vector.extract_strided_slice %126 {offsets = [0, 2, 9, 0], sizes = [2, 8, 8, 128], strides = [1, 1, 1, 1]} : vector<2x10x24x128xf32> to vector<2x8x8x128xf32>
    %155 = vector.shape_cast %154 : vector<2x8x8x128xf32> to vector<128x128xf32>
    %156 = tpu.concatenate %151, %153, %155 in 1 : vector<128x128xf32>, vector<128x128xf32>, vector<128x128xf32> -> vector<128x384xf32>
    %c2_82 = arith.constant 2 : index
    %c0_83 = arith.constant 0 : index
    %c0_84 = arith.constant 0 : index
    %157 = vector.load %arg11[%c2_82, %c0_83, %c0_84] : memref<3x384x128xf32, #tpu.memory_space<vmem>>, vector<1x384x128xf32>
    %158 = vector.shape_cast %157 : vector<1x384x128xf32> to vector<384x128xf32>
    %cst_85 = arith.constant dense<0.000000e+00> : vector<128x128xf32>
    %159 = tpu.matmul %156, %158, %cst_85 {dimension_numbers = #tpu.dot_dimension_numbers<[1], [0], [0], [1], [0, 0, 1, 1], [], []>} : vector<128x384xf32>, vector<384x128xf32>, vector<128x128xf32> -> vector<128x128xf32>
    %160 = arith.addf %149, %159 : vector<128x128xf32>
    %c0_86 = arith.constant 0 : index
    %c0_87 = arith.constant 0 : index
    %161 = vector.load %arg12[%c0_86, %c0_87] : memref<1x128xf32, #tpu.memory_space<vmem>>, vector<1x128xf32>
    %c0_88 = arith.constant 0 : index
    %c0_89 = arith.constant 0 : index
    %162 = vector.load %arg13[%c0_88, %c0_89] : memref<1x128xf32, #tpu.memory_space<vmem>>, vector<1x128xf32>
    %cst_90 = arith.constant dense<0.000000e+00> : vector<128xf32>
    %163 = vector.multi_reduction <add>, %160, %cst_90 [0] : vector<128x128xf32> to vector<128xf32>
    %164 = vector.shape_cast %163 : vector<128xf32> to vector<1x128xf32>
    %165 = arith.mulf %160, %160 : vector<128x128xf32>
    %cst_91 = arith.constant dense<0.000000e+00> : vector<128xf32>
    %166 = vector.multi_reduction <add>, %165, %cst_91 [0] : vector<128x128xf32> to vector<128xf32>
    %167 = vector.shape_cast %166 : vector<128xf32> to vector<1x128xf32>
    %cst_92 = arith.constant 7.812500e-03 : f32
    %168 = vector.broadcast %cst_92 : f32 to vector<1x128xf32>
    %169 = arith.mulf %164, %168 : vector<1x128xf32>
    %cst_93 = arith.constant 7.812500e-03 : f32
    %170 = vector.broadcast %cst_93 : f32 to vector<1x128xf32>
    %171 = arith.mulf %167, %170 : vector<1x128xf32>
    %172 = arith.mulf %169, %169 : vector<1x128xf32>
    %173 = arith.subf %171, %172 : vector<1x128xf32>
    %174 = vector.broadcast %169 : vector<1x128xf32> to vector<128x128xf32>
    %175 = arith.subf %160, %174 : vector<128x128xf32>
    %cst_94 = arith.constant 9.99999974E-6 : f32
    %176 = vector.broadcast %cst_94 : f32 to vector<1x128xf32>
    %177 = arith.addf %173, %176 : vector<1x128xf32>
    %178 = math.rsqrt %177 : vector<1x128xf32>
    %179 = arith.mulf %178, %161 : vector<1x128xf32>
    %180 = vector.broadcast %179 : vector<1x128xf32> to vector<128x128xf32>
    %181 = arith.mulf %175, %180 : vector<128x128xf32>
    %182 = vector.broadcast %162 : vector<1x128xf32> to vector<128x128xf32>
    %183 = arith.addf %181, %182 : vector<128x128xf32>
    %cst_95 = arith.constant 0.000000e+00 : f32
    %184 = vector.broadcast %cst_95 : f32 to vector<128x128xf32>
    %185 = arith.maximumf %183, %184 : vector<128x128xf32>
    %186 = vector.extract_strided_slice %185 {offsets = [0, 0], sizes = [128, 1], strides = [1, 1]} : vector<128x128xf32> to vector<128x1xf32>
    %187 = vector.broadcast %186 : vector<128x1xf32> to vector<128x128xf32>
    %188 = arith.mulf %187, %28 : vector<128x128xf32>
    %189 = vector.extract_strided_slice %185 {offsets = [0, 1], sizes = [128, 1], strides = [1, 1]} : vector<128x128xf32> to vector<128x1xf32>
    %190 = vector.broadcast %189 : vector<128x1xf32> to vector<128x128xf32>
    %191 = arith.mulf %190, %57 : vector<128x128xf32>
    %192 = arith.addf %188, %191 : vector<128x128xf32>
    %193 = arith.mulf %188, %191 : vector<128x128xf32>
    %194 = arith.addf %192, %193 : vector<128x128xf32>
    %195 = vector.shape_cast %194 : vector<128x128xf32> to vector<2x8x8x128xf32>
    %c0_96 = arith.constant 0 : index
    %c0_97 = arith.constant 0 : index
    %c0_98 = arith.constant 0 : index
    %c0_99 = arith.constant 0 : index
    %196 = vector.load %arg14[%c0_96, %c0_97, %c0_98, %c0_99] : memref<2x8x8x128xf32, #tpu.memory_space<vmem>>, vector<2x8x8x128xf32>
    tpu.vector_store %arg14[%c0_96, %c0_97, %c0_98, %c0_99], %195 {strides = array<i32>} : memref<2x8x8x128xf32, #tpu.memory_space<vmem>>, vector<2x8x8x128xf32>,
    return
  }
}

</mosaic_0001>

<bundles_post_ra>
// kernel: wcmf_forward.1
= control target key start
LH: loop header
LB: loop body
LE: loop exit
PB: predicated region body
PF: predicated region fallthrough
CT: control target
= control target key end

     0   :  { %s11038_s0 = inlined_call_operand.vmem [shape: f32[2,8,8,128], index: 0, kind: input, shape index: {}]   ;;  %s11039_s1 = inlined_call_operand.vmem [shape: f32[2,8,8,128], index: 1, kind: input, shape index: {}]   ;;  %s11040_s2 = inlined_call_operand.vmem [shape: f32[128,128], index: 2, kind: input, shape index: {}]   ;;  %s11041_s3 = inlined_call_operand.vmem [shape: f32[1,128], index: 3, kind: input, shape index: {}]   ;;  %s11042_s4 = inlined_call_operand.vmem [shape: f32[1,128], index: 4, kind: input, shape index: {}]   ;;  %s11043_s5 = inlined_call_operand.vmem [shape: f32[128,128], index: 5, kind: input, shape index: {}]   ;;  %s11044_s6 = inlined_call_operand.vmem [shape: f32[1,128], index: 6, kind: input, shape index: {}]   ;;  %s11045_s7 = inlined_call_operand.vmem [shape: f32[1,128], index: 7, kind: input, shape index: {}]   ;;  %s11046_s8 = inlined_call_operand.vmem [shape: f32[3,768,128], index: 8, kind: input, shape index: {}]   ;;  %s11047_s9 = inlined_call_operand.vmem [shape: f32[1,128], index: 9, kind: input, shape index: {}]   ;;  %s11048_s10 = inlined_call_operand.vmem [shape: f32[1,128], index: 10, kind: input, shape index: {}]   ;;  %s11049_s11 = inlined_call_operand.vmem [shape: f32[3,384,128], index: 11, kind: input, shape index: {}]   ;;  %s11050_s12 = inlined_call_operand.vmem [shape: f32[1,128], index: 12, kind: input, shape index: {}]   ;;  %s11051_s13 = inlined_call_operand.vmem [shape: f32[1,128], index: 13, kind: input, shape index: {}]   ;;  %s11052_s14 = inlined_call_operand.hbm [shape: f32[2,8,8,128], index: 14, kind: output, shape index: {}]  }
   0x1   :  { %v64_v0 = vld [vmem:[%s11040_s2] sm:$0xff]  ;;  %v65_v1 = vld [vmem:[%s11040_s2 + $0x8] sm:$0xff]  ;;  %v66_v2 = vld [vmem:[%s11040_s2 + $0x10] sm:$0xff] }
   0x2   :  { %v6568_v3 = vpack.c.bf16 %v65_v1, %v64_v0  ;;  %v67_v4 = vld [vmem:[%s11040_s2 + $0x18] sm:$0xff]  ;;  %v68_v6 = vld [vmem:[%s11040_s2 + $0x20] sm:$0xff]  ;;  %v69_v7 = vld [vmem:[%s11040_s2 + $0x28] sm:$0xff] }
   0x3   :  { %v6572_v5 = vpack.c.bf16 %v67_v4, %v66_v2  ;;  %v6576_v8 = vpack.c.bf16 %v69_v7, %v68_v6  ;;  %v48_v9 = vld [vmem:[%s11038_s0] sm:$0xff]  ;;  %v70_v10 = vld [vmem:[%s11040_s2 + $0x30] sm:$0xff]  ;;  %v71_v11 = vld [vmem:[%s11040_s2 + $0x38] sm:$0xff] }
   0x4   :  { %6569 = vmatprep.subr.bf16.mxu1 %v6568_v3  ;;  %6320 = vmatprep.mubr.f32.mxu1 %v48_v9  ;;  %v6580_v12 = vpack.c.bf16 %v71_v11, %v70_v10  ;;  %v72_v13 = vld [vmem:[%s11040_s2 + $0x40] sm:$0xff]  ;;  %v73_v14 = vld [vmem:[%s11040_s2 + $0x48] sm:$0xff]  ;;  %v74_v16 = vld [vmem:[%s11040_s2 + $0x50] sm:$0xff] }
   0x5   :  { %6571 = vmatpush3.bf16.msra.mxu1 %v6568_v3  ;;  %v6584_v15 = vpack.c.bf16 %v73_v14, %v72_v13  ;;  %v75_v17 = vld [vmem:[%s11040_s2 + $0x58] sm:$0xff]  ;;  %v76_v19 = vld [vmem:[%s11040_s2 + $0x60] sm:$0xff]  ;;  %v77_v20 = vld [vmem:[%s11040_s2 + $0x68] sm:$0xff] }
   0x6   :  { %6573 = vmatprep.subr.bf16.mxu1 %v6572_v5  ;;  %v6588_v18 = vpack.c.bf16 %v75_v17, %v74_v16  ;;  %v6592_v21 = vpack.c.bf16 %v77_v20, %v76_v19 }
   0x9   :  { %6575 = vmatpush3.bf16.msra.mxu1 %v6572_v5 }
   0xa   :  { %6577 = vmatprep.subr.bf16.mxu1 %v6576_v8 }
   0xd   :  { %6579 = vmatpush3.bf16.msra.mxu1 %v6576_v8 }
   0xe   :  { %6581 = vmatprep.subr.bf16.mxu1 %v6580_v12 }
  0x11   :  { %6583 = vmatpush3.bf16.msra.mxu1 %v6580_v12 }
  0x12   :  { %6585 = vmatprep.subr.bf16.mxu1 %v6584_v15 }
  0x15   :  { %6587 = vmatpush3.bf16.msra.mxu1 %v6584_v15 }
  0x16   :  { %6589 = vmatprep.subr.bf16.mxu1 %v6588_v18 }
  0x17   :  { %19 = vsyncpa [#allocation4], 0  ;;  %v78_v22 = vld [vmem:[%s11040_s2 + $0x70] sm:$0xff]  ;;  %v79_v23 = vld [vmem:[%s11040_s2 + $0x78] sm:$0xff]  ;;  %vm1021_vm0 = vcmask 1040384   ;;  %vm1182_vm1 = vcmask 1046528  }
  0x18   :  { %v6596_v24 = vpack.c.bf16 %v79_v23, %v78_v22  ;;  %v382_v25 = vld [vmem:[%s11043_s5] sm:$0xff]  ;;  %v383_v26 = vld [vmem:[%s11043_s5 + $0x8] sm:$0xff]  ;;  %v384_v28 = vld [vmem:[%s11043_s5 + $0x10] sm:$0xff] }
  0x19   :  { %6591 = vmatpush3.bf16.msra.mxu1 %v6588_v18  ;;  %v6600_v27 = vpack.c.bf16 %v383_v26, %v382_v25  ;;  %v385_v29 = vld [vmem:[%s11043_s5 + $0x18] sm:$0xff]  ;;  %v49_v30 = vld [vmem:[%s11038_s0 + $0x8] sm:$0xff]  ;;  %v50_v31 = vld [vmem:[%s11038_s0 + $0x10] sm:$0xff] }
  0x1a   :  { %6593 = vmatprep.subr.bf16.mxu1 %v6592_v21  ;;  %v6604_v32 = vpack.c.bf16 %v385_v29, %v384_v28  ;;  %v386_v33 = vld [vmem:[%s11043_s5 + $0x20] sm:$0xff]  ;;  %v387_v34 = vld [vmem:[%s11043_s5 + $0x28] sm:$0xff]  ;;  %v51_v35 = vld [vmem:[%s11038_s0 + $0x18] sm:$0xff] }
  0x1b   :  { %v52_v36 = vld [vmem:[%s11038_s0 + $0x20] sm:$0xff]  ;;  %v6608_v37 = vpack.c.bf16 %v387_v34, %v386_v33  ;;  %v388_v38 = vld [vmem:[%s11043_s5 + $0x30] sm:$0xff]  ;;  %v389_v39 = vld [vmem:[%s11043_s5 + $0x38] sm:$0xff] }
  0x1c   :  { %v53_v40 = vld [vmem:[%s11038_s0 + $0x28] sm:$0xff]  ;;  %v54_v41 = vld [vmem:[%s11038_s0 + $0x30] sm:$0xff]  ;;  %v6612_v42 = vpack.c.bf16 %v389_v39, %v388_v38  ;;  %v390_v43 = vld [vmem:[%s11043_s5 + $0x40] sm:$0xff] }
  0x1d   :  { %6595 = vmatpush3.bf16.msra.mxu1 %v6592_v21  ;;  %v391_v44 = vld [vmem:[%s11043_s5 + $0x48] sm:$0xff]  ;;  %v55_v45 = vld [vmem:[%s11038_s0 + $0x38] sm:$0xff]  ;;  %v56_v46 = vld [vmem:[%s11038_s0 + $0x40] sm:$0xff] }
  0x1e   :  { %6597 = vmatprep.subr.bf16.mxu1 %v6596_v24  ;;  %v6616_v47 = vpack.c.bf16 %v391_v44, %v390_v43  ;;  %v392_v48 = vld [vmem:[%s11043_s5 + $0x50] sm:$0xff]  ;;  %v393_v49 = vld [vmem:[%s11043_s5 + $0x58] sm:$0xff]  ;;  %v57_v50 = vld [vmem:[%s11038_s0 + $0x48] sm:$0xff] }
  0x1f   :  { %v58_v51 = vld [vmem:[%s11038_s0 + $0x50] sm:$0xff]  ;;  %v6620_v52 = vpack.c.bf16 %v393_v49, %v392_v48  ;;  %v394_v53 = vld [vmem:[%s11043_s5 + $0x60] sm:$0xff]  ;;  %v395_v54 = vld [vmem:[%s11043_s5 + $0x68] sm:$0xff] }
  0x20   :  { %v59_v55 = vld [vmem:[%s11038_s0 + $0x58] sm:$0xff]  ;;  %v60_v56 = vld [vmem:[%s11038_s0 + $0x60] sm:$0xff]  ;;  %v6624_v57 = vpack.c.bf16 %v395_v54, %v394_v53  ;;  %v396_v58 = vld [vmem:[%s11043_s5 + $0x70] sm:$0xff] }
  0x21   :  { %6599 = vmatpush3.bf16.msra.mxu1 %v6596_v24  ;;  %v397_v59 = vld [vmem:[%s11043_s5 + $0x78] sm:$0xff]  ;;  %v61_v60 = vld [vmem:[%s11038_s0 + $0x68] sm:$0xff]  ;;  %v62_v61 = vld [vmem:[%s11038_s0 + $0x70] sm:$0xff] }
  0x22   :  { %6601 = vmatprep.subr.bf16.mxu1 %v6600_v27  ;;  %v6628_v62 = vpack.c.bf16 %v397_v59, %v396_v58  ;;  %v63_v63 = vld [vmem:[%s11038_s0 + $0x78] sm:$0xff]  ;;  %v366_v0 = vld [vmem:[%s11039_s1] sm:$0xff]  ;;  %v367_v1 = vld [vmem:[%s11039_s1 + $0x8] sm:$0xff] }
  0x23   :  { %v368_v2 = vld [vmem:[%s11039_s1 + $0x10] sm:$0xff]  ;;  %v369_v3 = vld [vmem:[%s11039_s1 + $0x18] sm:$0xff]  ;;  %v370_v4 = vld [vmem:[%s11039_s1 + $0x20] sm:$0xff] }
  0x24   :  { %6321 = vmatmul.mubr.f32.vlgmr.msra.gmra.mrb[0].mxu1 %v49_v30  ;;  %v371_v5 = vld [vmem:[%s11039_s1 + $0x28] sm:$0xff]  ;;  %v372_v6 = vld [vmem:[%s11039_s1 + $0x30] sm:$0xff]  ;;  %v373_v7 = vld [vmem:[%s11039_s1 + $0x38] sm:$0xff] }
  0x25   :  { %6603 = vmatpush3.bf16.msra.mxu1 %v6600_v27  ;;  %6323 = vmatprep.mubr.f32.mxu1 %v50_v31  ;;  %v374_v8 = vld [vmem:[%s11039_s1 + $0x40] sm:$0xff]  ;;  %v375_v9 = vld [vmem:[%s11039_s1 + $0x48] sm:$0xff]  ;;  %v376_v10 = vld [vmem:[%s11039_s1 + $0x50] sm:$0xff] }
  0x26   :  { %6605 = vmatprep.subr.bf16.mxu1 %v6604_v32  ;;  %v377_v11 = vld [vmem:[%s11039_s1 + $0x58] sm:$0xff]  ;;  %v378_v12 = vld [vmem:[%s11039_s1 + $0x60] sm:$0xff]  ;;  %v379_v13 = vld [vmem:[%s11039_s1 + $0x68] sm:$0xff] }
  0x27   :  { %v380_v14 = vld [vmem:[%s11039_s1 + $0x70] sm:$0xff]  ;;  %v381_v15 = vld [vmem:[%s11039_s1 + $0x78] sm:$0xff]  ;;  %v4926_v16 = vld [vmem:[%s11046_s8 + $0x480] sm:$0xff] }
  0x28   :  { %6324 = vmatmul.mubr.f32.gmra.mrb[2].mxu1 %v51_v35  ;;  %v4927_v17 = vld [vmem:[%s11046_s8 + $0x488] sm:$0xff]  ;;  %v4910_v19 = vld [vmem:[%s11046_s8 + $0x400] sm:$0xff]  ;;  %v4928_v27 = vld [vmem:[%s11046_s8 + $0x490] sm:$0xff] }
  0x29   :  { %6607 = vmatpush3.bf16.msra.mxu1 %v6604_v32  ;;  %6326 = vmatprep.mubr.f32.mxu1 %v52_v36  ;;  %v6664_v18 = vpack.c.bf16 %v4927_v17, %v4926_v16  ;;  %v4911_v20 = vld [vmem:[%s11046_s8 + $0x408] sm:$0xff]  ;;  %v4894_v22 = vld [vmem:[%s11046_s8 + $0x380] sm:$0xff]  ;;  %v4929_v29 = vld [vmem:[%s11046_s8 + $0x498] sm:$0xff] }
  0x2a   :  { %6609 = vmatprep.subr.bf16.mxu1 %v6608_v37  ;;  %v6666_v21 = vpack.c.bf16 %v4911_v20, %v4910_v19  ;;  %v4895_v23 = vld [vmem:[%s11046_s8 + $0x388] sm:$0xff]  ;;  %v4878_v25 = vld [vmem:[%s11046_s8 + $0x300] sm:$0xff]  ;;  %v4912_v30 = vld [vmem:[%s11046_s8 + $0x410] sm:$0xff]  ;;  %v6668_v32 = vpack.c.bf16 %v4929_v29, %v4928_v27 }
  0x2b   :  { %v6632_v24 = vpack.c.bf16 %v4895_v23, %v4894_v22  ;;  %v4879_v26 = vld [vmem:[%s11046_s8 + $0x308] sm:$0xff]  ;;  %v4913_v31 = vld [vmem:[%s11046_s8 + $0x418] sm:$0xff]  ;;  %v4896_v34 = vld [vmem:[%s11046_s8 + $0x390] sm:$0xff] }
  0x2c   :  { %6327 = vmatmul.mubr.f32.gmra.mrb[4].mxu1 %v53_v40  ;;  %v6634_v28 = vpack.c.bf16 %v4879_v26, %v4878_v25  ;;  %v6670_v33 = vpack.c.bf16 %v4913_v31, %v4912_v30  ;;  %v4897_v35 = vld [vmem:[%s11046_s8 + $0x398] sm:$0xff]  ;;  %v4930_v39 = vld [vmem:[%s11046_s8 + $0x4a0] sm:$0xff]  ;;  %v4915_v43 = vld [vmem:[%s11046_s8 + $0x428] sm:$0xff] }
  0x2d   :  { %6611 = vmatpush3.bf16.msra.mxu1 %v6608_v37  ;;  %6329 = vmatprep.mubr.f32.mxu1 %v54_v41  ;;  %v6636_v36 = vpack.c.bf16 %v4897_v35, %v4896_v34  ;;  %v4880_v37 = vld [vmem:[%s11046_s8 + $0x310] sm:$0xff]  ;;  %v4881_v38 = vld [vmem:[%s11046_s8 + $0x318] sm:$0xff]  ;;  %v4931_v41 = vld [vmem:[%s11046_s8 + $0x4a8] sm:$0xff] }
  0x2e   :  { %6613 = vmatprep.subr.bf16.mxu1 %v6612_v42  ;;  %6633 = vmatprep.subr.bf16.mxu0 %v6632_v24  ;;  %v6638_v40 = vpack.c.bf16 %v4881_v38, %v4880_v37  ;;  %v6672_v44 = vpack.c.bf16 %v4931_v41, %v4930_v39  ;;  %v4882_v49 = vld [vmem:[%s11046_s8 + $0x320] sm:$0xff]  ;;  %v4933_v53 = vld [vmem:[%s11046_s8 + $0x4b8] sm:$0xff]  ;;  %v4916_v54 = vld [vmem:[%s11046_s8 + $0x430] sm:$0xff] }
  0x2f   :  { %6635 = vmatpush3.bf16.msra.mxu0 %v6634_v28  ;;  %v4900_v58 = vld [vmem:[%s11046_s8 + $0x3b0] sm:$0xff]  ;;  %v4901_v59 = vld [vmem:[%s11046_s8 + $0x3b8] sm:$0xff]  ;;  %v4938_v23 = vld [vmem:[%s11046_s8 + $0x4e0] sm:$0xff] }
  0x30   :  { %6330 = vmatmul.mubr.f32.gmra.mrb[6].mxu1 %v55_v45  ;;  %6637 = vmatprep.subr.bf16.mxu0 %v6636_v36  ;;  %v4905_v19 = vld [vmem:[%s11046_s8 + $0x3d8] sm:$0xff]  ;;  %v4939_v25 = vld [vmem:[%s11046_s8 + $0x4e8] sm:$0xff]  ;;  %v4922_v26 = vld [vmem:[%s11046_s8 + $0x460] sm:$0xff] }
  0x31   :  { %6615 = vmatpush3.bf16.msra.mxu1 %v6612_v42  ;;  %6332 = vmatprep.mubr.f32.mxu1 %v56_v46  ;;  %v4914_v42 = vld [vmem:[%s11046_s8 + $0x420] sm:$0xff]  ;;  %v4889_v22 = vld [vmem:[%s11046_s8 + $0x358] sm:$0xff]  ;;  %v4923_v27 = vld [vmem:[%s11046_s8 + $0x468] sm:$0xff]  ;;  %v6688_v28 = vpack.c.bf16 %v4939_v25, %v4938_v23 }
  0x32   :  { %6617 = vmatprep.subr.bf16.mxu1 %v6616_v47  ;;  %v6674_v45 = vpack.c.bf16 %v4915_v43, %v4914_v42  ;;  %v4898_v46 = vld [vmem:[%s11046_s8 + $0x3a0] sm:$0xff]  ;;  %v6690_v29 = vpack.c.bf16 %v4923_v27, %v4922_v26  ;;  %v4907_v31 = vld [vmem:[%s11046_s8 + $0x3e8] sm:$0xff]  ;;  %v4940_v35 = vld [vmem:[%s11046_s8 + $0x4f0] sm:$0xff] }
  0x33   :  { %6639 = vmatpush3.bf16.msra.mxu0 %v6638_v40  ;;  %v4906_v30 = vld [vmem:[%s11046_s8 + $0x3e0] sm:$0xff]  ;;  %v4891_v34 = vld [vmem:[%s11046_s8 + $0x368] sm:$0xff]  ;;  %v4941_v37 = vld [vmem:[%s11046_s8 + $0x4f8] sm:$0xff] }
  0x34   :  { %6333 = vmatmul.mubr.f32.gmra.mrb[8].mxu1 %v57_v50  ;;  %v4883_v50 = vld [vmem:[%s11046_s8 + $0x328] sm:$0xff]  ;;  %v4924_v38 = vld [vmem:[%s11046_s8 + $0x470] sm:$0xff]  ;;  %v4925_v39 = vld [vmem:[%s11046_s8 + $0x478] sm:$0xff]  ;;  %v6692_v40 = vpack.c.bf16 %v4941_v37, %v4940_v35 }
  0x35   :  { %6619 = vmatpush3.bf16.msra.mxu1 %v6616_v47  ;;  %6335 = vmatprep.mubr.f32.mxu1 %v58_v51  ;;  %v4899_v47 = vld [vmem:[%s11046_s8 + $0x3a8] sm:$0xff]  ;;  %v4932_v51 = vld [vmem:[%s11046_s8 + $0x4b0] sm:$0xff]  ;;  %v6694_v41 = vpack.c.bf16 %v4925_v39, %v4924_v38  ;;  %v4909_v43 = vld [vmem:[%s11046_s8 + $0x3f8] sm:$0xff] }
  0x36   :  { %6621 = vmatprep.subr.bf16.mxu1 %v6620_v52  ;;  %v6640_v48 = vpack.c.bf16 %v4899_v47, %v4898_v46  ;;  %v4908_v42 = vld [vmem:[%s11046_s8 + $0x3f0] sm:$0xff]  ;;  %v4893_v46 = vld [vmem:[%s11046_s8 + $0x378] sm:$0xff] }
  0x38   :  { %6336 = vmatmul.mubr.f32.gmra.mrb[10].mxu1 %v59_v55  ;;  %v4917_v55 = vld [vmem:[%s11046_s8 + $0x438] sm:$0xff]  ;;  %6641 = vmatprep.subr.bf16.mxu0 %v6640_v48  ;;  %v4958_v48 = vld [vmem:[%s11046_s8 + $0x580] sm:$0xff] }
  0x39   :  { %6623 = vmatpush3.bf16.msra.mxu1 %v6620_v52  ;;  %6338 = vmatprep.mubr.f32.mxu1 %v60_v56  ;;  %v6642_v52 = vpack.c.bf16 %v4883_v50, %v4882_v49  ;;  %v6676_v56 = vpack.c.bf16 %v4933_v53, %v4932_v51  ;;  %v4959_v49 = vld [vmem:[%s11046_s8 + $0x588] sm:$0xff] }
  0x3a   :  { %6625 = vmatprep.subr.bf16.mxu1 %v6624_v57  ;;  %v6696_v50 = vpack.c.bf16 %v4959_v49, %v4958_v48 }
  0x3b   :  { %6643 = vmatpush3.bf16.msra.mxu0 %v6642_v52 }
  0x3c   :  { %6339 = vmatmul.mubr.f32.gmra.mrb[12].mxu1 %v61_v60  ;;  %v6644_v60 = vpack.c.bf16 %v4901_v59, %v4900_v58 }
  0x3d   :  { %6627 = vmatpush3.bf16.msra.mxu1 %v6624_v57  ;;  %6341 = vmatprep.mubr.f32.mxu1 %v62_v61  ;;  %v6678_v57 = vpack.c.bf16 %v4917_v55, %v4916_v54  ;;  %v4884_v61 = vld [vmem:[%s11046_s8 + $0x330] sm:$0xff] }
  0x3e   :  { %6629 = vmatprep.subr.bf16.mxu1 %v6628_v62  ;;  %6645 = vmatprep.subr.bf16.mxu0 %v6644_v60 }
  0x40   :  { %6342 = vmatmul.mubr.f32.gmra.mrb[14].mxu1 %v63_v63  ;;  %v4934_v63 = vld [vmem:[%s11046_s8 + $0x4c0] sm:$0xff] }
  0x41   :  { %6631 = vmatpush3.bf16.msra.mxu1 %v6628_v62  ;;  %6376 = vmatprep.mubr.f32.mxu1 %v366_v0  ;;  %v4885_v62 = vld [vmem:[%s11046_s8 + $0x338] sm:$0xff] }
  0x42   :  { %6665 = vmatprep.subr.bf16.mxu1 %v6664_v18  ;;  %v6646_v0 = vpack.c.bf16 %v4885_v62, %v4884_v61  ;;  %v4904_v18 = vld [vmem:[%s11046_s8 + $0x3d0] sm:$0xff] }
  0x43   :  { %v6652_v20 = vpack.c.bf16 %v4905_v19, %v4904_v18 }
  0x44   :  { %6377 = vmatmul.mubr.f32.vlgmr.msra.gmra.mrb[16].mxu1 %v367_v1  ;;  %v4935_v1 = vld [vmem:[%s11046_s8 + $0x4c8] sm:$0xff]  ;;  %6647 = vmatpush3.bf16.msra.mxu0 %v6646_v0 }
  0x45   :  { %6379 = vmatprep.mubr.f32.mxu1 %v368_v2  ;;  %6667 = vmatpush3.bf16.msra.mxu1 %v6666_v21  ;;  %v4918_v2 = vld [vmem:[%s11046_s8 + $0x440] sm:$0xff]  ;;  %v4888_v21 = vld [vmem:[%s11046_s8 + $0x350] sm:$0xff] }
  0x46   :  { %6669 = vmatprep.subr.bf16.mxu1 %v6668_v32  ;;  %v6654_v24 = vpack.c.bf16 %v4889_v22, %v4888_v21  ;;  %v6656_v32 = vpack.c.bf16 %v4907_v31, %v4906_v30 }
  0x48   :  { %6380 = vmatmul.mubr.f32.gmra.mrb[18].mxu1 %v369_v3  ;;  %v4919_v3 = vld [vmem:[%s11046_s8 + $0x448] sm:$0xff] }
  0x49   :  { %6382 = vmatprep.mubr.f32.mxu1 %v370_v4  ;;  %6671 = vmatpush3.bf16.msra.mxu1 %v6670_v33  ;;  %v6680_v4 = vpack.c.bf16 %v4935_v1, %v4934_v63  ;;  %v4890_v33 = vld [vmem:[%s11046_s8 + $0x360] sm:$0xff] }
  0x4a   :  { %6673 = vmatprep.subr.bf16.mxu1 %v6672_v44  ;;  %v6658_v36 = vpack.c.bf16 %v4891_v34, %v4890_v33  ;;  %v6660_v44 = vpack.c.bf16 %v4909_v43, %v4908_v42 }
  0x4c   :  { %6383 = vmatmul.mubr.f32.gmra.mrb[20].mxu1 %v371_v5  ;;  %v6682_v5 = vpack.c.bf16 %v4919_v3, %v4918_v2 }
  0x4d   :  { %6385 = vmatprep.mubr.f32.mxu1 %v372_v6  ;;  %6675 = vmatpush3.bf16.msra.mxu1 %v6674_v45  ;;  %v4902_v6 = vld [vmem:[%s11046_s8 + $0x3c0] sm:$0xff]  ;;  %v4892_v45 = vld [vmem:[%s11046_s8 + $0x370] sm:$0xff] }
  0x4e   :  { %6677 = vmatprep.subr.bf16.mxu1 %v6676_v56  ;;  %v6662_v47 = vpack.c.bf16 %v4893_v46, %v4892_v45 }
  0x50   :  { %6386 = vmatmul.mubr.f32.gmra.mrb[22].mxu1 %v373_v7  ;;  %v4903_v7 = vld [vmem:[%s11046_s8 + $0x3c8] sm:$0xff] }
  0x51   :  { %6388 = vmatprep.mubr.f32.mxu1 %v374_v8  ;;  %6679 = vmatpush3.bf16.msra.mxu1 %v6678_v57  ;;  %v6648_v8 = vpack.c.bf16 %v4903_v7, %v4902_v6 }
  0x52   :  { %6681 = vmatprep.subr.bf16.mxu1 %v6680_v4 }
  0x53   :  { %6649 = vmatprep.subr.bf16.mxu0 %v6648_v8 }
  0x54   :  { %6389 = vmatmul.mubr.f32.gmra.mrb[24].mxu1 %v375_v9  ;;  %v4886_v9 = vld [vmem:[%s11046_s8 + $0x340] sm:$0xff] }
  0x55   :  { %6391 = vmatprep.mubr.f32.mxu1 %v376_v10  ;;  %v4887_v10 = vld [vmem:[%s11046_s8 + $0x348] sm:$0xff]  ;;  %6683 = vmatpush3.bf16.msra.mxu1 %v6682_v5 }
  0x58   :  { %6392 = vmatmul.mubr.f32.gmra.mrb[26].mxu1 %v377_v11  ;;  %v4936_v11 = vld [vmem:[%s11046_s8 + $0x4d0] sm:$0xff] }
  0x59   :  { %6394 = vmatprep.mubr.f32.mxu1 %v378_v12  ;;  %v6650_v12 = vpack.c.bf16 %v4887_v10, %v4886_v9  ;;  %v1327_v10 = vld [vmem:[%s11046_s8 + $0x80] sm:$0xff] }
  0x5b   :  { %6651 = vmatpush3.bf16.msra.mxu0 %v6650_v12 }
  0x5c   :  { %6395 = vmatmul.mubr.f32.gmra.mrb[28].mxu1 %v379_v13  ;;  %v4937_v13 = vld [vmem:[%s11046_s8 + $0x4d8] sm:$0xff]  ;;  %6653 = vmatprep.subr.bf16.mxu0 %v6652_v20 }
  0x5d   :  { %6397 = vmatprep.mubr.f32.mxu1 %v380_v14  ;;  %v4920_v14 = vld [vmem:[%s11046_s8 + $0x450] sm:$0xff]  ;;  %v6684_v16 = vpack.c.bf16 %v4937_v13, %v4936_v11  ;;  %v1328_v11 = vld [vmem:[%s11046_s8 + $0x88] sm:$0xff] }
  0x5f   :  { %6685 = vmatprep.subr.bf16.mxu1 %v6684_v16  ;;  %6655 = vmatpush3.bf16.msra.mxu0 %v6654_v24 }
  0x60   :  { %6398 = vmatmul.mubr.f32.gmra.mrb[30].mxu1 %v381_v15  ;;  %v4921_v15 = vld [vmem:[%s11046_s8 + $0x458] sm:$0xff]  ;;  %6657 = vmatprep.subr.bf16.mxu0 %v6656_v32 }
  0x61   :  { %v6686_v17 = vpack.c.bf16 %v4921_v15, %v4920_v14  ;;  %v6728_v15 = vpack.c.bf16 %v1328_v11, %v1327_v10 }
  0x63   :  { %6687 = vmatpush3.bf16.msra.mxu1 %v6686_v17  ;;  %6659 = vmatpush3.bf16.msra.mxu0 %v6658_v36 }
  0x64   :  { %6689 = vmatprep.subr.bf16.mxu1 %v6688_v28  ;;  %6661 = vmatprep.subr.bf16.mxu0 %v6660_v44 }
  0x67   :  { %6691 = vmatpush3.bf16.msra.mxu1 %v6690_v29  ;;  %6663 = vmatpush3.bf16.msra.mxu0 %v6662_v47 }
  0x68   :  { %6693 = vmatprep.subr.bf16.mxu1 %v6692_v40  ;;  %6697 = vmatprep.subr.bf16.mxu0 %v6696_v50 }
  0x6b   :  { %6695 = vmatpush3.bf16.msra.mxu1 %v6694_v41 }
  0x6c   :  { %6729 = vmatprep.subr.bf16.mxu1 %v6728_v15 }
  0xf7   :  { %v7721_v51 = vpop.f32.mrb[0].mxu1 }
  0xf8   :  { %v249_v52 = vmul.f32 %v7721_v51, %v7721_v51  ;;  %v7725_v53 = vpop.f32.mrb[1].mxu1 }
  0xf9   :  { %v227_v54 = vadd.f32 %v7721_v51, %v7725_v53  ;;  %v248_v55 = vmul.f32 %v7725_v53, %v7725_v53 }
  0xfb   :  { %v264_v56 = vadd.f32 %v249_v52, %v248_v55  ;;  %v7731_v57 = vpop.f32.mrb[2].mxu1 }
  0xfc   :  { %v7733_v58 = vpop.f32.mrb[3].mxu1  ;;  %v251_v61 = vmul.f32 %v7731_v57, %v7731_v57 }
  0xfd   :  { %v228_v59 = vadd.f32 %v227_v54, %v7733_v58  ;;  %v250_v60 = vmul.f32 %v7733_v58, %v7733_v58 }
  0xff   :  { %v265_v62 = vadd.f32 %v264_v56, %v250_v60  ;;  %v7740_v63 = vpop.f32.mrb[4].mxu1  ;;  %v229_v0 = vadd.f32 %v7731_v57, %v228_v59 }
 0x100   :  { %v7743_v1 = vpop.f32.mrb[5].mxu1  ;;  %v253_v5 = vmul.f32 %v7740_v63, %v7740_v63 }
 0x101   :  { %v230_v2 = vadd.f32 %v229_v0, %v7743_v1  ;;  %v252_v3 = vmul.f32 %v7743_v1, %v7743_v1  ;;  %v266_v4 = vadd.f32 %v265_v62, %v251_v61 }
 0x103   :  { %v267_v6 = vadd.f32 %v266_v4, %v252_v3  ;;  %v7750_v7 = vpop.f32.mrb[6].mxu1  ;;  %v231_v8 = vadd.f32 %v7740_v63, %v230_v2 }
 0x104   :  { %v7753_v9 = vpop.f32.mrb[7].mxu1  ;;  %v255_v16 = vmul.f32 %v7750_v7, %v7750_v7 }
 0x105   :  { %v232_v12 = vadd.f32 %v231_v8, %v7753_v9  ;;  %v254_v13 = vmul.f32 %v7753_v9, %v7753_v9  ;;  %v268_v14 = vadd.f32 %v267_v6, %v253_v5 }
 0x107   :  { %v269_v17 = vadd.f32 %v268_v14, %v254_v13  ;;  %v7766_v18 = vpop.f32.mrb[8].mxu1  ;;  %v233_v19 = vadd.f32 %v7750_v7, %v232_v12 }
 0x108   :  { %v7769_v20 = vpop.f32.mrb[9].mxu1  ;;  %v257_v24 = vmul.f32 %v7766_v18, %v7766_v18 }
 0x109   :  { %v234_v21 = vadd.f32 %v233_v19, %v7769_v20  ;;  %v256_v22 = vmul.f32 %v7769_v20, %v7769_v20  ;;  %v270_v23 = vadd.f32 %v269_v17, %v255_v16 }
 0x10b   :  { %v271_v25 = vadd.f32 %v270_v23, %v256_v22  ;;  %v7776_v26 = vpop.f32.mrb[10].mxu1  ;;  %v235_v27 = vadd.f32 %v7766_v18, %v234_v21 }
 0x10c   :  { %v7779_v28 = vpop.f32.mrb[11].mxu1  ;;  %v259_v32 = vmul.f32 %v7776_v26, %v7776_v26 }
 0x10d   :  { %v236_v29 = vadd.f32 %v235_v27, %v7779_v28  ;;  %v258_v30 = vmul.f32 %v7779_v28, %v7779_v28  ;;  %v272_v31 = vadd.f32 %v271_v25, %v257_v24 }
 0x10f   :  { %v273_v33 = vadd.f32 %v272_v31, %v258_v30  ;;  %v7786_v34 = vpop.f32.mrb[12].mxu1  ;;  %v237_v35 = vadd.f32 %v7776_v26, %v236_v29 }
 0x110   :  { %v7789_v36 = vpop.f32.mrb[13].mxu1  ;;  %v261_v40 = vmul.f32 %v7786_v34, %v7786_v34 }
 0x111   :  { %v238_v37 = vadd.f32 %v237_v35, %v7789_v36  ;;  %v260_v38 = vmul.f32 %v7789_v36, %v7789_v36  ;;  %v274_v39 = vadd.f32 %v273_v33, %v259_v32 }
 0x113   :  { %v275_v41 = vadd.f32 %v274_v39, %v260_v38  ;;  %v7796_v42 = vpop.f32.mrb[14].mxu1  ;;  %v239_v43 = vadd.f32 %v7786_v34, %v238_v37 }
 0x114   :  { %v7799_v44 = vpop.f32.mrb[15].mxu1  ;;  %v263_v48 = vmul.f32 %v7796_v42, %v7796_v42 }
 0x115   :  { %v240_v45 = vadd.f32 %v239_v43, %v7799_v44  ;;  %v262_v46 = vmul.f32 %v7799_v44, %v7799_v44  ;;  %v276_v47 = vadd.f32 %v275_v41, %v261_v40  ;;  %v308_v40 = vlaneseq }
 0x117   :  { %v241_v49 = vadd.f32 %v7796_v42, %v240_v45  ;;  %v277_v50 = vadd.f32 %v276_v47, %v262_v46  ;;  %v7807_v52 = vpop.f32.mrb[16].mxu1 }
 0x118   :  { %v567_v54 = vmul.f32 %v7807_v52, %v7807_v52  ;;  %v7811_v55 = vpop.f32.mrb[17].mxu1 }
 0x119   :  { %v242_v56 = vrot.slane %v241_v49, 4  ;;  %v278_v59 = vadd.f32 %v277_v50, %v263_v48  ;;  %v545_v60 = vadd.f32 %v7807_v52, %v7811_v55  ;;  %v566_v61 = vmul.f32 %v7811_v55, %v7811_v55 }
 0x11b   :  { %v243_v62 = vadd.f32 %v242_v56, %v241_v49  ;;  %v279_v0 = vrot.slane %v278_v59, 4  ;;  %v582_v2 = vadd.f32 %v567_v54, %v566_v61  ;;  %v7817_v3 = vpop.f32.mrb[18].mxu1 }
 0x11c   :  { %v7819_v4 = vpop.f32.mrb[19].mxu1  ;;  %v569_v16 = vmul.f32 %v7817_v3, %v7817_v3 }
 0x11d   :  { %v244_v5 = vrot.slane %v243_v62, 2  ;;  %v280_v6 = vadd.f32 %v279_v0, %v278_v59  ;;  %v546_v8 = vadd.f32 %v545_v60, %v7819_v4  ;;  %v568_v10 = vmul.f32 %v7819_v4, %v7819_v4 }
 0x11f   :  { %v245_v11 = vadd.f32 %v244_v5, %v243_v62  ;;  %v281_v12 = vrot.slane %v280_v6, 2  ;;  %v583_v13 = vadd.f32 %v582_v2, %v568_v10  ;;  %v7824_v14 = vpop.f32.mrb[20].mxu1  ;;  %v547_v15 = vadd.f32 %v7817_v3, %v546_v8 }
 0x120   :  { %v7829_v17 = vpop.f32.mrb[21].mxu1  ;;  %v571_v31 = vmul.f32 %v7824_v14, %v7824_v14 }
 0x121   :  { %v246_v19 = vrot.slane %v245_v11, 1  ;;  %v282_v21 = vadd.f32 %v281_v12, %v280_v6  ;;  %v548_v22 = vadd.f32 %v547_v15, %v7829_v17  ;;  %v570_v23 = vmul.f32 %v7829_v17, %v7829_v17 }
 0x122   :  { %v584_v24 = vadd.f32 %v583_v13, %v569_v16 }
 0x123   :  { %v247_v25 = vadd.f32 %v246_v19, %v245_v11  ;;  %v283_v27 = vrot.slane %v282_v21, 1  ;;  %v7834_v29 = vpop.f32.mrb[22].mxu1  ;;  %v549_v30 = vadd.f32 %v7824_v14, %v548_v22 }
 0x124   :  { %v585_v32 = vadd.f32 %v584_v24, %v570_v23  ;;  %v7839_v33 = vpop.f32.mrb[23].mxu1  ;;  %v573_v49 = vmul.f32 %v7834_v29, %v7834_v29 }
 0x125   :  { %v284_v35 = vadd.f32 %v283_v27, %v282_v21  ;;  %v7841_v37 = vmul.f32 0.0078125, %v247_v25  ;;  %v550_v38 = vadd.f32 %v549_v30, %v7839_v33  ;;  %v572_v39 = vmul.f32 %v7839_v33, %v7839_v33 }
 0x126   :  { %v586_v41 = vadd.f32 %v585_v32, %v571_v31 }
 0x127   :  { %v286_v43 = vmul.f32 0.0078125, %v284_v35  ;;  %v287_v45 = vmul.f32 %v7841_v37, %v7841_v37  ;;  %v303_v46 = vsub.f32 %v7799_v44, %v7841_v37  ;;  %v7850_v47 = vpop.f32.mrb[24].mxu1  ;;  %v551_v48 = vadd.f32 %v7834_v29, %v550_v38 }
 0x128   :  { %v587_v50 = vadd.f32 %v586_v41, %v572_v39  ;;  %v7855_v54 = vpop.f32.mrb[25].mxu1  ;;  %v289_v56 = vsub.f32 %v7725_v53, %v7841_v37  ;;  %v290_v59 = vsub.f32 %v7721_v51, %v7841_v37  ;;  %v291_v0 = vsub.f32 %v7733_v58, %v7841_v37 }
 0x129   :  { %v288_v60 = vsub.f32 %v286_v43, %v287_v45  ;;  %v552_v61 = vadd.f32 %v551_v48, %v7855_v54  ;;  %v574_v62 = vmul.f32 %v7855_v54, %v7855_v54  ;;  %v292_v5 = vsub.f32 %v7731_v57, %v7841_v37 }
 0x12a   :  { %v588_v2 = vadd.f32 %v587_v50, %v573_v49  ;;  %v293_v6 = vsub.f32 %v7743_v1, %v7841_v37  ;;  %v294_v53 = vsub.f32 %v7740_v63, %v7841_v37  ;;  %v295_v11 = vsub.f32 %v7753_v9, %v7841_v37  ;;  %v225_v50 = vld [vmem:[%s11041_s3] sm:$0x1] }
 0x12b   :  { %v305_v51 = vadd.f32 1e-05, %v288_v60  ;;  %v7872_v8 = vpop.f32.mrb[26].mxu1  ;;  %v553_v10 = vadd.f32 %v7850_v47, %v552_v61  ;;  %v296_v58 = vsub.f32 %v7750_v7, %v7841_v37  ;;  %v575_v57 = vmul.f32 %v7850_v47, %v7850_v47 }
 0x12c   :  { %v589_v12 = vadd.f32 %v588_v2, %v574_v62  ;;  %v7881_v13 = vpop.f32.mrb[27].mxu1  ;;  %v297_v63 = vsub.f32 %v7769_v20, %v7841_v37  ;;  %v298_v1 = vsub.f32 %v7766_v18, %v7841_v37  ;;  %v299_v7 = vsub.f32 %v7779_v28, %v7841_v37 }
 0x12d   :  { %7218 = vrsqrt.f32 %v305_v51  ;;  %v554_v15 = vadd.f32 %v553_v10, %v7881_v13  ;;  %v576_v9 = vmul.f32 %v7881_v13, %v7881_v13  ;;  %v300_v19 = vsub.f32 %v7776_v26, %v7841_v37 }
 0x12e   :  { %v590_v16 = vadd.f32 %v589_v12, %v575_v57  ;;  %v301_v21 = vsub.f32 %v7789_v36, %v7841_v37  ;;  %v302_v22 = vsub.f32 %v7786_v34, %v7841_v37  ;;  %v304_v25 = vsub.f32 %v7796_v42, %v7841_v37  ;;  %v8020_v36 = vld [vmem:[%s11042_s4] ss:$0 sm:$0xff] }
 0x12f   :  { %v7898_v23 = vpop.f32.mrb[28].mxu1  ;;  %v555_v24 = vadd.f32 %v7872_v8, %v554_v15  ;;  %v577_v27 = vmul.f32 %v7872_v8, %v7872_v8  ;;  %v309_v38 = vshrl.u32 %v308_v40, 7  ;;  %v8032_v42 = vld [vmem:[%s11045_s7] ss:$0 sm:$0xff] }
 0x130   :  { %v591_v30 = vadd.f32 %v590_v16, %v576_v9  ;;  %v7905_v31 = vpop.f32.mrb[29].mxu1  ;;  %v579_v45 = vmul.f32 %v7898_v23, %v7898_v23 }
 0x131   :  { %v556_v32 = vadd.f32 %v555_v24, %v7905_v31  ;;  %v578_v35 = vmul.f32 %v7905_v31, %v7905_v31  ;;  %v7923_v61 = vsub.s32 0, %v309_v38 }
 0x132   :  { %v592_v39 = vadd.f32 %v591_v30, %v577_v27 }
 0x133   :  { %v7910_v41 = vpop.f32.mrb[30].mxu1  ;;  %v557_v43 = vadd.f32 %v7898_v23, %v556_v32  ;;  %11171 = vst [vmem:[#allocation6_spill] sm:$0xff] %v7923_v61 }
 0x134   :  { %v593_v48 = vadd.f32 %v592_v39, %v578_v35  ;;  %v7915_v49 = vpop.f32.mrb[31].mxu1  ;;  %v581_v57 = vmul.f32 %v7910_v41, %v7910_v41 }
 0x135   :  { %v558_v60 = vadd.f32 %v557_v43, %v7915_v49  ;;  %v580_v40 = vmul.f32 %v7915_v49, %v7915_v49 }
 0x136   :  { %v594_v62 = vadd.f32 %v593_v48, %v579_v45 }
 0x137   :  { %v7219_v2 = vpop.eup %7218  ;;  %v559_v51 = vadd.f32 %v7910_v41, %v558_v60 }
 0x138   :  { %v307_v10 = vmul.f32 %v7219_v2, %v225_v50  ;;  %v595_v12 = vadd.f32 %v594_v62, %v580_v40 }
 0x139   :  { %v560_v15 = vrot.slane %v559_v51, 4 }
 0x13a   :  { %v311_v9 = vrot.slane %v307_v10, %v7923_v61  ;;  %v596_v16 = vadd.f32 %v595_v12, %v581_v57 }
 0x13b   :  { %v561_v24 = vadd.f32 %v560_v15, %v559_v51 }
 0x13c   :  { %v7932_v27 = vmul.f32 %v311_v9, %v303_v46  ;;  %v597_v30 = vrot.slane %v596_v16, 4  ;;  %v312_v32 = vmul.f32 %v311_v9, %v289_v56  ;;  %v313_v35 = vmul.f32 %v311_v9, %v290_v59 }
 0x13d   :  { %v562_v38 = vrot.slane %v561_v24, 2  ;;  %v7934_v39 = vmul.f32 %v311_v9, %v291_v0  ;;  %v7936_v43 = vmul.f32 %v311_v9, %v292_v5  ;;  %v7938_v45 = vmul.f32 %v311_v9, %v293_v6 }
 0x13e   :  { %v598_v48 = vadd.f32 %v597_v30, %v596_v16  ;;  %v7940_v2 = vmul.f32 %v311_v9, %v294_v53  ;;  %v7944_v59 = vmul.f32 %v311_v9, %v295_v11  ;;  %v7946_v0 = vmul.f32 %v311_v9, %v296_v58 }
 0x13f   :  { %v563_v50 = vadd.f32 %v562_v38, %v561_v24  ;;  %v7987_v24 = vmul.f32 %v311_v9, %v299_v7  ;;  %v8008_v7 = vmul.f32 %v311_v9, %v302_v22  ;;  %v334_v22 = vadd.f32 %v8020_v36, %v312_v32 }
 0x140   :  { %v599_v60 = vrot.slane %v598_v48, 2 }
 0x141   :  { %v564_v40 = vrot.slane %v563_v50, 1  ;;  %v8034_v37 = vmax.f32 %v334_v22, 0.0  ;;  %v336_v22 = vadd.f32 %v8020_v36, %v7934_v39 }
 0x142   :  { %v600_v62 = vadd.f32 %v599_v60, %v598_v48  ;;  %v8046_v60 = vld [vmem:[%s11046_s8 + $0x500] sm:$0xff] }
 0x143   :  { %v565_v44 = vadd.f32 %v564_v40, %v563_v50  ;;  %11172 = vst [vmem:[#allocation7_spill] sm:$0xff] %v8034_v37  ;;  %v8051_v40 = vld [vmem:[%s11046_s8 + $0x508] sm:$0xff] }
 0x144   :  { %v601_v46 = vrot.slane %v600_v62, 1 }
 0x145   :  { %v7942_v51 = vmul.f32 0.0078125, %v565_v44 }
 0x146   :  { %v602_v56 = vadd.f32 %v601_v46, %v600_v62 }
 0x147   :  { %v605_v5 = vmul.f32 %v7942_v51, %v7942_v51  ;;  %v621_v6 = vsub.f32 %v7915_v49, %v7942_v51  ;;  %v607_v10 = vsub.f32 %v7811_v55, %v7942_v51  ;;  %v608_v53 = vsub.f32 %v7807_v52, %v7942_v51 }
 0x148   :  { %v604_v57 = vmul.f32 0.0078125, %v602_v56  ;;  %v609_v12 = vsub.f32 %v7819_v4, %v7942_v51  ;;  %v610_v11 = vsub.f32 %v7817_v3, %v7942_v51  ;;  %v611_v58 = vsub.f32 %v7829_v17, %v7942_v51 }
 0x149   :  { %v612_v15 = vsub.f32 %v7824_v14, %v7942_v51  ;;  %v613_v49 = vsub.f32 %v7839_v33, %v7942_v51  ;;  %v614_v52 = vsub.f32 %v7834_v29, %v7942_v51  ;;  %v615_v16 = vsub.f32 %v7855_v54, %v7942_v51  ;;  %v8217_v54 = vld [vmem:[%s11046_s8 + $0x520] sm:$0xff] }
 0x14a   :  { %v606_v55 = vsub.f32 %v604_v57, %v605_v5  ;;  %v7973_v3 = vmul.f32 %v311_v9, %v297_v63  ;;  %v616_v4 = vsub.f32 %v7850_v47, %v7942_v51  ;;  %v7980_v14 = vmul.f32 %v311_v9, %v298_v1  ;;  %v1311_v57 = vld [vmem:[%s11046_s8] sm:$0xff]  ;;  %v4947_v47 = vld [vmem:[%s11046_s8 + $0x528] sm:$0xff] }
 0x14b   :  { %v617_v33 = vsub.f32 %v7881_v13, %v7942_v51  ;;  %v618_v20 = vsub.f32 %v7872_v8, %v7942_v51  ;;  %v7994_v63 = vmul.f32 %v311_v9, %v300_v19  ;;  %v619_v18 = vsub.f32 %v7905_v31, %v7942_v51  ;;  %v8251_v31 = vld [vmem:[%s11046_s8 + $0x5b8] sm:$0xff] }
 0x14c   :  { %v623_v17 = vadd.f32 1e-05, %v606_v55  ;;  %v8001_v1 = vmul.f32 %v311_v9, %v301_v21  ;;  %v8015_v19 = vmul.f32 %v311_v9, %v304_v25  ;;  %v543_v21 = vld [vmem:[%s11044_s6] sm:$0x1]  ;;  %v335_v25 = vadd.f32 %v8020_v36, %v313_v35  ;;  %v8096_v55 = vld [vmem:[%s11046_s8 + $0x90] sm:$0xff] }
 0x14e   :  { %7220 = vrsqrt.f32 %v623_v17 }
 0x158   :  { %v7221_v34 = vpop.eup %7220 }
 0x159   :  { %v625_v30 = vmul.f32 %v7221_v34, %v543_v21  ;;  %v8102_v34 = vmax.f32 %v335_v25, 0.0  ;;  %v1029_v25 = vrot.slane %v8034_v37, 7 }
 0x15b   :  { %v8027_v38 = vrot.slane %v625_v30, %v7923_v61  ;;  %11176 = vst [vmem:[#allocation11_spill] sm:$0xff] %v8102_v34  ;;  %v1330_v30 = vld [vmem:[%s11046_s8 + $0x98] sm:$0xff]  ;;  %v340_v61 = vadd.f32 %v8020_v36, %v7944_v59 }
 0x15d   :  { %v8038_v9 = vmul.f32 %v8027_v38, %v621_v6  ;;  %v630_v48 = vmul.f32 %v8027_v38, %v607_v10  ;;  %v631_v32 = vmul.f32 %v8027_v38, %v608_v53  ;;  %v632_v50 = vmul.f32 %v8027_v38, %v609_v12  ;;  %v8067_v10 = vld [vmem:[%s11046_s8 + $0x590] sm:$0xff]  ;;  %v8072_v53 = vld [vmem:[%s11046_s8 + $0x598] sm:$0xff]  ;;  %v1312_v12 = vld [vmem:[%s11046_s8 + $0x8] sm:$0xff] }
 0x15e   :  { %v633_v35 = vmul.f32 %v8027_v38, %v610_v11  ;;  %v634_v62 = vmul.f32 %v8027_v38, %v611_v58  ;;  %v8056_v44 = vmul.f32 %v8027_v38, %v612_v15  ;;  %v8059_v46 = vmul.f32 %v8027_v38, %v613_v49  ;;  %v8086_v15 = vld [vmem:[%s11046_s8 + $0x510] sm:$0xff]  ;;  %v8091_v49 = vld [vmem:[%s11046_s8 + $0x518] sm:$0xff] }
 0x15f   :  { %v652_v56 = vadd.f32 %v8032_v42, %v630_v48  ;;  %v653_v5 = vadd.f32 %v8032_v42, %v631_v32  ;;  %v654_v6 = vadd.f32 %v8032_v42, %v632_v50  ;;  %v11053_v11 = vmov 0.0   ;;  %v8112_v48 = vld [vmem:[%s11046_s8 + $0x10] sm:$0xff]  ;;  %v8117_v32 = vld [vmem:[%s11046_s8 + $0x18] sm:$0xff] }
 0x160   :  { %v8081_v58 = vrot.slane %v11053_v11, 7  ;;  %v6698_v50 = vpack.c.bf16 %v8051_v40, %v8046_v60  ;;  %v655_v39 = vadd.f32 %v8032_v42, %v633_v35  ;;  %v8132_v28 = vmul.f32 %v8027_v38, %v614_v52 }
 0x161   :  { %v8098_v17 = vmax.f32 %v652_v56, 0.0  ;;  %v8100_v21 = vmax.f32 %v653_v5, 0.0  ;;  %v6730_v56 = vpack.c.bf16 %v1312_v12, %v1311_v57  ;;  %v8126_v26 = vmax.f32 %v654_v6, 0.0  ;;  %v8160_v12 = vld [vmem:[%s11046_s8 + $0x5a8] sm:$0xff] }
 0x162   :  { %11173 = vst [vmem:[#allocation8_spill] sm:$0xff] %v8081_v58  ;;  %v6700_v60 = vpack.c.bf16 %v8072_v53, %v8067_v10  ;;  %v6702_v40 = vpack.c.bf16 %v8091_v49, %v8086_v15  ;;  %v6732_v35 = vpack.c.bf16 %v1330_v30, %v8096_v55  ;;  %v6734_v6 = vpack.c.bf16 %v8117_v32, %v8112_v48  ;;  %v8155_v53 = vld [vmem:[%s11046_s8 + $0x5a0] sm:$0xff]  ;;  %v1332_v30 = vld [vmem:[%s11046_s8 + $0xa8] sm:$0xff] }
 0x163   :  { %11174 = vst [vmem:[#allocation9_spill] sm:$0xff] %v8098_v17  ;;  %11175 = vst [vmem:[#allocation10_spill] sm:$0xff] %v8100_v21  ;;  %1757 = vmatprep.mubr.f32.mxu1 %v8098_v17  ;;  %v1032_v5 = vrot.slane %v8098_v17, 7  ;;  %v1038_v11 = vrot.slane %v8100_v21, 7  ;;  %v1035_v52 = vrot.slane %v8102_v34, 7  ;;  %v8148_v57 = vmax.f32 %v336_v22, 0.0 }
 0x164   :  { %11177 = vst [vmem:[#allocation12_spill] sm:$0xff] %v8126_v26  ;;  %1758 = vmatmul.mubr.f32.vlgmr.msra.gmra.mrb[32].mxu1 %v8034_v37  ;;  %v337_v10 = vadd.f32 %v8020_v36, %v7936_v43  ;;  %v8165_v15 = vld [vmem:[%s11046_s8 + $0xa0] sm:$0xff]  ;;  %v8170_v43 = vsel %vm1021_vm0, %v8081_v58, %v1029_v25  ;;  %v8176_v55 = vmax.f32 %v655_v39, 0.0  ;;  %v656_v22 = vadd.f32 %v8032_v42, %v634_v62  ;;  %v8190_v32 = vld [vmem:[%s11046_s8 + $0x28] sm:$0xff] }
 0x165   :  { %1762 = vmatprep.mubr.f32.mxu1 %v8100_v21  ;;  %v8145_v29 = vsel %vm1021_vm0, %v8081_v58, %v1032_v5  ;;  %11178 = vst [vmem:[#allocation13_spill] sm:$0xff] %v8148_v57  ;;  %v8174_v49 = vsel %vm1021_vm0, %v8081_v58, %v1038_v11  ;;  %v8185_v48 = vld [vmem:[%s11046_s8 + $0x20] sm:$0xff]  ;;  %v1044_v11 = vrot.slane %v8126_v26, 7  ;;  %v8198_v62 = vmul.f32 %v8027_v38, %v615_v16 }
 0x166   :  { %1612 = vmatprep.mubr.f32.mxu0 %v8145_v29  ;;  %11179 = vst [vmem:[#allocation14_spill] sm:$0xff] %v8174_v49  ;;  %11180 = vst [vmem:[#allocation15_spill] sm:$0xff] %v8176_v55  ;;  %v8204_v25 = vmul.f32 %v8027_v38, %v616_v4  ;;  %6731 = vmatpush3.bf16.msra.mxu1 %v6730_v56  ;;  %v8210_v39 = vmul.f32 %v8027_v38, %v617_v33  ;;  %v1041_v5 = vrot.slane %v8148_v57, 7 }
 0x167   :  { %1613 = vmatmul.mubr.f32.vlgmr.msra.gmra.mrb[0].mxu0 %v8170_v43  ;;  %v8226_v13 = vmul.f32 %v8027_v38, %v618_v20  ;;  %v8232_v16 = vmul.f32 %v8027_v38, %v619_v18  ;;  %v11181_v4 = vsub.f32 %v7898_v23, %v7942_v51  ;;  %v6704_v8 = vpack.c.bf16 %v8160_v12, %v8155_v53  ;;  %v8246_v20 = vld [vmem:[%s11046_s8 + $0x5b0] sm:$0xff] }
 0x168   :  { %1617 = vmatprep.mubr.f32.mxu0 %v8174_v49  ;;  %1763 = vmatmul.mubr.f32.gmra.mrb[34].mxu1 %v8102_v34  ;;  %v6736_v23 = vpack.c.bf16 %v1332_v30, %v8165_v15  ;;  %v6738_v18 = vpack.c.bf16 %v8190_v32, %v8185_v48  ;;  %v8263_v56 = vsel %vm1021_vm0, %v8081_v58, %v1035_v52  ;;  %v8266_v53 = vmax.f32 %v337_v10, 0.0  ;;  %v1334_v15 = vld [vmem:[%s11046_s8 + $0xb8] sm:$0xff]  ;;  %v8276_v30 = vld [vmem:[%s11046_s8 + $0x30] sm:$0xff] }
 0x169   :  { %v8238_v33 = vmul.f32 %v8027_v38, %v11181_v4  ;;  %6699 = vmatpush3.bf16.msra.mxu0 %v6698_v50  ;;  %1767 = vmatprep.mubr.f32.mxu1 %v8126_v26  ;;  %v8259_v50 = vld [vmem:[%s11046_s8 + $0xb0] sm:$0xff]  ;;  %11182 = vst [vmem:[#allocation16_spill] sm:$0xff] %v8263_v56  ;;  %v338_v12 = vadd.f32 %v8020_v36, %v7938_v45  ;;  %v8281_v52 = vld [vmem:[%s11046_s8 + $0x38] sm:$0xff]  ;;  %v8321_v4 = vld [vmem:[%s11046_s8 + $0xc0] sm:$0xff] }
 0x16a   :  { %6701 = vmatprep.subr.bf16.mxu0 %v6700_v60  ;;  %11183 = vst [vmem:[#allocation17_spill] sm:$0xff] %v8266_v53  ;;  %6733 = vmatprep.subr.bf16.mxu1 %v6732_v35  ;;  %v8286_v45 = vsel %vm1021_vm0, %v8081_v58, %v1044_v11  ;;  %v1050_v60 = vrot.slane %v8176_v55, 7  ;;  %v8289_v35 = vmax.f32 %v656_v22, 0.0  ;;  %v657_v10 = vadd.f32 %v8032_v42, %v8056_v44  ;;  %v4948_v11 = vld [vmem:[%s11046_s8 + $0x530] sm:$0xff]  ;;  %v4949_v22 = vld [vmem:[%s11046_s8 + $0x538] sm:$0xff]  ;;  %v8308_v44 = vld [vmem:[%s11046_s8 + $0x5c0] sm:$0xff] }
 0x16b   :  { %1618 = vmatmul.mubr.f32.gmra.mrb[2].mxu0 %v8263_v56  ;;  %11184 = vst [vmem:[#allocation18_spill] sm:$0xff] %v8286_v45  ;;  %6735 = vmatpush3.bf16.msra.mxu1 %v6734_v6  ;;  %v6706_v48 = vpack.c.bf16 %v4947_v47, %v8217_v54  ;;  %v6708_v32 = vpack.c.bf16 %v8251_v31, %v8246_v20  ;;  %v8313_v6 = vld [vmem:[%s11046_s8 + $0x5c8] sm:$0xff] }
 0x16c   :  { %11185 = vst [vmem:[#allocation19_spill] sm:$0xff] %v8289_v35  ;;  %1622 = vmatprep.mubr.f32.mxu0 %v8286_v45  ;;  %1768 = vmatmul.mubr.f32.gmra.mrb[36].mxu1 %v8148_v57  ;;  %v6740_v54 = vpack.c.bf16 %v1334_v15, %v8259_v50  ;;  %v6742_v47 = vpack.c.bf16 %v8281_v52, %v8276_v30  ;;  %v1047_v50 = vrot.slane %v8266_v53, 7  ;;  %v8334_v15 = vmax.f32 %v338_v12, 0.0  ;;  %v4950_v52 = vld [vmem:[%s11046_s8 + $0x540] sm:$0xff] }
 0x16d   :  { %1772 = vmatprep.mubr.f32.mxu1 %v8176_v55  ;;  %6703 = vmatpush3.bf16.msra.mxu0 %v6702_v40  ;;  %v11186_v40 = vsub.f32 %v7910_v41, %v7942_v51  ;;  %v8331_v31 = vsel %vm1021_vm0, %v8081_v58, %v1041_v5  ;;  %v339_v30 = vadd.f32 %v8020_v36, %v7940_v2  ;;  %v1336_v41 = vld [vmem:[%s11046_s8 + $0xc8] sm:$0xff]  ;;  %v8344_v51 = vld [vmem:[%s11046_s8 + $0x40] sm:$0xff]  ;;  %v1056_v2 = vrot.slane %v8289_v35, 7 }
 0x16e   :  { %11187 = vst [vmem:[#allocation20_spill] sm:$0xff] %v8331_v31  ;;  %11188 = vst [vmem:[#allocation21_spill] sm:$0xff] %v8334_v15  ;;  %6705 = vmatprep.subr.bf16.mxu0 %v6704_v8  ;;  %6737 = vmatprep.subr.bf16.mxu1 %v6736_v23  ;;  %v8352_v8 = vsel %vm1021_vm0, %v8081_v58, %v1050_v60  ;;  %v8355_v23 = vmax.f32 %v657_v10, 0.0  ;;  %v658_v5 = vadd.f32 %v8032_v42, %v8059_v46  ;;  %v4951_v60 = vld [vmem:[%s11046_s8 + $0x548] sm:$0xff]  ;;  %v8378_v10 = vld [vmem:[%s11046_s8 + $0x5d8] sm:$0xff] }
 0x16f   :  { %v8327_v20 = vmul.f32 %v8027_v38, %v11186_v40  ;;  %v1320_v38 = vld [vmem:[%s11046_s8 + $0x48] sm:$0xff]  ;;  %1623 = vmatmul.mubr.f32.gmra.mrb[4].mxu0 %v8331_v31  ;;  %11189 = vst [vmem:[#allocation22_spill] sm:$0xff] %v8352_v8  ;;  %6739 = vmatpush3.bf16.msra.mxu1 %v6738_v18  ;;  %v6710_v12 = vpack.c.bf16 %v4949_v22, %v4948_v11  ;;  %v8373_v18 = vld [vmem:[%s11046_s8 + $0x5d0] sm:$0xff]  ;;  %v8390_v40 = vmax.f32 %v339_v30, 0.0 }
 0x170   :  { %11190 = vst [vmem:[#allocation23_spill] sm:$0xff] %v8355_v23  ;;  %1627 = vmatprep.mubr.f32.mxu0 %v8352_v8  ;;  %1773 = vmatmul.mubr.f32.gmra.mrb[38].mxu1 %v8266_v53  ;;  %v6712_v46 = vpack.c.bf16 %v8313_v6, %v8308_v44  ;;  %v6744_v11 = vpack.c.bf16 %v1336_v41, %v8321_v4  ;;  %v1053_v6 = vrot.slane %v8334_v15, 7  ;;  %v1338_v4 = vld [vmem:[%s11046_s8 + $0xd8] sm:$0xff]  ;;  %v8400_v41 = vld [vmem:[%s11046_s8 + $0x50] sm:$0xff] }
 0x171   :  { %1777 = vmatprep.mubr.f32.mxu1 %v8289_v35  ;;  %6707 = vmatpush3.bf16.msra.mxu0 %v6706_v48  ;;  %v6746_v22 = vpack.c.bf16 %v1320_v38, %v8344_v51  ;;  %v1337_v48 = vld [vmem:[%s11046_s8 + $0xd0] sm:$0xff]  ;;  %v8387_v44 = vsel %vm1021_vm0, %v8081_v58, %v1047_v50  ;;  %11192 = vst [vmem:[#allocation25_spill] sm:$0xff] %v8390_v40  ;;  %v1322_v50 = vld [vmem:[%s11046_s8 + $0x58] sm:$0xff] }
 0x172   :  { %11191 = vst [vmem:[#allocation24_spill] sm:$0xff] %v8387_v44  ;;  %6709 = vmatprep.subr.bf16.mxu0 %v6708_v32  ;;  %6741 = vmatprep.subr.bf16.mxu1 %v6740_v54  ;;  %v8408_v59 = vsel %vm1021_vm0, %v8081_v58, %v1056_v2  ;;  %v1062_v32 = vrot.slane %v8355_v23, 7  ;;  %v8411_v54 = vmax.f32 %v658_v5, 0.0  ;;  %v659_v30 = vadd.f32 %v8032_v42, %v8132_v28  ;;  %v4952_v38 = vld [vmem:[%s11046_s8 + $0x550] sm:$0xff]  ;;  %v4953_v2 = vld [vmem:[%s11046_s8 + $0x558] sm:$0xff]  ;;  %v4971_v5 = vld [vmem:[%s11046_s8 + $0x5e8] sm:$0xff] }
 0x173   :  { %1628 = vmatmul.mubr.f32.gmra.mrb[6].mxu0 %v8387_v44  ;;  %11193 = vst [vmem:[#allocation26_spill] sm:$0xff] %v8408_v59  ;;  %6743 = vmatpush3.bf16.msra.mxu1 %v6742_v47  ;;  %v6714_v51 = vpack.c.bf16 %v4951_v60, %v4950_v52  ;;  %v6716_v28 = vpack.c.bf16 %v8378_v10, %v8373_v18  ;;  %v4970_v47 = vld [vmem:[%s11046_s8 + $0x5e0] sm:$0xff]  ;;  %v1059_v18 = vrot.slane %v8390_v40, 7  ;;  %v8441_v10 = vmax.f32 %v340_v61, 0.0 }
 0x174   :  { %11194 = vst [vmem:[#allocation27_spill] sm:$0xff] %v8411_v54  ;;  %1632 = vmatprep.mubr.f32.mxu0 %v8408_v59  ;;  %1778 = vmatmul.mubr.f32.gmra.mrb[40].mxu1 %v8334_v15  ;;  %v6748_v52 = vpack.c.bf16 %v1338_v4, %v1337_v48  ;;  %v6750_v60 = vpack.c.bf16 %v1322_v50, %v8400_v41  ;;  %v1339_v59 = vld [vmem:[%s11046_s8 + $0xe0] sm:$0xff]  ;;  %v1340_v48 = vld [vmem:[%s11046_s8 + $0xe8] sm:$0xff] }
 0x175   :  { %1782 = vmatprep.mubr.f32.mxu1 %v8355_v23  ;;  %6711 = vmatpush3.bf16.msra.mxu0 %v6710_v12  ;;  %v8438_v12 = vsel %vm1021_vm0, %v8081_v58, %v1053_v6  ;;  %11196 = vst [vmem:[#allocation29_spill] sm:$0xff] %v8441_v10  ;;  %v341_v44 = vadd.f32 %v8020_v36, %v7946_v0  ;;  %v1323_v4 = vld [vmem:[%s11046_s8 + $0x60] sm:$0xff]  ;;  %v1324_v6 = vld [vmem:[%s11046_s8 + $0x68] sm:$0xff]  ;;  %v1068_v0 = vrot.slane %v8411_v54, 7 }
 0x176   :  { %11195 = vst [vmem:[#allocation28_spill] sm:$0xff] %v8438_v12  ;;  %6713 = vmatprep.subr.bf16.mxu0 %v6712_v46  ;;  %6745 = vmatprep.subr.bf16.mxu1 %v6744_v11  ;;  %v8457_v61 = vsel %vm1021_vm0, %v8081_v58, %v1062_v32  ;;  %v8460_v46 = vmax.f32 %v659_v30, 0.0  ;;  %v660_v11 = vadd.f32 %v8032_v42, %v8198_v62  ;;  %v4954_v50 = vld [vmem:[%s11046_s8 + $0x560] sm:$0xff]  ;;  %v4955_v32 = vld [vmem:[%s11046_s8 + $0x568] sm:$0xff] }
 0x177   :  { %1633 = vmatmul.mubr.f32.gmra.mrb[8].mxu0 %v8438_v12  ;;  %11197 = vst [vmem:[#allocation30_spill] sm:$0xff] %v8457_v61  ;;  %6747 = vmatpush3.bf16.msra.mxu1 %v6746_v22  ;;  %v6718_v41 = vpack.c.bf16 %v4953_v2, %v4952_v38  ;;  %v6720_v30 = vpack.c.bf16 %v4971_v5, %v4970_v47  ;;  %v4972_v22 = vld [vmem:[%s11046_s8 + $0x5f0] sm:$0xff]  ;;  %v4973_v38 = vld [vmem:[%s11046_s8 + $0x5f8] sm:$0xff] }
 0x178   :  { %11198 = vst [vmem:[#allocation31_spill] sm:$0xff] %v8460_v46  ;;  %1637 = vmatprep.mubr.f32.mxu0 %v8457_v61  ;;  %1783 = vmatmul.mubr.f32.gmra.mrb[42].mxu1 %v8390_v40  ;;  %v6752_v12 = vpack.c.bf16 %v1340_v48, %v1339_v59  ;;  %v6754_v62 = vpack.c.bf16 %v1324_v6, %v1323_v4  ;;  %v1341_v2 = vld [vmem:[%s11046_s8 + $0xf0] sm:$0xff]  ;;  %v8487_v59 = vmax.f32 %v341_v44, 0.0  ;;  %v1342_v5 = vld [vmem:[%s11046_s8 + $0xf8] sm:$0xff] }
 0x179   :  { %1787 = vmatprep.mubr.f32.mxu1 %v8411_v54  ;;  %6715 = vmatpush3.bf16.msra.mxu0 %v6714_v51  ;;  %v8484_v61 = vsel %vm1021_vm0, %v8081_v58, %v1059_v18  ;;  %v1065_v51 = vrot.slane %v8441_v10, 7  ;;  %v342_v47 = vadd.f32 %v8020_v36, %v7973_v3  ;;  %v1325_v48 = vld [vmem:[%s11046_s8 + $0x70] sm:$0xff]  ;;  %v1326_v18 = vld [vmem:[%s11046_s8 + $0x78] sm:$0xff]  ;;  %v8503_v44 = vsel %vm1021_vm0, %v8081_v58, %v1068_v0 }
 0x17a   :  { %11199 = vst [vmem:[#allocation32_spill] sm:$0xff] %v8484_v61  ;;  %11200 = vst [vmem:[#allocation33_spill] sm:$0xff] %v8487_v59  ;;  %6717 = vmatprep.subr.bf16.mxu0 %v6716_v28  ;;  %6749 = vmatprep.subr.bf16.mxu1 %v6748_v52  ;;  %v1419_v3 = vrot.slane %v8460_v46, 7  ;;  %v8506_v28 = vmax.f32 %v660_v11, 0.0  ;;  %v661_v52 = vadd.f32 %v8032_v42, %v8204_v25  ;;  %v4956_v0 = vld [vmem:[%s11046_s8 + $0x570] sm:$0xff]  ;;  %v1416_v25 = vrot.slane %v8487_v59, 7 }
 0x17b   :  { %1638 = vmatmul.mubr.f32.gmra.mrb[10].mxu0 %v8484_v61  ;;  %11201 = vst [vmem:[#allocation34_spill] sm:$0xff] %v8503_v44  ;;  %6751 = vmatpush3.bf16.msra.mxu1 %v6750_v60  ;;  %v6722_v4 = vpack.c.bf16 %v4955_v32, %v4954_v50  ;;  %v6724_v6 = vpack.c.bf16 %v4973_v38, %v4972_v22  ;;  %v8521_v60 = vmax.f32 %v342_v47, 0.0  ;;  %v1359_v32 = vld [vmem:[%s11046_s8 + $0x180] sm:$0xff]  ;;  %v1360_v22 = vld [vmem:[%s11046_s8 + $0x188] sm:$0xff] }
 0x17c   :  { %11202 = vst [vmem:[#allocation35_spill] sm:$0xff] %v8506_v28  ;;  %1642 = vmatprep.mubr.f32.mxu0 %v8503_v44  ;;  %1788 = vmatmul.mubr.f32.gmra.mrb[44].mxu1 %v8441_v10  ;;  %v6756_v61 = vpack.c.bf16 %v1342_v5, %v1341_v2  ;;  %v6758_v11 = vpack.c.bf16 %v1326_v18, %v1325_v48  ;;  %v1391_v2 = vld [vmem:[%s11046_s8 + $0x280] sm:$0xff] }
 0x17d   :  { %1792 = vmatprep.mubr.f32.mxu1 %v8460_v46  ;;  %6719 = vmatpush3.bf16.msra.mxu0 %v6718_v41  ;;  %v8518_v54 = vsel %vm1021_vm0, %v8081_v58, %v1065_v51  ;;  %11204 = vst [vmem:[#allocation37_spill] sm:$0xff] %v8521_v60  ;;  %v343_v50 = vadd.f32 %v8020_v36, %v7980_v14  ;;  %v4957_v41 = vld [vmem:[%s11046_s8 + $0x578] sm:$0xff]  ;;  %v1080_v14 = vrot.slane %v8506_v28, 7  ;;  %v1392_v51 = vld [vmem:[%s11046_s8 + $0x288] sm:$0xff]  ;;  %v1077_v48 = vrot.slane %v8521_v60, 7 }
 0x17e   :  { %11203 = vst [vmem:[#allocation36_spill] sm:$0xff] %v8518_v54  ;;  %6721 = vmatprep.subr.bf16.mxu0 %v6720_v30  ;;  %6753 = vmatprep.subr.bf16.mxu1 %v6752_v12  ;;  %v8537_v38 = vsel %vm1021_vm0, %v8081_v58, %v1419_v3  ;;  %v8540_v12 = vmax.f32 %v661_v52, 0.0  ;;  %v662_v30 = vadd.f32 %v8032_v42, %v8210_v39 }
 0x17f   :  { %1643 = vmatmul.mubr.f32.gmra.mrb[12].mxu0 %v8518_v54  ;;  %11205 = vst [vmem:[#allocation38_spill] sm:$0xff] %v8537_v38  ;;  %6755 = vmatpush3.bf16.msra.mxu1 %v6754_v62  ;;  %v344_v47 = vadd.f32 %v8020_v36, %v7987_v24  ;;  %v6726_v39 = vpack.c.bf16 %v4957_v41, %v4956_v0  ;;  %v8560_v18 = vmax.f32 %v343_v50, 0.0 }
 0x180   :  { %11206 = vst [vmem:[#allocation39_spill] sm:$0xff] %v8540_v12  ;;  %1647 = vmatprep.mubr.f32.mxu0 %v8537_v38  ;;  %1793 = vmatmul.mubr.f32.gmra.mrb[46].mxu1 %v8487_v59  ;;  %v6760_v62 = vpack.c.bf16 %v1360_v22, %v1359_v32  ;;  %v8557_v5 = vsel %vm1021_vm0, %v8081_v58, %v1416_v25  ;;  %v1086_v24 = vrot.slane %v8540_v12, 7  ;;  %v11234_v38 = vmov 0.0  }
 0x181   :  { %1797 = vmatprep.mubr.f32.mxu1 %v8506_v28  ;;  %6723 = vmatpush3.bf16.msra.mxu0 %v6722_v4  ;;  %11207 = vst [vmem:[#allocation40_spill] sm:$0xff] %v8557_v5  ;;  %11208 = vst [vmem:[#allocation41_spill] sm:$0xff] %v8560_v18  ;;  %v6792_v3 = vpack.c.bf16 %v1392_v51, %v1391_v2  ;;  %v8565_v52 = vsel %vm1021_vm0, %v8081_v58, %v1080_v14  ;;  %v8568_v4 = vmax.f32 %v662_v30, 0.0 }
 0x182   :  { %6725 = vmatprep.subr.bf16.mxu0 %v6724_v6  ;;  %6757 = vmatprep.subr.bf16.mxu1 %v6756_v61  ;;  %v663_v0 = vadd.f32 %v8032_v42, %v8226_v13  ;;  %v8577_v61 = vsel %vm1021_vm0, %v8081_v58, %v1077_v48  ;;  %v1083_v6 = vrot.slane %v8560_v18, 7  ;;  %v8580_v25 = vmax.f32 %v344_v47, 0.0 }
 0x183   :  { %1648 = vmatmul.mubr.f32.gmra.mrb[14].mxu0 %v8557_v5  ;;  %11209 = vst [vmem:[#allocation42_spill] sm:$0xff] %v8568_v4  ;;  %6759 = vmatpush3.bf16.msra.mxu1 %v6758_v11  ;;  %v345_v50 = vadd.f32 %v8020_v36, %v7994_v63  ;;  %v8587_v13 = vsel %vm1021_vm0, %v8081_v58, %v1086_v24  ;;  %v1092_v11 = vrot.slane %v8568_v4, 7  ;;  %v1394_v5 = vld [vmem:[%s11046_s8 + $0x298] sm:$0xff] }
 0x184   :  { %1652 = vmatprep.mubr.f32.mxu0 %v8565_v52  ;;  %1798 = vmatmul.mubr.f32.gmra.mrb[48].mxu1 %v8521_v60  ;;  %11210 = vst [vmem:[#allocation43_spill] sm:$0xff] %v8580_v25  ;;  %11211 = vst [vmem:[#allocation44_spill] sm:$0xff] %v8587_v13  ;;  %v8590_v41 = vmax.f32 %v663_v0, 0.0  ;;  %v664_v32 = vadd.f32 %v8032_v42, %v8232_v16  ;;  %v8599_v63 = vsel %vm1021_vm0, %v8081_v58, %v1083_v6 }
 0x185   :  { %1802 = vmatprep.mubr.f32.mxu1 %v8540_v12  ;;  %6727 = vmatpush3.bf16.msra.mxu0 %v6726_v39  ;;  %11213 = vst [vmem:[#allocation46_spill] sm:$0xff] %v8599_v63  ;;  %v1089_v22 = vrot.slane %v8580_v25, 7  ;;  %v8602_v14 = vmax.f32 %v345_v50, 0.0  ;;  %v346_v30 = vadd.f32 %v8020_v36, %v8001_v1  ;;  %v8609_v16 = vsel %vm1021_vm0, %v8081_v58, %v1092_v11 }
 0x186   :  { %6761 = vmatprep.subr.bf16.mxu0 %v6760_v62  ;;  %6793 = vmatprep.subr.bf16.mxu1 %v6792_v3  ;;  %11212 = vst [vmem:[#allocation45_spill] sm:$0xff] %v8590_v41  ;;  %11215 = vst [vmem:[#allocation48_spill] sm:$0xff] %v8609_v16  ;;  %v1098_v2 = vrot.slane %v8590_v41, 7  ;;  %v8612_v51 = vmax.f32 %v664_v32, 0.0  ;;  %v665_v47 = vadd.f32 %v8032_v42, %v8238_v33 }
 0x187   :  { %1653 = vmatmul.mubr.f32.gmra.mrb[16].mxu0 %v8577_v61  ;;  %11214 = vst [vmem:[#allocation47_spill] sm:$0xff] %v8602_v14  ;;  %v8621_v1 = vsel %vm1021_vm0, %v8081_v58, %v1089_v22  ;;  %v1095_v39 = vrot.slane %v8602_v14, 7  ;;  %v8624_v62 = vmax.f32 %v346_v30, 0.0  ;;  %v347_v48 = vadd.f32 %v8020_v36, %v8008_v7 }
 0x188   :  { %1657 = vmatprep.mubr.f32.mxu0 %v8587_v13  ;;  %1803 = vmatmul.mubr.f32.gmra.mrb[50].mxu1 %v8560_v18  ;;  %11216 = vst [vmem:[#allocation49_spill] sm:$0xff] %v8612_v51  ;;  %11217 = vst [vmem:[#allocation50_spill] sm:$0xff] %v8621_v1  ;;  %v666_v33 = vadd.f32 %v8032_v42, %v8038_v9  ;;  %v8633_v3 = vsel %vm1021_vm0, %v8081_v58, %v1098_v2  ;;  %v1104_v24 = vrot.slane %v8612_v51, 7 }
 0x189   :  { %1807 = vmatprep.mubr.f32.mxu1 %v8568_v4  ;;  %11218 = vst [vmem:[#allocation51_spill] sm:$0xff] %v8624_v62  ;;  %11219 = vst [vmem:[#allocation52_spill] sm:$0xff] %v8633_v3  ;;  %v8636_v0 = vmax.f32 %v665_v47, 0.0  ;;  %v348_v7 = vadd.f32 %v8020_v36, %v7932_v27  ;;  %v8645_v9 = vsel %vm1021_vm0, %v8081_v58, %v1095_v39  ;;  %v1101_v6 = vrot.slane %v8624_v62, 7 }
 0x18a   :  { %11221 = vst [vmem:[#allocation54_spill] sm:$0xff] %v8645_v9  ;;  %v8648_v50 = vmax.f32 %v347_v48, 0.0  ;;  %v8650_v11 = vmax.f32 %v666_v33, 0.0  ;;  %v8655_v32 = vsel %vm1021_vm0, %v8081_v58, %v1104_v24  ;;  %v667_v27 = vadd.f32 %v8032_v42, %v8327_v20 }
 0x18b   :  { %1658 = vmatmul.mubr.f32.gmra.mrb[18].mxu0 %v8599_v63  ;;  %11220 = vst [vmem:[#allocation53_spill] sm:$0xff] %v8636_v0  ;;  %11224 = vst [vmem:[#allocation57_spill] sm:$0xff] %v8655_v32  ;;  %v1110_v22 = vrot.slane %v8636_v0, 7  ;;  %v8663_v30 = vmax.f32 %v348_v7, 0.0  ;;  %v8667_v2 = vsel %vm1021_vm0, %v8081_v58, %v1101_v6  ;;  %v349_v39 = vadd.f32 %v8020_v36, %v8015_v19 }
 0x18c   :  { %1662 = vmatprep.mubr.f32.mxu0 %v8609_v16  ;;  %1808 = vmatmul.mubr.f32.gmra.mrb[52].mxu1 %v8580_v25  ;;  %11222 = vst [vmem:[#allocation55_spill] sm:$0xff] %v8648_v50  ;;  %11223 = vst [vmem:[#allocation56_spill] sm:$0xff] %v8650_v11  ;;  %v1107_v47 = vrot.slane %v8648_v50, 7  ;;  %v1116_v20 = vrot.slane %v8650_v11, 7  ;;  %v8678_v48 = vmax.f32 %v667_v27, 0.0  ;;  %v1375_v27 = vld [vmem:[%s11046_s8 + $0x200] sm:$0xff] }
 0x18d   :  { %1812 = vmatprep.mubr.f32.mxu1 %v8590_v41  ;;  %11225 = vst [vmem:[#allocation58_spill] sm:$0xff] %v8663_v30  ;;  %11226 = vst [vmem:[#allocation59_spill] sm:$0xff] %v8667_v2  ;;  %v8675_v42 = vsel %vm1021_vm0, %v8081_v58, %v1110_v22  ;;  %v1113_v19 = vrot.slane %v8663_v30, 7  ;;  %v8688_v36 = vmax.f32 %v349_v39, 0.0 }
 0x18e   :  { %11227 = vst [vmem:[#allocation60_spill] sm:$0xff] %v8675_v42  ;;  %11228 = vst [vmem:[#allocation61_spill] sm:$0xff] %v8678_v48  ;;  %v8685_v33 = vsel %vm1021_vm0, %v8081_v58, %v1107_v47  ;;  %v8693_v24 = vsel %vm1021_vm0, %v8081_v58, %v1116_v20  ;;  %v1425_v7 = vrot.slane %v8678_v48, 7  ;;  %v1376_v47 = vld [vmem:[%s11046_s8 + $0x208] sm:$0xff]  ;;  %v1192_v20 = vrot.slane %v8098_v17, 1 }
 0x18f   :  { %1663 = vmatmul.mubr.f32.gmra.mrb[20].mxu0 %v8621_v1  ;;  %11229 = vst [vmem:[#allocation62_spill] sm:$0xff] %v8685_v33  ;;  %11230 = vst [vmem:[#allocation63_spill] sm:$0xff] %v8688_v36  ;;  %v8701_v6 = vsel %vm1021_vm0, %v8081_v58, %v1113_v19  ;;  %v1422_v22 = vrot.slane %v8688_v36, 7  ;;  %v1393_v19 = vld [vmem:[%s11046_s8 + $0x290] sm:$0xff] }
 0x190   :  { %1667 = vmatprep.mubr.f32.mxu0 %v8633_v3  ;;  %1813 = vmatmul.mubr.f32.gmra.mrb[54].mxu1 %v8602_v14  ;;  %11231 = vst [vmem:[#allocation64_spill] sm:$0xff] %v8693_v24  ;;  %11232 = vst [vmem:[#allocation65_spill] sm:$0xff] %v8701_v6  ;;  %v8713_v39 = vsel %vm1021_vm0, %v8081_v58, %v1425_v7  ;;  %v6794_v7 = vpack.c.bf16 %v1376_v47, %v1375_v27  ;;  %v1198_v47 = vrot.slane %v8100_v21, 1 }
 0x191   :  { %1817 = vmatprep.mubr.f32.mxu1 %v8612_v51  ;;  %11233 = vst [vmem:[#allocation66_spill] sm:$0xff] %v8713_v39  ;;  %v8730_v17 = vsel %vm1021_vm0, %v8081_v58, %v1422_v22  ;;  %v6796_v27 = vpack.c.bf16 %v1394_v5, %v1393_v19  ;;  %v1378_v5 = vld [vmem:[%s11046_s8 + $0x218] sm:$0xff]  ;;  %v1396_v19 = vld [vmem:[%s11046_s8 + $0x2a8] sm:$0xff] }
 0x192   :  { %11236 = vst [vmem:[#allocation68_spill] sm:$0xff] %v8730_v17 }
 0x193   :  { %1668 = vmatmul.mubr.f32.gmra.mrb[22].mxu0 %v8645_v9 }
 0x194   :  { %1672 = vmatprep.mubr.f32.mxu0 %v8655_v32  ;;  %1818 = vmatmul.mubr.f32.gmra.mrb[56].mxu1 %v8624_v62 }
 0x195   :  { %1822 = vmatprep.mubr.f32.mxu1 %v8636_v0 }
 0x197   :  { %1673 = vmatmul.mubr.f32.gmra.mrb[24].mxu0 %v8667_v2 }
 0x198   :  { %1677 = vmatprep.mubr.f32.mxu0 %v8675_v42  ;;  %1823 = vmatmul.mubr.f32.gmra.mrb[58].mxu1 %v8648_v50  ;;  %v1346_v42 = vld [vmem:[%s11046_s8 + $0x118] sm:$0xff] }
 0x199   :  { %1827 = vmatprep.mubr.f32.mxu1 %v8650_v11 }
 0x19b   :  { %1678 = vmatmul.mubr.f32.gmra.mrb[26].mxu0 %v8685_v33  ;;  %v1343_v33 = vld [vmem:[%s11046_s8 + $0x100] sm:$0xff] }
 0x19c   :  { %1682 = vmatprep.mubr.f32.mxu0 %v8693_v24  ;;  %1828 = vmatmul.mubr.f32.gmra.mrb[60].mxu1 %v8663_v30  ;;  %v1189_v24 = vrot.slane %v8034_v37, 1  ;;  %v1362_v37 = vld [vmem:[%s11046_s8 + $0x198] sm:$0xff]  ;;  %v1345_v30 = vld [vmem:[%s11046_s8 + $0x110] sm:$0xff] }
 0x19d   :  { %1832 = vmatprep.mubr.f32.mxu1 %v8678_v48 }
 0x19f   :  { %1683 = vmatmul.mubr.f32.gmra.mrb[28].mxu0 %v8701_v6  ;;  %v8726_v6 = vrot.slane %v11234_v38, 1  ;;  %v1361_v38 = vld [vmem:[%s11046_s8 + $0x190] sm:$0xff] }
 0x1a0   :  { %1687 = vmatprep.mubr.f32.mxu0 %v8713_v39  ;;  %1833 = vmatmul.mubr.f32.gmra.mrb[62].mxu1 %v8688_v36  ;;  %v1344_v39 = vld [vmem:[%s11046_s8 + $0x108] sm:$0xff]  ;;  %v1377_v36 = vld [vmem:[%s11046_s8 + $0x210] sm:$0xff]  ;;  %v6764_v48 = vpack.c.bf16 %v1362_v37, %v1361_v38  ;;  %v1204_v37 = vrot.slane %v8126_v26, 1  ;;  %v1347_v26 = vld [vmem:[%s11046_s8 + $0x120] sm:$0xff] }
 0x1a1   :  { %2047 = vmatprep.mubr.f32.mxu1 %v8081_v58  ;;  %11235 = vst [vmem:[#allocation67_spill] sm:$0xff] %v8726_v6  ;;  %v8745_v22 = vsel %vm1182_vm1, %v1192_v20, %v8726_v6  ;;  %v1395_v20 = vld [vmem:[%s11046_s8 + $0x2a0] sm:$0xff]  ;;  %v8768_v21 = vsel %vm1182_vm1, %v1189_v24, %v8726_v6  ;;  %v8783_v24 = vsel %vm1182_vm1, %v1198_v47, %v8726_v6  ;;  %v1364_v38 = vld [vmem:[%s11046_s8 + $0x1a8] sm:$0xff]  ;;  %v1398_v47 = vld [vmem:[%s11046_s8 + $0x2b8] sm:$0xff] }
 0x1a2   :  { %11237 = vst [vmem:[#allocation69_spill] sm:$0xff] %v8745_v22  ;;  %11238 = vst [vmem:[#allocation70_spill] sm:$0xff] %v8783_v24 }
 0x1a3   :  { %1688 = vmatmul.mubr.f32.gmra.mrb[30].mxu0 %v8730_v17  ;;  %v6762_v17 = vpack.c.bf16 %v1344_v39, %v1343_v33  ;;  %v6798_v33 = vpack.c.bf16 %v1378_v5, %v1377_v36  ;;  %v6800_v39 = vpack.c.bf16 %v1396_v19, %v1395_v20  ;;  %v1380_v36 = vld [vmem:[%s11046_s8 + $0x228] sm:$0xff]  ;;  %v6766_v5 = vpack.c.bf16 %v1346_v42, %v1345_v30 }
 0x1a4   :  { %1902 = vmatprep.mubr.f32.mxu0 %v8745_v22  ;;  %2048 = vmatmul.mubr.f32.vlgmr.msra.gmra.mrb[64].mxu1 %v8081_v58  ;;  %v1195_v22 = vrot.slane %v8102_v34, 1  ;;  %v1201_v19 = vrot.slane %v8148_v57, 1  ;;  %v1348_v34 = vld [vmem:[%s11046_s8 + $0x128] sm:$0xff]  ;;  %v8821_v42 = vsel %vm1182_vm1, %v1204_v37, %v8726_v6  ;;  %v1399_v37 = vld [vmem:[%s11046_s8 + $0x2c0] sm:$0xff] }
 0x1a5   :  { %2052 = vmatprep.mubr.f32.mxu1 %v8145_v29  ;;  %6795 = vmatpush3.bf16.msra.mxu1 %v6794_v7  ;;  %v1363_v29 = vld [vmem:[%s11046_s8 + $0x1a0] sm:$0xff] }
 0x1a6   :  { %6797 = vmatprep.subr.bf16.mxu1 %v6796_v27  ;;  %v1379_v7 = vld [vmem:[%s11046_s8 + $0x220] sm:$0xff]  ;;  %v1397_v27 = vld [vmem:[%s11046_s8 + $0x2b0] sm:$0xff]  ;;  %v8806_v20 = vsel %vm1182_vm1, %v1195_v22, %v8726_v6  ;;  %v1366_v22 = vld [vmem:[%s11046_s8 + $0x1b8] sm:$0xff] }
 0x1a7   :  { %1903 = vmatmul.mubr.f32.vlgmr.msra.gmra.mrb[32].mxu0 %v8768_v21  ;;  %11239 = vst [vmem:[#allocation71_spill] sm:$0xff] %v8806_v20  ;;  %v6802_v30 = vpack.c.bf16 %v1380_v36, %v1379_v7  ;;  %v6770_v7 = vpack.c.bf16 %v1348_v34, %v1347_v26  ;;  %v8844_v36 = vsel %vm1182_vm1, %v1201_v19, %v8726_v6  ;;  %v1367_v26 = vld [vmem:[%s11046_s8 + $0x1c0] sm:$0xff]  ;;  %v1216_v19 = vrot.slane %v8289_v35, 1 }
 0x1a8   :  { %1907 = vmatprep.mubr.f32.mxu0 %v8783_v24  ;;  %2053 = vmatmul.mubr.f32.gmra.mrb[66].mxu1 %v8170_v43  ;;  %v6768_v43 = vpack.c.bf16 %v1364_v38, %v1363_v29  ;;  %v6804_v29 = vpack.c.bf16 %v1398_v47, %v1397_v27  ;;  %v1381_v38 = vld [vmem:[%s11046_s8 + $0x230] sm:$0xff]  ;;  %11240 = vst [vmem:[#allocation72_spill] sm:$0xff] %v8844_v36  ;;  %v1207_v27 = vrot.slane %v8266_v53, 1 }
 0x1a9   :  { %6763 = vmatpush3.bf16.msra.mxu0 %v6762_v17  ;;  %2057 = vmatprep.mubr.f32.mxu1 %v8174_v49  ;;  %v1365_v17 = vld [vmem:[%s11046_s8 + $0x1b0] sm:$0xff]  ;;  %v1350_v49 = vld [vmem:[%s11046_s8 + $0x138] sm:$0xff] }
 0x1aa   :  { %6765 = vmatprep.subr.bf16.mxu0 %v6764_v48  ;;  %6799 = vmatpush3.bf16.msra.mxu1 %v6798_v33  ;;  %v1210_v48 = vrot.slane %v8176_v55, 1  ;;  %v1382_v33 = vld [vmem:[%s11046_s8 + $0x238] sm:$0xff]  ;;  %v6772_v47 = vpack.c.bf16 %v1366_v22, %v1365_v17  ;;  %v1383_v22 = vld [vmem:[%s11046_s8 + $0x240] sm:$0xff] }
 0x1ab   :  { %1908 = vmatmul.mubr.f32.gmra.mrb[34].mxu0 %v8806_v20  ;;  %6801 = vmatprep.subr.bf16.mxu1 %v6800_v39  ;;  %v1400_v39 = vld [vmem:[%s11046_s8 + $0x2c8] sm:$0xff]  ;;  %v6806_v34 = vpack.c.bf16 %v1382_v33, %v1381_v38  ;;  %v8882_v33 = vsel %vm1182_vm1, %v1207_v27, %v8726_v6  ;;  %v1222_v27 = vrot.slane %v8355_v23, 1  ;;  %v1353_v23 = vld [vmem:[%s11046_s8 + $0x150] sm:$0xff] }
 0x1ac   :  { %1912 = vmatprep.mubr.f32.mxu0 %v8821_v42  ;;  %2058 = vmatmul.mubr.f32.gmra.mrb[68].mxu1 %v8263_v56  ;;  %v1349_v56 = vld [vmem:[%s11046_s8 + $0x130] sm:$0xff]  ;;  %v6808_v17 = vpack.c.bf16 %v1400_v39, %v1399_v37  ;;  %v1213_v37 = vrot.slane %v8334_v15, 1  ;;  %v1354_v15 = vld [vmem:[%s11046_s8 + $0x158] sm:$0xff] }
 0x1ad   :  { %2062 = vmatprep.mubr.f32.mxu1 %v8286_v45  ;;  %6767 = vmatpush3.bf16.msra.mxu0 %v6766_v5  ;;  %v8859_v5 = vsel %vm1182_vm1, %v1210_v48, %v8726_v6  ;;  %v1401_v48 = vld [vmem:[%s11046_s8 + $0x2d0] sm:$0xff]  ;;  %v6774_v38 = vpack.c.bf16 %v1350_v49, %v1349_v56  ;;  %v1352_v45 = vld [vmem:[%s11046_s8 + $0x148] sm:$0xff] }
 0x1ae   :  { %6769 = vmatprep.subr.bf16.mxu0 %v6768_v43  ;;  %6803 = vmatpush3.bf16.msra.mxu1 %v6802_v30  ;;  %v1368_v43 = vld [vmem:[%s11046_s8 + $0x1c8] sm:$0xff]  ;;  %v1369_v49 = vld [vmem:[%s11046_s8 + $0x1d0] sm:$0xff] }
 0x1af   :  { %1913 = vmatmul.mubr.f32.gmra.mrb[36].mxu0 %v8844_v36  ;;  %6805 = vmatprep.subr.bf16.mxu1 %v6804_v29  ;;  %v1384_v30 = vld [vmem:[%s11046_s8 + $0x248] sm:$0xff]  ;;  %v1402_v29 = vld [vmem:[%s11046_s8 + $0x2d8] sm:$0xff]  ;;  %v6776_v39 = vpack.c.bf16 %v1368_v43, %v1367_v26  ;;  %v1385_v43 = vld [vmem:[%s11046_s8 + $0x250] sm:$0xff] }
 0x1b0   :  { %1917 = vmatprep.mubr.f32.mxu0 %v8859_v5  ;;  %2063 = vmatmul.mubr.f32.gmra.mrb[70].mxu1 %v8331_v31  ;;  %v1351_v31 = vld [vmem:[%s11046_s8 + $0x140] sm:$0xff]  ;;  %v6810_v56 = vpack.c.bf16 %v1384_v30, %v1383_v22  ;;  %v6812_v26 = vpack.c.bf16 %v1402_v29, %v1401_v48  ;;  %v8920_v29 = vsel %vm1182_vm1, %v1213_v37, %v8726_v6  ;;  %v11246_v37 = vld [vmem:[#allocation27_spill] sm:$0xff] }
 0x1b1   :  { %2067 = vmatprep.mubr.f32.mxu1 %v8352_v8  ;;  %6771 = vmatpush3.bf16.msra.mxu0 %v6770_v7  ;;  %v8897_v7 = vsel %vm1182_vm1, %v1216_v19, %v8726_v6  ;;  %v11242_v19 = vld [vmem:[#allocation24_spill] sm:$0xff]  ;;  %v1403_v22 = vld [vmem:[%s11046_s8 + $0x2e0] sm:$0xff]  ;;  %v6778_v48 = vpack.c.bf16 %v1352_v45, %v1351_v31  ;;  %11244 = vst [vmem:[#allocation74_spill] sm:$0xff] %v8920_v29  ;;  %v1219_v8 = vrot.slane %v8390_v40, 1 }
 0x1b2   :  { %6773 = vmatprep.subr.bf16.mxu0 %v6772_v47  ;;  %6807 = vmatpush3.bf16.msra.mxu1 %v6806_v34  ;;  %11241 = vst [vmem:[#allocation73_spill] sm:$0xff] %v8897_v7  ;;  %v1370_v47 = vld [vmem:[%s11046_s8 + $0x1d8] sm:$0xff]  ;;  %v11243_v30 = vld [vmem:[#allocation26_spill] sm:$0xff] }
 0x1b3   :  { %1918 = vmatmul.mubr.f32.gmra.mrb[38].mxu0 %v8882_v33  ;;  %6809 = vmatprep.subr.bf16.mxu1 %v6808_v17  ;;  %v1386_v34 = vld [vmem:[%s11046_s8 + $0x258] sm:$0xff]  ;;  %v1404_v17 = vld [vmem:[%s11046_s8 + $0x2e8] sm:$0xff]  ;;  %v1371_v45 = vld [vmem:[%s11046_s8 + $0x1e0] sm:$0xff] }
 0x1b4   :  { %1922 = vmatprep.mubr.f32.mxu0 %v8897_v7  ;;  %2068 = vmatmul.mubr.f32.gmra.mrb[72].mxu1 %v11242_v19  ;;  %v6780_v19 = vpack.c.bf16 %v1370_v47, %v1369_v49  ;;  %v6814_v31 = vpack.c.bf16 %v1386_v34, %v1385_v43  ;;  %v1372_v49 = vld [vmem:[%s11046_s8 + $0x1e8] sm:$0xff]  ;;  %v6816_v47 = vpack.c.bf16 %v1404_v17, %v1403_v22  ;;  %v1405_v34 = vld [vmem:[%s11046_s8 + $0x2f0] sm:$0xff]  ;;  %v11248_v22 = vld [vmem:[#allocation30_spill] sm:$0xff] }
 0x1b5   :  { %2072 = vmatprep.mubr.f32.mxu1 %v11243_v30  ;;  %6775 = vmatpush3.bf16.msra.mxu0 %v6774_v38  ;;  %v8935_v38 = vsel %vm1182_vm1, %v1222_v27, %v8726_v6  ;;  %v1388_v43 = vld [vmem:[%s11046_s8 + $0x268] sm:$0xff]  ;;  %v11247_v27 = vld [vmem:[#allocation28_spill] sm:$0xff]  ;;  %v6782_v17 = vpack.c.bf16 %v1354_v15, %v1353_v23  ;;  %v8958_v30 = vsel %vm1182_vm1, %v1219_v8, %v8726_v6  ;;  %v1355_v40 = vld [vmem:[%s11046_s8 + $0x160] sm:$0xff]  ;;  %v1438_v23 = vrot.slane %v8460_v46, 1 }
 0x1b6   :  { %6777 = vmatprep.subr.bf16.mxu0 %v6776_v39  ;;  %6811 = vmatpush3.bf16.msra.mxu1 %v6810_v56  ;;  %11245 = vst [vmem:[#allocation75_spill] sm:$0xff] %v8935_v38  ;;  %v1228_v39 = vrot.slane %v11246_v37, 1  ;;  %v1387_v56 = vld [vmem:[%s11046_s8 + $0x260] sm:$0xff]  ;;  %v1225_v37 = vrot.slane %v8441_v10, 1  ;;  %v1373_v15 = vld [vmem:[%s11046_s8 + $0x1f0] sm:$0xff] }
 0x1b7   :  { %1923 = vmatmul.mubr.f32.gmra.mrb[40].mxu0 %v8920_v29  ;;  %6813 = vmatprep.subr.bf16.mxu1 %v6812_v26  ;;  %v1406_v26 = vld [vmem:[%s11046_s8 + $0x2f8] sm:$0xff]  ;;  %v1357_v46 = vld [vmem:[%s11046_s8 + $0x170] sm:$0xff] }
 0x1b8   :  { %1927 = vmatprep.mubr.f32.mxu0 %v8935_v38  ;;  %2073 = vmatmul.mubr.f32.gmra.mrb[74].mxu1 %v11247_v27  ;;  %v6784_v27 = vpack.c.bf16 %v1372_v49, %v1371_v45  ;;  %v1356_v38 = vld [vmem:[%s11046_s8 + $0x168] sm:$0xff]  ;;  %v8973_v8 = vsel %vm1182_vm1, %v1228_v39, %v8726_v6  ;;  %v1389_v45 = vld [vmem:[%s11046_s8 + $0x270] sm:$0xff]  ;;  %v5022_v49 = vld [vmem:[%s11046_s8 + $0x780] sm:$0xff] }
 0x1b9   :  { %2077 = vmatprep.mubr.f32.mxu1 %v11248_v22  ;;  %6779 = vmatpush3.bf16.msra.mxu0 %v6778_v48  ;;  %v6818_v22 = vpack.c.bf16 %v1388_v43, %v1387_v56  ;;  %v6820_v48 = vpack.c.bf16 %v1406_v26, %v1405_v34  ;;  %v11249_v39 = vld [vmem:[#allocation32_spill] sm:$0xff]  ;;  %v6786_v56 = vpack.c.bf16 %v1356_v38, %v1355_v40  ;;  %v1435_v34 = vrot.slane %v8487_v59, 1  ;;  %v4994_v59 = vld [vmem:[%s11046_s8 + $0x6a0] sm:$0xff] }
 0x1ba   :  { %6781 = vmatprep.subr.bf16.mxu0 %v6780_v19  ;;  %6815 = vmatpush3.bf16.msra.mxu1 %v6814_v31  ;;  %v1374_v19 = vld [vmem:[%s11046_s8 + $0x1f8] sm:$0xff]  ;;  %v8996_v43 = vsel %vm1182_vm1, %v1225_v37, %v8726_v6  ;;  %v9008_v40 = vsel %vm1182_vm1, %v1438_v23, %v8726_v6  ;;  %v1240_v38 = vrot.slane %v8506_v28, 1  ;;  %v4990_v37 = vld [vmem:[%s11046_s8 + $0x680] sm:$0xff]  ;;  %v1237_v23 = vrot.slane %v8521_v60, 1 }
 0x1bb   :  { %1928 = vmatmul.mubr.f32.gmra.mrb[42].mxu0 %v8958_v30  ;;  %6817 = vmatprep.subr.bf16.mxu1 %v6816_v47  ;;  %v1390_v31 = vld [vmem:[%s11046_s8 + $0x278] sm:$0xff]  ;;  %v5023_v47 = vld [vmem:[%s11046_s8 + $0x788] sm:$0xff]  ;;  %v6788_v26 = vpack.c.bf16 %v1374_v19, %v1373_v15  ;;  %11250 = vst [vmem:[#allocation76_spill] sm:$0xff] %v9008_v40  ;;  %v9022_v15 = vsel %vm1182_vm1, %v1435_v34, %v8726_v6  ;;  %v1255_v34 = vrot.slane %v8602_v14, 1 }
 0x1bc   :  { %1932 = vmatprep.mubr.f32.mxu0 %v8973_v8  ;;  %2078 = vmatmul.mubr.f32.gmra.mrb[76].mxu1 %v11249_v39  ;;  %v1358_v39 = vld [vmem:[%s11046_s8 + $0x178] sm:$0xff]  ;;  %11251 = vst [vmem:[#allocation77_spill] sm:$0xff] %v9022_v15 }
 0x1bd   :  { %2082 = vmatprep.mubr.f32.mxu1 %v8503_v44  ;;  %6783 = vmatpush3.bf16.msra.mxu0 %v6782_v17  ;;  %v6822_v44 = vpack.c.bf16 %v1390_v31, %v1389_v45  ;;  %v6790_v17 = vpack.c.bf16 %v1358_v39, %v1357_v46  ;;  %v1246_v45 = vrot.slane %v8540_v12, 1  ;;  %v9036_v46 = vsel %vm1182_vm1, %v1237_v23, %v8726_v6 }
 0x1be   :  { %6785 = vmatprep.subr.bf16.mxu0 %v6784_v27  ;;  %6819 = vmatpush3.bf16.msra.mxu1 %v6818_v22  ;;  %v4991_v27 = vld [vmem:[%s11046_s8 + $0x688] sm:$0xff]  ;;  %v6856_v22 = vpack.c.bf16 %v5023_v47, %v5022_v49  ;;  %v1252_v39 = vrot.slane %v8568_v4, 1  ;;  %v1249_v49 = vrot.slane %v8580_v25, 1 }
 0x1bf   :  { %1933 = vmatmul.mubr.f32.gmra.mrb[44].mxu0 %v8996_v43  ;;  %6821 = vmatprep.subr.bf16.mxu1 %v6820_v48  ;;  %v6824_v19 = vpack.c.bf16 %v4991_v27, %v4990_v37  ;;  %v9028_v48 = vsel %vm1182_vm1, %v1240_v38, %v8726_v6  ;;  %v9042_v31 = vsel %vm1182_vm1, %v1246_v45, %v8726_v6  ;;  %v1264_v38 = vrot.slane %v8612_v51, 1 }
 0x1c0   :  { %1937 = vmatprep.mubr.f32.mxu0 %v9008_v40  ;;  %2083 = vmatmul.mubr.f32.gmra.mrb[78].mxu1 %v8518_v54  ;;  %v9056_v47 = vsel %vm1182_vm1, %v1252_v39, %v8726_v6  ;;  %v9078_v37 = vsel %vm1182_vm1, %v1255_v34, %v8726_v6  ;;  %v1261_v27 = vrot.slane %v8624_v62, 1  ;;  %v11252_v39 = vld [vmem:[#allocation60_spill] sm:$0xff] }
 0x1c1   :  { %2087 = vmatprep.mubr.f32.mxu1 %v8081_v58  ;;  %6787 = vmatpush3.bf16.msra.mxu0 %v6786_v56  ;;  %v1258_v56 = vrot.slane %v8590_v41, 1  ;;  %v11256_v40 = vld [vmem:[#allocation64_spill] sm:$0xff] }
 0x1c2   :  { %6789 = vmatprep.subr.bf16.mxu0 %v6788_v26  ;;  %6823 = vmatpush3.bf16.msra.mxu1 %v6822_v44  ;;  %v1243_v44 = vrot.slane %v8560_v18, 1  ;;  %v9092_v23 = vsel %vm1182_vm1, %v1261_v27, %v8726_v6  ;;  %v11254_v27 = vld [vmem:[#allocation61_spill] sm:$0xff] }
 0x1c3   :  { %1938 = vmatmul.mubr.f32.gmra.mrb[46].mxu0 %v9022_v15  ;;  %6857 = vmatprep.subr.bf16.mxu1 %v6856_v22  ;;  %v9070_v26 = vsel %vm1182_vm1, %v1258_v56, %v8726_v6  ;;  %v9084_v22 = vsel %vm1182_vm1, %v1264_v38, %v8726_v6  ;;  %v11253_v56 = vld [vmem:[#allocation58_spill] sm:$0xff] }
 0x1c4   :  { %1942 = vmatprep.mubr.f32.mxu0 %v9028_v48  ;;  %2088 = vmatmul.mubr.f32.gmra.mrb[80].mxu1 %v8081_v58  ;;  %v1273_v34 = vrot.slane %v11253_v56, 1  ;;  %v11255_v15 = vld [vmem:[#allocation62_spill] sm:$0xff]  ;;  %v4977_v58 = vld [vmem:[%s11046_s8 + $0x618] sm:$0xff] }
 0x1c5   :  { %2092 = vmatprep.mubr.f32.mxu1 %v8565_v52  ;;  %6791 = vmatpush3.bf16.msra.mxu0 %v6790_v17  ;;  %v9050_v52 = vsel %vm1182_vm1, %v1243_v44, %v8726_v6  ;;  %v1270_v17 = vrot.slane %v8636_v0, 1  ;;  %v1276_v44 = vrot.slane %v8650_v11, 1 }
 0x1c6   :  { %6825 = vmatprep.subr.bf16.mxu0 %v6824_v19  ;;  %v1267_v19 = vrot.slane %v8648_v50, 1 }
 0x1c7   :  { %1943 = vmatmul.mubr.f32.gmra.mrb[48].mxu0 %v9036_v46  ;;  %v9098_v45 = vsel %vm1182_vm1, %v1270_v17, %v8726_v6  ;;  %v9112_v38 = vsel %vm1182_vm1, %v1276_v44, %v8726_v6  ;;  %v1444_v17 = vrot.slane %v11254_v27, 1  ;;  %v5007_v44 = vld [vmem:[%s11046_s8 + $0x708] sm:$0xff] }
 0x1c8   :  { %1947 = vmatprep.mubr.f32.mxu0 %v9042_v31  ;;  %2093 = vmatmul.mubr.f32.gmra.mrb[82].mxu1 %v8577_v61  ;;  %v9064_v61 = vsel %vm1182_vm1, %v1249_v49, %v8726_v6  ;;  %v9106_v49 = vsel %vm1182_vm1, %v1267_v19, %v8726_v6  ;;  %v9120_v19 = vsel %vm1182_vm1, %v1273_v34, %v8726_v6  ;;  %v5024_v34 = vld [vmem:[%s11046_s8 + $0x790] sm:$0xff] }
 0x1c9   :  { %2097 = vmatprep.mubr.f32.mxu1 %v8587_v13  ;;  %v9132_v27 = vsel %vm1182_vm1, %v1444_v17, %v8726_v6  ;;  %v4974_v17 = vld [vmem:[%s11046_s8 + $0x600] sm:$0xff]  ;;  %v4976_v13 = vld [vmem:[%s11046_s8 + $0x610] sm:$0xff] }
 0x1ca   :  { %11258 = vst [vmem:[#allocation78_spill] sm:$0xff] %v9132_v27 }
 0x1cb   :  { %1948 = vmatmul.mubr.f32.gmra.mrb[50].mxu0 %v9050_v52 }
 0x1cc   :  { %1952 = vmatprep.mubr.f32.mxu0 %v9056_v47  ;;  %2098 = vmatmul.mubr.f32.gmra.mrb[84].mxu1 %v8599_v63 }
 0x1cd   :  { %2102 = vmatprep.mubr.f32.mxu1 %v8609_v16 }
 0x1cf   :  { %1953 = vmatmul.mubr.f32.gmra.mrb[52].mxu0 %v9064_v61 }
 0x1d0   :  { %1957 = vmatprep.mubr.f32.mxu0 %v9070_v26  ;;  %2103 = vmatmul.mubr.f32.gmra.mrb[86].mxu1 %v8621_v1  ;;  %v11261_v1 = vmov 0.0  }
 0x1d1   :  { %2107 = vmatprep.mubr.f32.mxu1 %v8633_v3  ;;  %v4975_v3 = vld [vmem:[%s11046_s8 + $0x608] sm:$0xff] }
 0x1d2   :  { %v6826_v16 = vpack.c.bf16 %v4975_v3, %v4974_v17  ;;  %v4995_v3 = vld [vmem:[%s11046_s8 + $0x6a8] sm:$0xff]  ;;  %v11263_v17 = vld [vmem:[#allocation9_spill] sm:$0xff] }
 0x1d3   :  { %1958 = vmatmul.mubr.f32.gmra.mrb[54].mxu0 %v9078_v37 }
 0x1d4   :  { %1962 = vmatprep.mubr.f32.mxu0 %v9084_v22  ;;  %2108 = vmatmul.mubr.f32.gmra.mrb[88].mxu1 %v8645_v9 }
 0x1d5   :  { %2112 = vmatprep.mubr.f32.mxu1 %v8655_v32  ;;  %v5006_v32 = vld [vmem:[%s11046_s8 + $0x700] sm:$0xff] }
 0x1d7   :  { %1963 = vmatmul.mubr.f32.gmra.mrb[56].mxu0 %v9092_v23 }
 0x1d8   :  { %1967 = vmatprep.mubr.f32.mxu0 %v9098_v45  ;;  %2113 = vmatmul.mubr.f32.gmra.mrb[90].mxu1 %v8667_v2 }
 0x1d9   :  { %2117 = vmatprep.mubr.f32.mxu1 %v11252_v39  ;;  %v11257_v39 = vld [vmem:[#allocation63_spill] sm:$0xff] }
 0x1da   :  { %v1441_v2 = vrot.slane %v11257_v39, 1  ;;  %v5025_v39 = vld [vmem:[%s11046_s8 + $0x798] sm:$0xff] }
 0x1db   :  { %1968 = vmatmul.mubr.f32.gmra.mrb[58].mxu0 %v9106_v49 }
 0x1dc   :  { %1972 = vmatprep.mubr.f32.mxu0 %v9112_v38  ;;  %2118 = vmatmul.mubr.f32.gmra.mrb[92].mxu1 %v11255_v15  ;;  %v6858_v15 = vpack.c.bf16 %v5007_v44, %v5006_v32  ;;  %v9145_v9 = vsel %vm1182_vm1, %v1441_v2, %v8726_v6  ;;  %v4993_v32 = vld [vmem:[%s11046_s8 + $0x698] sm:$0xff]  ;;  %v5008_v2 = vld [vmem:[%s11046_s8 + $0x710] sm:$0xff] }
 0x1dd   :  { %2122 = vmatprep.mubr.f32.mxu1 %v11256_v40  ;;  %v11259_v40 = vld [vmem:[#allocation65_spill] sm:$0xff]  ;;  %11260 = vst [vmem:[#allocation79_spill] sm:$0xff] %v9145_v9 }
 0x1de   :  { %v5009_v44 = vld [vmem:[%s11046_s8 + $0x718] sm:$0xff] }
 0x1df   :  { %1973 = vmatmul.mubr.f32.gmra.mrb[60].mxu0 %v9120_v19  ;;  %v6862_v54 = vpack.c.bf16 %v5009_v44, %v5008_v2  ;;  %v6830_v2 = vpack.c.bf16 %v4977_v58, %v4976_v13  ;;  %v6832_v44 = vpack.c.bf16 %v4995_v3, %v4994_v59  ;;  %v4997_v58 = vld [vmem:[%s11046_s8 + $0x6b8] sm:$0xff]  ;;  %v5012_v13 = vld [vmem:[%s11046_s8 + $0x730] sm:$0xff]  ;;  %v11265_v3 = vld [vmem:[#allocation10_spill] sm:$0xff] }
 0x1e0   :  { %1977 = vmatprep.mubr.f32.mxu0 %v9132_v27  ;;  %2123 = vmatmul.mubr.f32.gmra.mrb[94].mxu1 %v11259_v40  ;;  %v4992_v27 = vld [vmem:[%s11046_s8 + $0x690] sm:$0xff]  ;;  %v6860_v40 = vpack.c.bf16 %v5025_v39, %v5024_v34  ;;  %v5026_v39 = vld [vmem:[%s11046_s8 + $0x7a0] sm:$0xff]  ;;  %v5027_v34 = vld [vmem:[%s11046_s8 + $0x7a8] sm:$0xff] }
 0x1e1   :  { %2337 = vmatprep.mubr.f32.mxu1 %v8726_v6  ;;  %v6828_v63 = vpack.c.bf16 %v4993_v32, %v4992_v27  ;;  %v5011_v27 = vld [vmem:[%s11046_s8 + $0x728] sm:$0xff]  ;;  %v5029_v32 = vld [vmem:[%s11046_s8 + $0x7b8] sm:$0xff] }
 0x1e3   :  { %1978 = vmatmul.mubr.f32.gmra.mrb[62].mxu0 %v9145_v9  ;;  %v11262_v9 = vld [vmem:[#allocation69_spill] sm:$0xff] }
 0x1e4   :  { %2338 = vmatmul.mubr.f32.vlgmr.msra.gmra.mrb[96].mxu1 %v8726_v6  ;;  %2192 = vmatprep.mubr.f32.mxu0 %v11261_v1 }
 0x1e5   :  { %2342 = vmatprep.mubr.f32.mxu1 %v11262_v9  ;;  %6859 = vmatpush3.bf16.msra.mxu1 %v6858_v15  ;;  %v6864_v9 = vpack.c.bf16 %v5027_v34, %v5026_v39  ;;  %v5010_v15 = vld [vmem:[%s11046_s8 + $0x720] sm:$0xff]  ;;  %v4996_v34 = vld [vmem:[%s11046_s8 + $0x6b0] sm:$0xff] }
 0x1e6   :  { %6861 = vmatprep.subr.bf16.mxu1 %v6860_v40  ;;  %v5028_v40 = vld [vmem:[%s11046_s8 + $0x7b0] sm:$0xff]  ;;  %v4978_v39 = vld [vmem:[%s11046_s8 + $0x620] sm:$0xff] }
 0x1e7   :  { %2193 = vmatmul.mubr.f32.vlgmr.msra.gmra.mrb[64].mxu0 %v11261_v1  ;;  %v6868_v59 = vpack.c.bf16 %v5029_v32, %v5028_v40  ;;  %v4980_v40 = vld [vmem:[%s11046_s8 + $0x630] sm:$0xff]  ;;  %v4981_v32 = vld [vmem:[%s11046_s8 + $0x638] sm:$0xff] }
 0x1e8   :  { %2197 = vmatprep.mubr.f32.mxu0 %v11263_v17  ;;  %2343 = vmatmul.mubr.f32.gmra.mrb[98].mxu1 %v8768_v21  ;;  %v4979_v21 = vld [vmem:[%s11046_s8 + $0x628] sm:$0xff]  ;;  %v6866_v17 = vpack.c.bf16 %v5011_v27, %v5010_v15  ;;  %v6836_v27 = vpack.c.bf16 %v4997_v58, %v4996_v34  ;;  %v11267_v34 = vld [vmem:[#allocation12_spill] sm:$0xff]  ;;  %v5033_v58 = vld [vmem:[%s11046_s8 + $0x7d8] sm:$0xff] }
 0x1e9   :  { %6827 = vmatpush3.bf16.msra.mxu0 %v6826_v16  ;;  %2347 = vmatprep.mubr.f32.mxu1 %v8783_v24  ;;  %v11264_v16 = vld [vmem:[#allocation7_spill] sm:$0xff]  ;;  %v6834_v15 = vpack.c.bf16 %v4979_v21, %v4978_v39  ;;  %v5014_v39 = vld [vmem:[%s11046_s8 + $0x740] sm:$0xff] }
 0x1ea   :  { %6829 = vmatprep.subr.bf16.mxu0 %v6828_v63  ;;  %6863 = vmatpush3.bf16.msra.mxu1 %v6862_v54  ;;  %v5013_v63 = vld [vmem:[%s11046_s8 + $0x738] sm:$0xff]  ;;  %v5030_v54 = vld [vmem:[%s11046_s8 + $0x7c0] sm:$0xff]  ;;  %v11266_v24 = vld [vmem:[#allocation11_spill] sm:$0xff] }
 0x1eb   :  { %2198 = vmatmul.mubr.f32.gmra.mrb[66].mxu0 %v11264_v16  ;;  %6865 = vmatprep.subr.bf16.mxu1 %v6864_v9  ;;  %v5031_v9 = vld [vmem:[%s11046_s8 + $0x7c8] sm:$0xff]  ;;  %v4998_v16 = vld [vmem:[%s11046_s8 + $0x6c0] sm:$0xff] }
 0x1ec   :  { %2202 = vmatprep.mubr.f32.mxu0 %v11265_v3  ;;  %2348 = vmatmul.mubr.f32.gmra.mrb[100].mxu1 %v8806_v20  ;;  %v6870_v20 = vpack.c.bf16 %v5013_v63, %v5012_v13  ;;  %v5015_v21 = vld [vmem:[%s11046_s8 + $0x748] sm:$0xff]  ;;  %v4982_v63 = vld [vmem:[%s11046_s8 + $0x640] sm:$0xff] }
 0x1ed   :  { %2352 = vmatprep.mubr.f32.mxu1 %v8821_v42  ;;  %6831 = vmatpush3.bf16.msra.mxu0 %v6830_v2  ;;  %v4999_v2 = vld [vmem:[%s11046_s8 + $0x6c8] sm:$0xff] }
 0x1ee   :  { %6833 = vmatprep.subr.bf16.mxu0 %v6832_v44  ;;  %6867 = vmatpush3.bf16.msra.mxu1 %v6866_v17  ;;  %v6872_v44 = vpack.c.bf16 %v5031_v9, %v5030_v54  ;;  %v5032_v17 = vld [vmem:[%s11046_s8 + $0x7d0] sm:$0xff]  ;;  %v6840_v13 = vpack.c.bf16 %v4999_v2, %v4998_v16  ;;  %v4983_v54 = vld [vmem:[%s11046_s8 + $0x648] sm:$0xff]  ;;  %v5001_v16 = vld [vmem:[%s11046_s8 + $0x6d8] sm:$0xff] }
 0x1ef   :  { %2203 = vmatmul.mubr.f32.gmra.mrb[68].mxu0 %v11266_v24  ;;  %6869 = vmatprep.subr.bf16.mxu1 %v6868_v59  ;;  %v6838_v59 = vpack.c.bf16 %v4981_v32, %v4980_v40  ;;  %v5000_v9 = vld [vmem:[%s11046_s8 + $0x6d0] sm:$0xff]  ;;  %v5017_v40 = vld [vmem:[%s11046_s8 + $0x758] sm:$0xff]  ;;  %v5035_v32 = vld [vmem:[%s11046_s8 + $0x7e8] sm:$0xff]  ;;  %v6842_v2 = vpack.c.bf16 %v4983_v54, %v4982_v63 }
 0x1f0   :  { %2207 = vmatprep.mubr.f32.mxu0 %v11267_v34  ;;  %2353 = vmatmul.mubr.f32.gmra.mrb[102].mxu1 %v8844_v36  ;;  %v6874_v36 = vpack.c.bf16 %v5015_v21, %v5014_v39  ;;  %v4984_v39 = vld [vmem:[%s11046_s8 + $0x650] sm:$0xff]  ;;  %v4985_v21 = vld [vmem:[%s11046_s8 + $0x658] sm:$0xff]  ;;  %v5018_v63 = vld [vmem:[%s11046_s8 + $0x760] sm:$0xff] }
 0x1f1   :  { %2357 = vmatprep.mubr.f32.mxu1 %v8859_v5  ;;  %6835 = vmatpush3.bf16.msra.mxu0 %v6834_v15  ;;  %v6876_v15 = vpack.c.bf16 %v5033_v58, %v5032_v17  ;;  %v5002_v17 = vld [vmem:[%s11046_s8 + $0x6e0] sm:$0xff]  ;;  %v5036_v54 = vld [vmem:[%s11046_s8 + $0x7f0] sm:$0xff] }
 0x1f2   :  { %6837 = vmatprep.subr.bf16.mxu0 %v6836_v27  ;;  %6871 = vmatpush3.bf16.msra.mxu1 %v6870_v20  ;;  %v5016_v27 = vld [vmem:[%s11046_s8 + $0x750] sm:$0xff]  ;;  %v5034_v20 = vld [vmem:[%s11046_s8 + $0x7e0] sm:$0xff] }
 0x1f3   :  { %2208 = vmatmul.mubr.f32.gmra.mrb[70].mxu0 %v8148_v57  ;;  %6873 = vmatprep.subr.bf16.mxu1 %v6872_v44  ;;  %v6844_v44 = vpack.c.bf16 %v5001_v16, %v5000_v9  ;;  %v6878_v58 = vpack.c.bf16 %v5017_v40, %v5016_v27  ;;  %v5037_v9 = vld [vmem:[%s11046_s8 + $0x7f8] sm:$0xff]  ;;  %v11268_v16 = vld [vmem:[#allocation75_spill] sm:$0xff]  ;;  %v4986_v40 = vld [vmem:[%s11046_s8 + $0x660] sm:$0xff] }
 0x1f4   :  { %2212 = vmatprep.mubr.f32.mxu0 %v8176_v55  ;;  %2358 = vmatmul.mubr.f32.gmra.mrb[104].mxu1 %v8882_v33 }
 0x1f5   :  { %2362 = vmatprep.mubr.f32.mxu1 %v8897_v7  ;;  %6839 = vmatpush3.bf16.msra.mxu0 %v6838_v59  ;;  %v5003_v59 = vld [vmem:[%s11046_s8 + $0x6e8] sm:$0xff]  ;;  %v11269_v7 = vld [vmem:[#allocation21_spill] sm:$0xff] }
 0x1f6   :  { %6841 = vmatprep.subr.bf16.mxu0 %v6840_v13  ;;  %6875 = vmatpush3.bf16.msra.mxu1 %v6874_v36  ;;  %v6880_v13 = vpack.c.bf16 %v5035_v32, %v5034_v20  ;;  %v5019_v36 = vld [vmem:[%s11046_s8 + $0x768] sm:$0xff]  ;;  %v6848_v27 = vpack.c.bf16 %v5003_v59, %v5002_v17 }
 0x1f7   :  { %2213 = vmatmul.mubr.f32.gmra.mrb[72].mxu0 %v8266_v53  ;;  %6877 = vmatprep.subr.bf16.mxu1 %v6876_v15  ;;  %v6846_v15 = vpack.c.bf16 %v4985_v21, %v4984_v39  ;;  %v4987_v20 = vld [vmem:[%s11046_s8 + $0x668] sm:$0xff]  ;;  %v6882_v32 = vpack.c.bf16 %v5019_v36, %v5018_v63  ;;  %v5020_v39 = vld [vmem:[%s11046_s8 + $0x770] sm:$0xff]  ;;  %v5021_v21 = vld [vmem:[%s11046_s8 + $0x778] sm:$0xff] }
 0x1f8   :  { %2217 = vmatprep.mubr.f32.mxu0 %v8289_v35  ;;  %2363 = vmatmul.mubr.f32.gmra.mrb[106].mxu1 %v8920_v29  ;;  %v5004_v29 = vld [vmem:[%s11046_s8 + $0x6f0] sm:$0xff]  ;;  %v11270_v17 = vld [vmem:[#allocation23_spill] sm:$0xff]  ;;  %v4989_v63 = vld [vmem:[%s11046_s8 + $0x678] sm:$0xff]  ;;  %v6886_v36 = vpack.c.bf16 %v5021_v21, %v5020_v39 }
 0x1f9   :  { %2367 = vmatprep.mubr.f32.mxu1 %v11268_v16  ;;  %6843 = vmatpush3.bf16.msra.mxu0 %v6842_v2  ;;  %v5005_v2 = vld [vmem:[%s11046_s8 + $0x6f8] sm:$0xff]  ;;  %v5040_v21 = vld [vmem:[%s11046_s8 + $0x810] sm:$0xff] }
 0x1fa   :  { %6845 = vmatprep.subr.bf16.mxu0 %v6844_v44  ;;  %6879 = vmatpush3.bf16.msra.mxu1 %v6878_v58  ;;  %v6884_v44 = vpack.c.bf16 %v5037_v9, %v5036_v54  ;;  %v6850_v58 = vpack.c.bf16 %v4987_v20, %v4986_v40  ;;  %v6852_v59 = vpack.c.bf16 %v5005_v2, %v5004_v29  ;;  %v11271_v54 = vld [vmem:[#allocation25_spill] sm:$0xff]  ;;  %v5054_v9 = vld [vmem:[%s11046_s8 + $0x880] sm:$0xff]  ;;  %v5055_v29 = vld [vmem:[%s11046_s8 + $0x888] sm:$0xff] }
 0x1fb   :  { %2218 = vmatmul.mubr.f32.gmra.mrb[74].mxu0 %v11269_v7  ;;  %6881 = vmatprep.subr.bf16.mxu1 %v6880_v13  ;;  %v4988_v13 = vld [vmem:[%s11046_s8 + $0x670] sm:$0xff]  ;;  %v6888_v40 = vpack.c.bf16 %v5055_v29, %v5054_v9  ;;  %v11273_v2 = vld [vmem:[#allocation14_spill] sm:$0xff] }
 0x1fc   :  { %2222 = vmatprep.mubr.f32.mxu0 %v11270_v17  ;;  %2368 = vmatmul.mubr.f32.gmra.mrb[108].mxu1 %v8958_v30  ;;  %v5056_v20 = vld [vmem:[%s11046_s8 + $0x890] sm:$0xff] }
 0x1fd   :  { %2372 = vmatprep.mubr.f32.mxu1 %v8973_v8  ;;  %6847 = vmatpush3.bf16.msra.mxu0 %v6846_v15  ;;  %v11272_v15 = vld [vmem:[#allocation27_spill] sm:$0xff] }
 0x1fe   :  { %6849 = vmatprep.subr.bf16.mxu0 %v6848_v27  ;;  %6883 = vmatpush3.bf16.msra.mxu1 %v6882_v32  ;;  %v6854_v27 = vpack.c.bf16 %v4989_v63, %v4988_v13  ;;  %v5057_v32 = vld [vmem:[%s11046_s8 + $0x898] sm:$0xff]  ;;  %v5058_v13 = vld [vmem:[%s11046_s8 + $0x8a0] sm:$0xff]  ;;  %v5059_v63 = vld [vmem:[%s11046_s8 + $0x8a8] sm:$0xff] }
 0x1ff   :  { %2223 = vmatmul.mubr.f32.gmra.mrb[76].mxu0 %v11271_v54  ;;  %6885 = vmatprep.subr.bf16.mxu1 %v6884_v44  ;;  %v6892_v39 = vpack.c.bf16 %v5057_v32, %v5056_v20  ;;  %v6896_v29 = vpack.c.bf16 %v5059_v63, %v5058_v13  ;;  %v5061_v20 = vld [vmem:[%s11046_s8 + $0x8b8] sm:$0xff]  ;;  %v11277_v32 = vld [vmem:[#allocation22_spill] sm:$0xff]  ;;  %v5063_v13 = vld [vmem:[%s11046_s8 + $0x8c8] sm:$0xff] }
 0x200   :  { %2227 = vmatprep.mubr.f32.mxu0 %v11272_v15  ;;  %2373 = vmatmul.mubr.f32.gmra.mrb[110].mxu1 %v8996_v43  ;;  %v11279_v63 = vld [vmem:[#allocation26_spill] sm:$0xff] }
 0x201   :  { %2377 = vmatprep.mubr.f32.mxu1 %v8726_v6  ;;  %6851 = vmatpush3.bf16.msra.mxu0 %v6850_v58  ;;  %v5041_v58 = vld [vmem:[%s11046_s8 + $0x818] sm:$0xff] }
 0x202   :  { %6853 = vmatprep.subr.bf16.mxu0 %v6852_v59  ;;  %6887 = vmatpush3.bf16.msra.mxu1 %v6886_v36  ;;  %v11274_v59 = vld [vmem:[#allocation16_spill] sm:$0xff]  ;;  %v11275_v36 = vld [vmem:[#allocation18_spill] sm:$0xff]  ;;  %v6894_v9 = vpack.c.bf16 %v5041_v58, %v5040_v21  ;;  %v5045_v21 = vld [vmem:[%s11046_s8 + $0x838] sm:$0xff] }
 0x203   :  { %2228 = vmatmul.mubr.f32.gmra.mrb[78].mxu0 %v8441_v10  ;;  %v11278_v58 = vld [vmem:[#allocation24_spill] sm:$0xff] }
 0x204   :  { %2378 = vmatmul.mubr.f32.gmra.mrb[112].mxu1 %v8726_v6  ;;  %2232 = vmatprep.mubr.f32.mxu0 %v11261_v1 }
 0x205   :  { %2382 = vmatprep.mubr.f32.mxu1 %v9028_v48  ;;  %6855 = vmatpush3.bf16.msra.mxu0 %v6854_v27  ;;  %v5038_v48 = vld [vmem:[%s11046_s8 + $0x800] sm:$0xff] }
 0x206   :  { %6889 = vmatprep.subr.bf16.mxu0 %v6888_v40  ;;  %v5042_v27 = vld [vmem:[%s11046_s8 + $0x820] sm:$0xff]  ;;  %v5043_v40 = vld [vmem:[%s11046_s8 + $0x828] sm:$0xff] }
 0x207   :  { %2233 = vmatmul.mubr.f32.gmra.mrb[80].mxu0 %v11261_v1 }
 0x208   :  { %2237 = vmatprep.mubr.f32.mxu0 %v8506_v28  ;;  %2383 = vmatmul.mubr.f32.gmra.mrb[114].mxu1 %v9036_v46  ;;  %v5039_v46 = vld [vmem:[%s11046_s8 + $0x808] sm:$0xff]  ;;  %v11285_v28 = vld [vmem:[#allocation36_spill] sm:$0xff] }
 0x209   :  { %2387 = vmatprep.mubr.f32.mxu1 %v9042_v31  ;;  %v6890_v44 = vpack.c.bf16 %v5039_v46, %v5038_v48  ;;  %v11276_v48 = vld [vmem:[#allocation20_spill] sm:$0xff] }
 0x20a   :  { %v5060_v46 = vld [vmem:[%s11046_s8 + $0x8b0] sm:$0xff] }
 0x20b   :  { %2238 = vmatmul.mubr.f32.gmra.mrb[82].mxu0 %v8521_v60 }
 0x20c   :  { %2242 = vmatprep.mubr.f32.mxu0 %v8540_v12  ;;  %2388 = vmatmul.mubr.f32.gmra.mrb[116].mxu1 %v9050_v52 }
 0x20d   :  { %2392 = vmatprep.mubr.f32.mxu1 %v9056_v47 }
 0x20f   :  { %2243 = vmatmul.mubr.f32.gmra.mrb[84].mxu0 %v8560_v18 }
 0x210   :  { %2247 = vmatprep.mubr.f32.mxu0 %v8568_v4  ;;  %2393 = vmatmul.mubr.f32.gmra.mrb[118].mxu1 %v9064_v61 }
 0x211   :  { %2397 = vmatprep.mubr.f32.mxu1 %v9070_v26 }
 0x213   :  { %2248 = vmatmul.mubr.f32.gmra.mrb[86].mxu0 %v8580_v25 }
 0x214   :  { %2252 = vmatprep.mubr.f32.mxu0 %v8590_v41  ;;  %2398 = vmatmul.mubr.f32.gmra.mrb[120].mxu1 %v9078_v37 }
 0x215   :  { %2402 = vmatprep.mubr.f32.mxu1 %v9084_v22 }
 0x217   :  { %2253 = vmatmul.mubr.f32.gmra.mrb[88].mxu0 %v8602_v14 }
 0x218   :  { %2257 = vmatprep.mubr.f32.mxu0 %v8612_v51  ;;  %2403 = vmatmul.mubr.f32.gmra.mrb[122].mxu1 %v9092_v23 }
 0x219   :  { %2407 = vmatprep.mubr.f32.mxu1 %v9098_v45 }
 0x21b   :  { %2258 = vmatmul.mubr.f32.gmra.mrb[90].mxu0 %v8624_v62 }
 0x21c   :  { %2262 = vmatprep.mubr.f32.mxu0 %v8636_v0  ;;  %2408 = vmatmul.mubr.f32.gmra.mrb[124].mxu1 %v9106_v49 }
 0x21d   :  { %2412 = vmatprep.mubr.f32.mxu1 %v9112_v38 }
 0x21f   :  { %2263 = vmatmul.mubr.f32.gmra.mrb[92].mxu0 %v8648_v50 }
 0x220   :  { %2267 = vmatprep.mubr.f32.mxu0 %v8650_v11  ;;  %2413 = vmatmul.mubr.f32.gmra.mrb[126].mxu1 %v9120_v19 }
 0x221   :  { %2768 = vmatprep.mubr.f32.mxu1 %v11265_v3  ;;  %v5128_v3 = vld [vmem:[%s11049_s11 + $0x348] sm:$0xff] }
 0x223   :  { %2268 = vmatmul.mubr.f32.gmra.mrb[94].mxu0 %v11253_v56 }
 0x224   :  { %2623 = vmatprep.mubr.f32.mxu0 %v11273_v2  ;;  %2769 = vmatmul.mubr.f32.vlgmr.msra.gmra.mrb[128].mxu1 %v11266_v24  ;;  %v6898_v2 = vpack.c.bf16 %v5043_v40, %v5042_v27  ;;  %v5047_v27 = vld [vmem:[%s11046_s8 + $0x848] sm:$0xff]  ;;  %v11280_v40 = vld [vmem:[#allocation28_spill] sm:$0xff] }
 0x225   :  { %2773 = vmatprep.mubr.f32.mxu1 %v11267_v34  ;;  %v5126_v34 = vld [vmem:[%s11049_s11 + $0x338] sm:$0xff] }
 0x227   :  { %2624 = vmatmul.mubr.f32.vlgmr.msra.gmra.mrb[96].mxu0 %v11274_v59  ;;  %v5062_v59 = vld [vmem:[%s11046_s8 + $0x8c0] sm:$0xff] }
 0x228   :  { %2628 = vmatprep.mubr.f32.mxu0 %v11275_v36  ;;  %2774 = vmatmul.mubr.f32.gmra.mrb[130].mxu1 %v8148_v57  ;;  %v5127_v57 = vld [vmem:[%s11049_s11 + $0x340] sm:$0xff] }
 0x229   :  { %6891 = vmatpush3.bf16.msra.mxu0 %v6890_v44  ;;  %2778 = vmatprep.mubr.f32.mxu1 %v8176_v55  ;;  %v6900_v44 = vpack.c.bf16 %v5061_v20, %v5060_v46  ;;  %v5065_v46 = vld [vmem:[%s11046_s8 + $0x8d8] sm:$0xff]  ;;  %v11281_v20 = vld [vmem:[#allocation30_spill] sm:$0xff]  ;;  %v5125_v55 = vld [vmem:[%s11049_s11 + $0x330] sm:$0xff] }
 0x22a   :  { %6893 = vmatprep.subr.bf16.mxu0 %v6892_v39  ;;  %v5044_v39 = vld [vmem:[%s11046_s8 + $0x830] sm:$0xff] }
 0x22b   :  { %2629 = vmatmul.mubr.f32.gmra.mrb[98].mxu0 %v11276_v48  ;;  %v6902_v36 = vpack.c.bf16 %v5045_v21, %v5044_v39  ;;  %v5064_v48 = vld [vmem:[%s11046_s8 + $0x8d0] sm:$0xff]  ;;  %v5049_v39 = vld [vmem:[%s11046_s8 + $0x858] sm:$0xff] }
 0x22c   :  { %2633 = vmatprep.mubr.f32.mxu0 %v11277_v32  ;;  %2779 = vmatmul.mubr.f32.gmra.mrb[132].mxu1 %v8266_v53 }
 0x22d   :  { %2783 = vmatprep.mubr.f32.mxu1 %v8289_v35  ;;  %6895 = vmatpush3.bf16.msra.mxu0 %v6894_v9  ;;  %v6904_v9 = vpack.c.bf16 %v5063_v13, %v5062_v59  ;;  %v5066_v59 = vld [vmem:[%s11046_s8 + $0x8e0] sm:$0xff]  ;;  %v5067_v13 = vld [vmem:[%s11046_s8 + $0x8e8] sm:$0xff] }
 0x22e   :  { %6897 = vmatprep.subr.bf16.mxu0 %v6896_v29  ;;  %v5046_v29 = vld [vmem:[%s11046_s8 + $0x840] sm:$0xff] }
 0x22f   :  { %2634 = vmatmul.mubr.f32.gmra.mrb[100].mxu0 %v11278_v58  ;;  %v6906_v32 = vpack.c.bf16 %v5047_v27, %v5046_v29  ;;  %v11282_v58 = vld [vmem:[#allocation32_spill] sm:$0xff]  ;;  %v11284_v29 = vld [vmem:[#allocation31_spill] sm:$0xff] }
 0x230   :  { %2638 = vmatprep.mubr.f32.mxu0 %v11279_v63  ;;  %2784 = vmatmul.mubr.f32.gmra.mrb[134].mxu1 %v11269_v7  ;;  %v3417_v7 = vld [vmem:[%s11049_s11 + $0x70] sm:$0xff] }
 0x231   :  { %2788 = vmatprep.mubr.f32.mxu1 %v11270_v17  ;;  %6899 = vmatpush3.bf16.msra.mxu0 %v6898_v2  ;;  %v6908_v2 = vpack.c.bf16 %v5065_v46, %v5064_v48  ;;  %v6912_v48 = vpack.c.bf16 %v5067_v13, %v5066_v59  ;;  %v5050_v46 = vld [vmem:[%s11046_s8 + $0x860] sm:$0xff]  ;;  %v11287_v59 = vld [vmem:[#allocation33_spill] sm:$0xff] }
 0x232   :  { %6901 = vmatprep.subr.bf16.mxu0 %v6900_v44  ;;  %v5048_v44 = vld [vmem:[%s11046_s8 + $0x850] sm:$0xff] }
 0x233   :  { %2639 = vmatmul.mubr.f32.gmra.mrb[102].mxu0 %v11280_v40  ;;  %v6910_v27 = vpack.c.bf16 %v5049_v39, %v5048_v44 }
 0x234   :  { %2643 = vmatprep.mubr.f32.mxu0 %v11281_v20  ;;  %2789 = vmatmul.mubr.f32.gmra.mrb[136].mxu1 %v11271_v54  ;;  %v5051_v20 = vld [vmem:[%s11046_s8 + $0x868] sm:$0xff]  ;;  %v3418_v54 = vld [vmem:[%s11049_s11 + $0x78] sm:$0xff] }
 0x235   :  { %2793 = vmatprep.mubr.f32.mxu1 %v11272_v15  ;;  %6903 = vmatpush3.bf16.msra.mxu0 %v6902_v36  ;;  %v11283_v36 = vld [vmem:[#allocation34_spill] sm:$0xff]  ;;  %v5052_v15 = vld [vmem:[%s11046_s8 + $0x870] sm:$0xff] }
 0x236   :  { %6905 = vmatprep.subr.bf16.mxu0 %v6904_v9 }
 0x237   :  { %v5344_v21 = vpop.f32.mrb[32].mxu1  ;;  %2644 = vmatmul.mubr.f32.gmra.mrb[104].mxu0 %v11282_v58 }
 0x238   :  { %v5345_v63 = vpop.f32.mrb[33].mxu1  ;;  %2648 = vmatprep.mubr.f32.mxu0 %v11283_v36  ;;  %2794 = vmatmul.mubr.f32.gmra.mrb[138].mxu1 %v8441_v10 }
 0x239   :  { %v5346_v9 = vadd.f32 %v5345_v63, %v5344_v21  ;;  %2798 = vmatprep.mubr.f32.mxu1 %v11284_v29  ;;  %6907 = vmatpush3.bf16.msra.mxu0 %v6906_v32  ;;  %v5068_v32 = vld [vmem:[%s11046_s8 + $0x8f0] sm:$0xff]  ;;  %v11286_v21 = vld [vmem:[#allocation38_spill] sm:$0xff]  ;;  %v6914_v63 = vpack.c.bf16 %v5051_v20, %v5050_v46 }
 0x23a   :  { %v5264_v40 = vpop.f32.mrb[0].mxu0  ;;  %6909 = vmatprep.subr.bf16.mxu0 %v6908_v2  ;;  %v5069_v2 = vld [vmem:[%s11046_s8 + $0x8f8] sm:$0xff] }
 0x23b   :  { %v5265_v58 = vpop.f32.mrb[1].mxu0  ;;  %v5347_v36 = vpop.f32.mrb[34].mxu1  ;;  %2649 = vmatmul.mubr.f32.gmra.mrb[106].mxu0 %v11285_v28  ;;  %v6916_v29 = vpack.c.bf16 %v5069_v2, %v5068_v32 }
 0x23c   :  { %v5266_v44 = vadd.f32 %v5265_v58, %v5264_v40  ;;  %v5348_v39 = vpop.f32.mrb[35].mxu1  ;;  %2653 = vmatprep.mubr.f32.mxu0 %v11286_v21  ;;  %2799 = vmatmul.mubr.f32.gmra.mrb[140].mxu1 %v11287_v59  ;;  %v5053_v40 = vld [vmem:[%s11046_s8 + $0x878] sm:$0xff] }
 0x23d   :  { %v5349_v13 = vadd.f32 %v5348_v39, %v5347_v36  ;;  %2803 = vmatprep.mubr.f32.mxu1 %v11261_v1  ;;  %6911 = vmatpush3.bf16.msra.mxu0 %v6910_v27  ;;  %v11288_v36 = vld [vmem:[#allocation40_spill] sm:$0xff]  ;;  %v6918_v46 = vpack.c.bf16 %v5053_v40, %v5052_v15 }
 0x23e   :  { %v9497_v28 = vadd.f32 %v5346_v9, %v5266_v44  ;;  %v5267_v60 = vpop.f32.mrb[2].mxu0  ;;  %6913 = vmatprep.subr.bf16.mxu0 %v6912_v48  ;;  %v11289_v9 = vld [vmem:[#allocation8_spill] sm:$0xff] }
 0x23f   :  { %v5268_v58 = vpop.f32.mrb[3].mxu0  ;;  %v5350_v21 = vpop.f32.mrb[36].mxu1  ;;  %2654 = vmatmul.mubr.f32.gmra.mrb[108].mxu0 %v11288_v36 }
 0x240   :  { %v5269_v39 = vadd.f32 %v5268_v58, %v5267_v60  ;;  %v5351_v27 = vpop.f32.mrb[37].mxu1  ;;  %2804 = vmatmul.mubr.f32.gmra.mrb[142].mxu1 %v11261_v1  ;;  %2658 = vmatprep.mubr.f32.mxu0 %v11289_v9  ;;  %v11290_v58 = vld [vmem:[#allocation44_spill] sm:$0xff] }
 0x241   :  { %v5352_v48 = vadd.f32 %v5351_v27, %v5350_v21  ;;  %2808 = vmatprep.mubr.f32.mxu1 %v8540_v12  ;;  %6915 = vmatpush3.bf16.msra.mxu0 %v6914_v63  ;;  %v11292_v27 = vld [vmem:[#allocation48_spill] sm:$0xff] }
 0x242   :  { %v9509_v20 = vadd.f32 %v5349_v13, %v5269_v39  ;;  %v5270_v32 = vpop.f32.mrb[4].mxu0  ;;  %6917 = vmatprep.subr.bf16.mxu0 %v6916_v29  ;;  %v11291_v29 = vld [vmem:[#allocation46_spill] sm:$0xff] }
 0x243   :  { %v5271_v2 = vpop.f32.mrb[5].mxu0  ;;  %v5353_v44 = vpop.f32.mrb[38].mxu1  ;;  %2659 = vmatmul.mubr.f32.gmra.mrb[110].mxu0 %v11289_v9 }
 0x244   :  { %v5272_v36 = vadd.f32 %v5271_v2, %v5270_v32  ;;  %v5354_v60 = vpop.f32.mrb[39].mxu1  ;;  %2663 = vmatprep.mubr.f32.mxu0 %v11290_v58  ;;  %2809 = vmatmul.mubr.f32.gmra.mrb[144].mxu1 %v8560_v18 }
 0x245   :  { %v5355_v10 = vadd.f32 %v5354_v60, %v5353_v44  ;;  %2813 = vmatprep.mubr.f32.mxu1 %v8568_v4  ;;  %6919 = vmatpush3.bf16.msra.mxu0 %v6918_v46  ;;  %v11294_v4 = vld [vmem:[#allocation52_spill] sm:$0xff] }
 0x246   :  { %v9515_v63 = vadd.f32 %v5352_v48, %v5272_v36  ;;  %v5273_v15 = vpop.f32.mrb[6].mxu0  ;;  %v11293_v36 = vld [vmem:[#allocation50_spill] sm:$0xff] }
 0x247   :  { %v5274_v13 = vpop.f32.mrb[7].mxu0  ;;  %v5356_v40 = vpop.f32.mrb[40].mxu1  ;;  %2664 = vmatmul.mubr.f32.gmra.mrb[112].mxu0 %v11291_v29 }
 0x248   :  { %v5275_v21 = vadd.f32 %v5274_v13, %v5273_v15  ;;  %v5357_v39 = vpop.f32.mrb[41].mxu1  ;;  %2668 = vmatprep.mubr.f32.mxu0 %v11292_v27  ;;  %2814 = vmatmul.mubr.f32.gmra.mrb[146].mxu1 %v8580_v25 }
 0x249   :  { %v5358_v32 = vadd.f32 %v5357_v39, %v5356_v40  ;;  %2818 = vmatprep.mubr.f32.mxu1 %v8590_v41  ;;  %v11296_v41 = vld [vmem:[#allocation57_spill] sm:$0xff] }
 0x24a   :  { %v9521_v2 = vadd.f32 %v5355_v10, %v5275_v21  ;;  %v5276_v44 = vpop.f32.mrb[8].mxu0  ;;  %v11295_v21 = vld [vmem:[#allocation54_spill] sm:$0xff] }
 0x24b   :  { %v5277_v46 = vpop.f32.mrb[9].mxu0  ;;  %v5359_v48 = vpop.f32.mrb[42].mxu1  ;;  %2669 = vmatmul.mubr.f32.gmra.mrb[114].mxu0 %v11293_v36  ;;  %v11297_v36 = vld [vmem:[#allocation59_spill] sm:$0xff] }
 0x24c   :  { %v5278_v60 = vadd.f32 %v5277_v46, %v5276_v44  ;;  %v5360_v58 = vpop.f32.mrb[43].mxu1  ;;  %2673 = vmatprep.mubr.f32.mxu0 %v11294_v4  ;;  %2819 = vmatmul.mubr.f32.gmra.mrb[148].mxu1 %v8602_v14  ;;  %v11308_v14 = vld [vmem:[#allocation72_spill] sm:$0xff] }
 0x24d   :  { %v5361_v15 = vadd.f32 %v5360_v58, %v5359_v48  ;;  %2823 = vmatprep.mubr.f32.mxu1 %v8612_v51  ;;  %v11298_v51 = vld [vmem:[#allocation60_spill] sm:$0xff] }
 0x24e   :  { %v9527_v13 = vadd.f32 %v5358_v32, %v5278_v60  ;;  %v5279_v40 = vpop.f32.mrb[10].mxu0 }
 0x24f   :  { %v5280_v29 = vpop.f32.mrb[11].mxu0  ;;  %v5362_v10 = vpop.f32.mrb[44].mxu1  ;;  %2674 = vmatmul.mubr.f32.gmra.mrb[116].mxu0 %v11295_v21  ;;  %v11299_v21 = vld [vmem:[#allocation62_spill] sm:$0xff] }
 0x250   :  { %v5281_v39 = vadd.f32 %v5280_v29, %v5279_v40  ;;  %v5363_v27 = vpop.f32.mrb[45].mxu1  ;;  %2678 = vmatprep.mubr.f32.mxu0 %v11296_v41  ;;  %2824 = vmatmul.mubr.f32.gmra.mrb[150].mxu1 %v8624_v62  ;;  %v11303_v62 = vld [vmem:[#allocation66_spill] sm:$0xff] }
 0x251   :  { %v5364_v44 = vadd.f32 %v5363_v27, %v5362_v10  ;;  %2828 = vmatprep.mubr.f32.mxu1 %v8636_v0  ;;  %v11300_v0 = vld [vmem:[#allocation64_spill] sm:$0xff] }
 0x252   :  { %v9533_v4 = vadd.f32 %v5361_v15, %v5281_v39  ;;  %v5282_v46 = vpop.f32.mrb[12].mxu0 }
 0x253   :  { %v5283_v48 = vpop.f32.mrb[13].mxu0  ;;  %v5365_v32 = vpop.f32.mrb[46].mxu1  ;;  %2679 = vmatmul.mubr.f32.gmra.mrb[118].mxu0 %v11297_v36 }
 0x254   :  { %v5284_v60 = vadd.f32 %v5283_v48, %v5282_v46  ;;  %v5366_v58 = vpop.f32.mrb[47].mxu1  ;;  %2683 = vmatprep.mubr.f32.mxu0 %v11298_v51  ;;  %2829 = vmatmul.mubr.f32.gmra.mrb[152].mxu1 %v8648_v50  ;;  %v11301_v51 = vld [vmem:[#allocation61_spill] sm:$0xff]  ;;  %v11307_v50 = vld [vmem:[#allocation71_spill] sm:$0xff] }
 0x255   :  { %v5367_v40 = vadd.f32 %v5366_v58, %v5365_v32  ;;  %2833 = vmatprep.mubr.f32.mxu1 %v8650_v11 }
 0x256   :  { %v9539_v41 = vadd.f32 %v5364_v44, %v5284_v60  ;;  %v5285_v29 = vpop.f32.mrb[14].mxu0  ;;  %v11302_v60 = vld [vmem:[#allocation65_spill] sm:$0xff] }
 0x257   :  { %v5286_v10 = vpop.f32.mrb[15].mxu0  ;;  %v5368_v15 = vpop.f32.mrb[48].mxu1  ;;  %2684 = vmatmul.mubr.f32.gmra.mrb[120].mxu0 %v11299_v21 }
 0x258   :  { %v5287_v39 = vadd.f32 %v5286_v10, %v5285_v29  ;;  %v5369_v27 = vpop.f32.mrb[49].mxu1  ;;  %2688 = vmatprep.mubr.f32.mxu0 %v11300_v0  ;;  %2834 = vmatmul.mubr.f32.gmra.mrb[154].mxu1 %v11253_v56  ;;  %v11304_v29 = vld [vmem:[#allocation63_spill] sm:$0xff] }
 0x259   :  { %v5370_v46 = vadd.f32 %v5369_v27, %v5368_v15  ;;  %2838 = vmatprep.mubr.f32.mxu1 %v11301_v51 }
 0x25a   :  { %v9545_v48 = vadd.f32 %v5367_v40, %v5287_v39  ;;  %v5288_v32 = vpop.f32.mrb[16].mxu0  ;;  %v11305_v39 = vld [vmem:[#allocation68_spill] sm:$0xff] }
 0x25b   :  { %v5289_v36 = vpop.f32.mrb[17].mxu0  ;;  %v5371_v44 = vpop.f32.mrb[50].mxu1  ;;  %2689 = vmatmul.mubr.f32.gmra.mrb[122].mxu0 %v11302_v60 }
 0x25c   :  { %v5290_v58 = vadd.f32 %v5289_v36, %v5288_v32  ;;  %v5372_v11 = vpop.f32.mrb[51].mxu1  ;;  %2693 = vmatprep.mubr.f32.mxu0 %v11303_v62  ;;  %2839 = vmatmul.mubr.f32.gmra.mrb[156].mxu1 %v11304_v29 }
 0x25d   :  { %v5373_v10 = vadd.f32 %v5372_v11, %v5371_v44  ;;  %2843 = vmatprep.mubr.f32.mxu1 %v11261_v1 }
 0x25e   :  { %v9551_v0 = vadd.f32 %v5370_v46, %v5290_v58  ;;  %v5291_v15 = vpop.f32.mrb[18].mxu0  ;;  %v11306_v58 = vld [vmem:[#allocation70_spill] sm:$0xff] }
 0x25f   :  { %v5292_v21 = vpop.f32.mrb[19].mxu0  ;;  %v5374_v40 = vpop.f32.mrb[52].mxu1  ;;  %2694 = vmatmul.mubr.f32.gmra.mrb[124].mxu0 %v11305_v39 }
 0x260   :  { %v5293_v27 = vadd.f32 %v5292_v21, %v5291_v15  ;;  %v5375_v51 = vpop.f32.mrb[53].mxu1  ;;  %2698 = vmatprep.mubr.f32.mxu0 %v11289_v9  ;;  %2844 = vmatmul.mubr.f32.gmra.mrb[158].mxu1 %v11261_v1 }
 0x261   :  { %v5376_v32 = vadd.f32 %v5375_v51, %v5374_v40 }
 0x262   :  { %v9556_v62 = vadd.f32 %v5373_v10, %v5293_v27  ;;  %v5294_v36 = vpop.f32.mrb[20].mxu0 }
 0x263   :  { %v5295_v11 = vpop.f32.mrb[21].mxu0  ;;  %v5377_v44 = vpop.f32.mrb[54].mxu1  ;;  %2699 = vmatmul.mubr.f32.gmra.mrb[126].mxu0 %v11289_v9 }
 0x264   :  { %v5296_v46 = vadd.f32 %v5295_v11, %v5294_v36  ;;  %v5378_v60 = vpop.f32.mrb[55].mxu1  ;;  %2913 = vmatprep.mubr.f32.mxu0 %v11306_v58 }
 0x265   :  { %v5379_v56 = vadd.f32 %v5378_v60, %v5377_v44 }
 0x266   :  { %v9560_v39 = vadd.f32 %v5376_v32, %v5296_v46  ;;  %v5297_v15 = vpop.f32.mrb[22].mxu0 }
 0x267   :  { %v5298_v21 = vpop.f32.mrb[23].mxu0  ;;  %v5380_v29 = vpop.f32.mrb[56].mxu1  ;;  %2914 = vmatmul.mubr.f32.vlgmr.msra.gmra.mrb[128].mxu0 %v11307_v50 }
 0x268   :  { %v5299_v51 = vadd.f32 %v5298_v21, %v5297_v15  ;;  %v5381_v10 = vpop.f32.mrb[57].mxu1  ;;  %2918 = vmatprep.mubr.f32.mxu0 %v8821_v42 }
 0x269   :  { %v5382_v40 = vadd.f32 %v5381_v10, %v5380_v29  ;;  %v11309_v29 = vld [vmem:[#allocation73_spill] sm:$0xff] }
 0x26a   :  { %v9564_v27 = vadd.f32 %v5379_v56, %v5299_v51  ;;  %v5300_v25 = vpop.f32.mrb[24].mxu0 }
 0x26b   :  { %v5301_v36 = vpop.f32.mrb[25].mxu0  ;;  %v5383_v11 = vpop.f32.mrb[58].mxu1  ;;  %2919 = vmatmul.mubr.f32.gmra.mrb[130].mxu0 %v11308_v14 }
 0x26c   :  { %v5302_v44 = vadd.f32 %v5301_v36, %v5300_v25  ;;  %v5384_v32 = vpop.f32.mrb[59].mxu1  ;;  %2923 = vmatprep.mubr.f32.mxu0 %v8859_v5  ;;  %v11310_v36 = vld [vmem:[#allocation74_spill] sm:$0xff] }
 0x26d   :  { %v5385_v46 = vadd.f32 %v5384_v32, %v5383_v11 }
 0x26e   :  { %v9568_v60 = vadd.f32 %v5382_v40, %v5302_v44  ;;  %v5303_v50 = vpop.f32.mrb[26].mxu0 }
 0x26f   :  { %v5304_v58 = vpop.f32.mrb[27].mxu0  ;;  %v5386_v15 = vpop.f32.mrb[60].mxu1  ;;  %2924 = vmatmul.mubr.f32.gmra.mrb[132].mxu0 %v8882_v33 }
 0x270   :  { %v5305_v42 = vadd.f32 %v5304_v58, %v5303_v50  ;;  %v5387_v56 = vpop.f32.mrb[61].mxu1  ;;  %2928 = vmatprep.mubr.f32.mxu0 %v11309_v29 }
 0x271   :  { %v5388_v21 = vadd.f32 %v5387_v56, %v5386_v15 }
 0x272   :  { %v9572_v51 = vadd.f32 %v5385_v46, %v5305_v42  ;;  %v5306_v14 = vpop.f32.mrb[28].mxu0 }
 0x273   :  { %v5307_v25 = vpop.f32.mrb[29].mxu0  ;;  %v5389_v10 = vpop.f32.mrb[62].mxu1  ;;  %2929 = vmatmul.mubr.f32.gmra.mrb[134].mxu0 %v11310_v36 }
 0x274   :  { %v5308_v5 = vadd.f32 %v5307_v25, %v5306_v14  ;;  %v5390_v40 = vpop.f32.mrb[63].mxu1  ;;  %2933 = vmatprep.mubr.f32.mxu0 %v11268_v16  ;;  %v11311_v25 = vld [vmem:[#allocation76_spill] sm:$0xff] }
 0x275   :  { %v5391_v11 = vadd.f32 %v5390_v40, %v5389_v10 }
 0x276   :  { %v9576_v44 = vadd.f32 %v5388_v21, %v5308_v5  ;;  %v5309_v33 = vpop.f32.mrb[30].mxu0 }
 0x277   :  { %v5310_v32 = vpop.f32.mrb[31].mxu0  ;;  %2934 = vmatmul.mubr.f32.gmra.mrb[136].mxu0 %v8958_v30  ;;  %v5504_v50 = vpop.f32.mrb[64].mxu1 }
 0x278   :  { %v5311_v58 = vadd.f32 %v5310_v32, %v5309_v33  ;;  %2938 = vmatprep.mubr.f32.mxu0 %v8973_v8  ;;  %v5505_v46 = vpop.f32.mrb[65].mxu1  ;;  %v11312_v8 = vld [vmem:[#allocation77_spill] sm:$0xff] }
 0x279   :  { %v5506_v15 = vadd.f32 %v5505_v46, %v5504_v50 }
 0x27a   :  { %v9580_v42 = vadd.f32 %v5391_v11, %v5311_v58  ;;  %v5424_v56 = vpop.f32.mrb[32].mxu0 }
 0x27b   :  { %v5425_v29 = vpop.f32.mrb[33].mxu0  ;;  %v5507_v14 = vpop.f32.mrb[66].mxu1  ;;  %2939 = vmatmul.mubr.f32.gmra.mrb[138].mxu0 %v8996_v43 }
 0x27c   :  { %v5426_v16 = vadd.f32 %v5425_v29, %v5424_v56  ;;  %v5508_v21 = vpop.f32.mrb[67].mxu1  ;;  %2943 = vmatprep.mubr.f32.mxu0 %v11311_v25 }
 0x27d   :  { %v5509_v10 = vadd.f32 %v5508_v21, %v5507_v14 }
 0x27e   :  { %v1905_v30 = vadd.f32 %v5426_v16, %v9497_v28  ;;  %v5427_v36 = vpop.f32.mrb[34].mxu0 }
 0x27f   :  { %v5428_v5 = vpop.f32.mrb[35].mxu0  ;;  %v5510_v40 = vpop.f32.mrb[68].mxu1  ;;  %2944 = vmatmul.mubr.f32.gmra.mrb[140].mxu0 %v11312_v8 }
 0x280   :  { %v5429_v33 = vadd.f32 %v5428_v5, %v5427_v36  ;;  %v5511_v11 = vpop.f32.mrb[69].mxu1  ;;  %2948 = vmatprep.mubr.f32.mxu0 %v8726_v6  ;;  %v9587_v32 = vadd.f32 %v5506_v15, %v1905_v30 }
 0x281   :  { %v5512_v50 = vadd.f32 %v5511_v11, %v5510_v40 }
 0x282   :  { %v1910_v43 = vadd.f32 %v5429_v33, %v9509_v20  ;;  %v5430_v58 = vpop.f32.mrb[36].mxu0 }
 0x283   :  { %v5431_v46 = vpop.f32.mrb[37].mxu0  ;;  %v5513_v56 = vpop.f32.mrb[70].mxu1  ;;  %2949 = vmatmul.mubr.f32.gmra.mrb[142].mxu0 %v8726_v6 }
 0x284   :  { %v5432_v28 = vadd.f32 %v5431_v46, %v5430_v58  ;;  %v5514_v29 = vpop.f32.mrb[71].mxu1  ;;  %2953 = vmatprep.mubr.f32.mxu0 %v9042_v31  ;;  %v9592_v14 = vadd.f32 %v5509_v10, %v1910_v43 }
 0x285   :  { %v5515_v16 = vadd.f32 %v5514_v29, %v5513_v56 }
 0x286   :  { %v1915_v21 = vadd.f32 %v5432_v28, %v9515_v63  ;;  %v5433_v25 = vpop.f32.mrb[38].mxu0 }
 0x287   :  { %v5434_v15 = vpop.f32.mrb[39].mxu0  ;;  %v5516_v30 = vpop.f32.mrb[72].mxu1  ;;  %2954 = vmatmul.mubr.f32.gmra.mrb[144].mxu0 %v9050_v52 }
 0x288   :  { %v5435_v20 = vadd.f32 %v5434_v15, %v5433_v25  ;;  %v5517_v36 = vpop.f32.mrb[73].mxu1  ;;  %2958 = vmatprep.mubr.f32.mxu0 %v9056_v47  ;;  %v9597_v5 = vadd.f32 %v5512_v50, %v1915_v21 }
 0x289   :  { %v5518_v40 = vadd.f32 %v5517_v36, %v5516_v30 }
 0x28a   :  { %v1920_v8 = vadd.f32 %v5435_v20, %v9521_v2  ;;  %v5436_v31 = vpop.f32.mrb[40].mxu0 }
 0x28b   :  { %v5437_v10 = vpop.f32.mrb[41].mxu0  ;;  %v5519_v33 = vpop.f32.mrb[74].mxu1  ;;  %2959 = vmatmul.mubr.f32.gmra.mrb[146].mxu0 %v9064_v61 }
 0x28c   :  { %v5438_v63 = vadd.f32 %v5437_v10, %v5436_v31  ;;  %v5520_v11 = vpop.f32.mrb[75].mxu1  ;;  %2963 = vmatprep.mubr.f32.mxu0 %v9070_v26  ;;  %v9602_v43 = vadd.f32 %v5515_v16, %v1920_v8 }
 0x28d   :  { %v5521_v52 = vadd.f32 %v5520_v11, %v5519_v33  ;;  %v11313_v11 = vld [vmem:[#allocation78_spill] sm:$0xff] }
 0x28e   :  { %v1925_v58 = vadd.f32 %v5438_v63, %v9527_v13  ;;  %v5439_v47 = vpop.f32.mrb[42].mxu0 }
 0x28f   :  { %v5440_v50 = vpop.f32.mrb[43].mxu0  ;;  %v5522_v46 = vpop.f32.mrb[76].mxu1  ;;  %2964 = vmatmul.mubr.f32.gmra.mrb[148].mxu0 %v9078_v37 }
 0x290   :  { %v5441_v2 = vadd.f32 %v5440_v50, %v5439_v47  ;;  %v5523_v56 = vpop.f32.mrb[77].mxu1  ;;  %2968 = vmatprep.mubr.f32.mxu0 %v9084_v22  ;;  %v9607_v28 = vadd.f32 %v5518_v40, %v1925_v58 }
 0x291   :  { %v5524_v61 = vadd.f32 %v5523_v56, %v5522_v46  ;;  %v11314_v46 = vld [vmem:[#allocation79_spill] sm:$0xff] }
 0x292   :  { %v1930_v29 = vadd.f32 %v5441_v2, %v9533_v4  ;;  %v5442_v26 = vpop.f32.mrb[44].mxu0 }
 0x293   :  { %v5443_v16 = vpop.f32.mrb[45].mxu0  ;;  %v5525_v21 = vpop.f32.mrb[78].mxu1  ;;  %2969 = vmatmul.mubr.f32.gmra.mrb[150].mxu0 %v9092_v23 }
 0x294   :  { %v5444_v13 = vadd.f32 %v5443_v16, %v5442_v26  ;;  %v5526_v25 = vpop.f32.mrb[79].mxu1  ;;  %2973 = vmatprep.mubr.f32.mxu0 %v9098_v45  ;;  %v9612_v15 = vadd.f32 %v5521_v52, %v1930_v29 }
 0x295   :  { %v5527_v37 = vadd.f32 %v5526_v25, %v5525_v21 }
 0x296   :  { %v1935_v30 = vadd.f32 %v5444_v13, %v9539_v41  ;;  %v5445_v22 = vpop.f32.mrb[46].mxu0 }
 0x297   :  { %v5446_v20 = vpop.f32.mrb[47].mxu0  ;;  %2974 = vmatmul.mubr.f32.gmra.mrb[152].mxu0 %v9106_v49  ;;  %v5528_v36 = vpop.f32.mrb[80].mxu1 }
 0x298   :  { %v5447_v4 = vadd.f32 %v5446_v20, %v5445_v22  ;;  %2978 = vmatprep.mubr.f32.mxu0 %v9112_v38  ;;  %v5529_v40 = vpop.f32.mrb[81].mxu1  ;;  %v9617_v8 = vadd.f32 %v5524_v61, %v1935_v30 }
 0x299   :  { %v5530_v23 = vadd.f32 %v5529_v40, %v5528_v36 }
 0x29a   :  { %v1940_v31 = vadd.f32 %v5447_v4, %v9545_v48  ;;  %v5448_v45 = vpop.f32.mrb[48].mxu0 }
 0x29b   :  { %v5449_v10 = vpop.f32.mrb[49].mxu0  ;;  %v5531_v33 = vpop.f32.mrb[82].mxu1  ;;  %2979 = vmatmul.mubr.f32.gmra.mrb[154].mxu0 %v9120_v19 }
 0x29c   :  { %v5450_v41 = vadd.f32 %v5449_v10, %v5448_v45  ;;  %v5532_v63 = vpop.f32.mrb[83].mxu1  ;;  %2983 = vmatprep.mubr.f32.mxu0 %v11313_v11  ;;  %v9622_v49 = vadd.f32 %v5527_v37, %v1940_v31 }
 0x29d   :  { %v5533_v52 = vadd.f32 %v5532_v63, %v5531_v33 }
 0x29e   :  { %v1945_v38 = vadd.f32 %v5450_v41, %v9551_v0  ;;  %v5451_v58 = vpop.f32.mrb[50].mxu0 }
 0x29f   :  { %v5452_v47 = vpop.f32.mrb[51].mxu0  ;;  %v5534_v50 = vpop.f32.mrb[84].mxu1  ;;  %2984 = vmatmul.mubr.f32.gmra.mrb[156].mxu0 %v11314_v46 }
 0x2a0   :  { %v5453_v48 = vadd.f32 %v5452_v47, %v5451_v58  ;;  %v5535_v2 = vpop.f32.mrb[85].mxu1  ;;  %2988 = vmatprep.mubr.f32.mxu0 %v8726_v6  ;;  %v9627_v56 = vadd.f32 %v5530_v23, %v1945_v38 }
 0x2a1   :  { %v5536_v19 = vadd.f32 %v5535_v2, %v5534_v50 }
 0x2a2   :  { %v1950_v61 = vadd.f32 %v5453_v48, %v9556_v62  ;;  %v5454_v29 = vpop.f32.mrb[52].mxu0 }
 0x2a3   :  { %v5455_v26 = vpop.f32.mrb[53].mxu0  ;;  %v5537_v16 = vpop.f32.mrb[86].mxu1  ;;  %2989 = vmatmul.mubr.f32.gmra.mrb[158].mxu0 %v8726_v6 }
 0x2a4   :  { %v5456_v0 = vadd.f32 %v5455_v26, %v5454_v29  ;;  %v5538_v21 = vpop.f32.mrb[87].mxu1  ;;  %v9631_v13 = vadd.f32 %v5533_v52, %v1950_v61 }
 0x2a5   :  { %v5539_v25 = vadd.f32 %v5538_v21, %v5537_v16 }
 0x2a6   :  { %v1955_v37 = vadd.f32 %v5456_v0, %v9560_v39  ;;  %v5457_v30 = vpop.f32.mrb[54].mxu0 }
 0x2a7   :  { %v5458_v22 = vpop.f32.mrb[55].mxu0  ;;  %v5540_v20 = vpop.f32.mrb[88].mxu1 }
 0x2a8   :  { %v5459_v36 = vadd.f32 %v5458_v22, %v5457_v30  ;;  %v5541_v4 = vpop.f32.mrb[89].mxu1  ;;  %v9634_v40 = vadd.f32 %v5536_v19, %v1955_v37 }
 0x2a9   :  { %v5542_v62 = vadd.f32 %v5541_v4, %v5540_v20 }
 0x2aa   :  { %v1960_v23 = vadd.f32 %v5459_v36, %v9564_v27  ;;  %v5460_v31 = vpop.f32.mrb[56].mxu0 }
 0x2ab   :  { %v5461_v45 = vpop.f32.mrb[57].mxu0  ;;  %v5543_v10 = vpop.f32.mrb[90].mxu1 }
 0x2ac   :  { %v5462_v33 = vadd.f32 %v5461_v45, %v5460_v31  ;;  %v5544_v41 = vpop.f32.mrb[91].mxu1  ;;  %v9637_v63 = vadd.f32 %v5539_v25, %v1960_v23 }
 0x2ad   :  { %v5545_v11 = vadd.f32 %v5544_v41, %v5543_v10 }
 0x2ae   :  { %v1965_v39 = vadd.f32 %v5462_v33, %v9568_v60  ;;  %v5463_v52 = vpop.f32.mrb[58].mxu0 }
 0x2af   :  { %v5464_v38 = vpop.f32.mrb[59].mxu0  ;;  %v5546_v58 = vpop.f32.mrb[92].mxu1 }
 0x2b0   :  { %v5465_v47 = vadd.f32 %v5464_v38, %v5463_v52  ;;  %v5547_v50 = vpop.f32.mrb[93].mxu1  ;;  %v9640_v46 = vadd.f32 %v5542_v62, %v1965_v39 }
 0x2b1   :  { %v5548_v48 = vadd.f32 %v5547_v50, %v5546_v58 }
 0x2b2   :  { %v1970_v27 = vadd.f32 %v5465_v47, %v9572_v51  ;;  %v5466_v2 = vpop.f32.mrb[60].mxu0 }
 0x2b3   :  { %v5467_v19 = vpop.f32.mrb[61].mxu0  ;;  %v5549_v61 = vpop.f32.mrb[94].mxu1 }
 0x2b4   :  { %v5468_v29 = vadd.f32 %v5467_v19, %v5466_v2  ;;  %v5550_v26 = vpop.f32.mrb[95].mxu1  ;;  %v9643_v16 = vadd.f32 %v5545_v11, %v1970_v27 }
 0x2b5   :  { %v5551_v0 = vadd.f32 %v5550_v26, %v5549_v61 }
 0x2b6   :  { %v1975_v60 = vadd.f32 %v5468_v29, %v9576_v44  ;;  %v5469_v21 = vpop.f32.mrb[62].mxu0 }
 0x2b7   :  { %v5470_v25 = vpop.f32.mrb[63].mxu0  ;;  %v5664_v37 = vpop.f32.mrb[96].mxu1 }
 0x2b8   :  { %v5471_v30 = vadd.f32 %v5470_v25, %v5469_v21  ;;  %v5665_v22 = vpop.f32.mrb[97].mxu1  ;;  %v9646_v20 = vadd.f32 %v5548_v48, %v1975_v60 }
 0x2b9   :  { %v5666_v36 = vadd.f32 %v5665_v22, %v5664_v37 }
 0x2ba   :  { %v1980_v51 = vadd.f32 %v5471_v30, %v9580_v42  ;;  %v5584_v4 = vpop.f32.mrb[64].mxu0 }
 0x2bb   :  { %v5585_v62 = vpop.f32.mrb[65].mxu0  ;;  %v5667_v23 = vpop.f32.mrb[98].mxu1 }
 0x2bc   :  { %v5586_v31 = vadd.f32 %v5585_v62, %v5584_v4  ;;  %v5668_v45 = vpop.f32.mrb[99].mxu1  ;;  %v9649_v10 = vadd.f32 %v5551_v0, %v1980_v51 }
 0x2bd   :  { %v5669_v33 = vadd.f32 %v5668_v45, %v5667_v23 }
 0x2be   :  { %v2195_v44 = vadd.f32 %v5586_v31, %v9587_v32  ;;  %v5587_v41 = vpop.f32.mrb[66].mxu0 }
 0x2bf   :  { %v5588_v11 = vpop.f32.mrb[67].mxu0  ;;  %v5670_v39 = vpop.f32.mrb[100].mxu1 }
 0x2c0   :  { %v9652_v52 = vadd.f32 %v5666_v36, %v2195_v44  ;;  %v5589_v38 = vadd.f32 %v5588_v11, %v5587_v41  ;;  %v5671_v58 = vpop.f32.mrb[101].mxu1 }
 0x2c1   :  { %v5672_v47 = vadd.f32 %v5671_v58, %v5670_v39 }
 0x2c2   :  { %v2200_v42 = vadd.f32 %v5589_v38, %v9592_v14  ;;  %v5590_v50 = vpop.f32.mrb[68].mxu0 }
 0x2c3   :  { %v5591_v48 = vpop.f32.mrb[69].mxu0  ;;  %v5673_v27 = vpop.f32.mrb[102].mxu1 }
 0x2c4   :  { %v9655_v2 = vadd.f32 %v5669_v33, %v2200_v42  ;;  %v5592_v19 = vadd.f32 %v5591_v48, %v5590_v50  ;;  %v5674_v61 = vpop.f32.mrb[103].mxu1 }
 0x2c5   :  { %v5675_v29 = vadd.f32 %v5674_v61, %v5673_v27 }
 0x2c6   :  { %v2205_v32 = vadd.f32 %v5592_v19, %v9597_v5  ;;  %v5593_v26 = vpop.f32.mrb[70].mxu0 }
 0x2c7   :  { %v5594_v0 = vpop.f32.mrb[71].mxu0  ;;  %v5676_v60 = vpop.f32.mrb[104].mxu1 }
 0x2c8   :  { %v9658_v21 = vadd.f32 %v5672_v47, %v2205_v32  ;;  %v5595_v25 = vadd.f32 %v5594_v0, %v5593_v26  ;;  %v5677_v37 = vpop.f32.mrb[105].mxu1 }
 0x2c9   :  { %v5678_v30 = vadd.f32 %v5677_v37, %v5676_v60 }
 0x2ca   :  { %v2210_v14 = vadd.f32 %v5595_v25, %v9602_v43  ;;  %v5596_v22 = vpop.f32.mrb[72].mxu0 }
 0x2cb   :  { %v5597_v36 = vpop.f32.mrb[73].mxu0  ;;  %v5679_v51 = vpop.f32.mrb[106].mxu1 }
 0x2cc   :  { %v9661_v4 = vadd.f32 %v5675_v29, %v2210_v14  ;;  %v5598_v62 = vadd.f32 %v5597_v36, %v5596_v22  ;;  %v5680_v23 = vpop.f32.mrb[107].mxu1 }
 0x2cd   :  { %v5681_v31 = vadd.f32 %v5680_v23, %v5679_v51 }
 0x2ce   :  { %v2215_v5 = vadd.f32 %v5598_v62, %v9607_v28  ;;  %v5599_v45 = vpop.f32.mrb[74].mxu0 }
 0x2cf   :  { %v5600_v33 = vpop.f32.mrb[75].mxu0  ;;  %v5682_v44 = vpop.f32.mrb[108].mxu1 }
 0x2d0   :  { %v9664_v41 = vadd.f32 %v5678_v30, %v2215_v5  ;;  %v5601_v11 = vadd.f32 %v5600_v33, %v5599_v45  ;;  %v5683_v39 = vpop.f32.mrb[109].mxu1 }
 0x2d1   :  { %v5684_v38 = vadd.f32 %v5683_v39, %v5682_v44 }
 0x2d2   :  { %v2220_v43 = vadd.f32 %v5601_v11, %v9612_v15  ;;  %v5602_v58 = vpop.f32.mrb[76].mxu0 }
 0x2d3   :  { %v5603_v47 = vpop.f32.mrb[77].mxu0  ;;  %v5685_v42 = vpop.f32.mrb[110].mxu1 }
 0x2d4   :  { %v9667_v50 = vadd.f32 %v5681_v31, %v2220_v43  ;;  %v5604_v48 = vadd.f32 %v5603_v47, %v5602_v58  ;;  %v5686_v27 = vpop.f32.mrb[111].mxu1 }
 0x2d5   :  { %v5687_v19 = vadd.f32 %v5686_v27, %v5685_v42 }
 0x2d6   :  { %v2225_v28 = vadd.f32 %v5604_v48, %v9617_v8  ;;  %v5605_v61 = vpop.f32.mrb[78].mxu0 }
 0x2d7   :  { %v5606_v29 = vpop.f32.mrb[79].mxu0  ;;  %v5688_v32 = vpop.f32.mrb[112].mxu1 }
 0x2d8   :  { %v9670_v26 = vadd.f32 %v5684_v38, %v2225_v28  ;;  %v5607_v0 = vadd.f32 %v5606_v29, %v5605_v61  ;;  %v5689_v60 = vpop.f32.mrb[113].mxu1 }
 0x2d9   :  { %v5690_v25 = vadd.f32 %v5689_v60, %v5688_v32 }
 0x2da   :  { %v2230_v15 = vadd.f32 %v5607_v0, %v9622_v49  ;;  %v5608_v37 = vpop.f32.mrb[80].mxu0 }
 0x2db   :  { %v5609_v30 = vpop.f32.mrb[81].mxu0  ;;  %v5691_v14 = vpop.f32.mrb[114].mxu1 }
 0x2dc   :  { %v9673_v22 = vadd.f32 %v5687_v19, %v2230_v15  ;;  %v5610_v36 = vadd.f32 %v5609_v30, %v5608_v37  ;;  %v5692_v51 = vpop.f32.mrb[115].mxu1 }
 0x2dd   :  { %v5693_v62 = vadd.f32 %v5692_v51, %v5691_v14 }
 0x2de   :  { %v2235_v8 = vadd.f32 %v5610_v36, %v9627_v56  ;;  %v5611_v23 = vpop.f32.mrb[82].mxu0 }
 0x2df   :  { %v5612_v31 = vpop.f32.mrb[83].mxu0  ;;  %v5694_v5 = vpop.f32.mrb[116].mxu1 }
 0x2e0   :  { %v9676_v45 = vadd.f32 %v5690_v25, %v2235_v8  ;;  %v5613_v33 = vadd.f32 %v5612_v31, %v5611_v23  ;;  %v5695_v44 = vpop.f32.mrb[117].mxu1 }
 0x2e1   :  { %v5696_v11 = vadd.f32 %v5695_v44, %v5694_v5 }
 0x2e2   :  { %v2240_v49 = vadd.f32 %v5613_v33, %v9631_v13  ;;  %v5614_v39 = vpop.f32.mrb[84].mxu0 }
 0x2e3   :  { %v5615_v38 = vpop.f32.mrb[85].mxu0  ;;  %v5697_v43 = vpop.f32.mrb[118].mxu1 }
 0x2e4   :  { %v9679_v58 = vadd.f32 %v5693_v62, %v2240_v49  ;;  %v5616_v47 = vadd.f32 %v5615_v38, %v5614_v39  ;;  %v5698_v42 = vpop.f32.mrb[119].mxu1 }
 0x2e5   :  { %v5699_v48 = vadd.f32 %v5698_v42, %v5697_v43  ;;  %v5071_v42 = vld [vmem:[%s11049_s11 + $0x180] sm:$0xff] }
 0x2e6   :  { %v2245_v56 = vadd.f32 %v5616_v47, %v9634_v40  ;;  %v5617_v27 = vpop.f32.mrb[86].mxu0  ;;  %v5088_v47 = vld [vmem:[%s11049_s11 + $0x208] sm:$0xff] }
 0x2e7   :  { %v5618_v19 = vpop.f32.mrb[87].mxu0  ;;  %v5700_v28 = vpop.f32.mrb[120].mxu1 }
 0x2e8   :  { %v9682_v61 = vadd.f32 %v5696_v11, %v2245_v56  ;;  %v5619_v29 = vadd.f32 %v5618_v19, %v5617_v27  ;;  %v5701_v32 = vpop.f32.mrb[121].mxu1  ;;  %v5072_v56 = vld [vmem:[%s11049_s11 + $0x188] sm:$0xff]  ;;  %v5103_v27 = vld [vmem:[%s11049_s11 + $0x280] sm:$0xff] }
 0x2e9   :  { %v5702_v0 = vadd.f32 %v5701_v32, %v5700_v28  ;;  %v5104_v19 = vld [vmem:[%s11049_s11 + $0x288] sm:$0xff]  ;;  %v6922_v32 = vpack.c.bf16 %v5072_v56, %v5071_v42 }
 0x2ea   :  { %v2250_v13 = vadd.f32 %v5619_v29, %v9637_v63  ;;  %v5620_v60 = vpop.f32.mrb[88].mxu0 }
 0x2eb   :  { %v5621_v25 = vpop.f32.mrb[89].mxu0  ;;  %v5703_v15 = vpop.f32.mrb[122].mxu1 }
 0x2ec   :  { %v9685_v37 = vadd.f32 %v5699_v48, %v2250_v13  ;;  %v5622_v30 = vadd.f32 %v5621_v25, %v5620_v60  ;;  %v5704_v14 = vpop.f32.mrb[123].mxu1 }
 0x2ed   :  { %v5705_v36 = vadd.f32 %v5704_v14, %v5703_v15 }
 0x2ee   :  { %v2255_v40 = vadd.f32 %v5622_v30, %v9640_v46  ;;  %v5623_v51 = vpop.f32.mrb[90].mxu0  ;;  %v5087_v46 = vld [vmem:[%s11049_s11 + $0x200] sm:$0xff] }
 0x2ef   :  { %v5624_v62 = vpop.f32.mrb[91].mxu0  ;;  %v5706_v8 = vpop.f32.mrb[124].mxu1  ;;  %v6920_v48 = vpack.c.bf16 %v5088_v47, %v5087_v46 }
 0x2f0   :  { %v9688_v23 = vadd.f32 %v5702_v0, %v2255_v40  ;;  %v5625_v31 = vadd.f32 %v5624_v62, %v5623_v51  ;;  %v5707_v5 = vpop.f32.mrb[125].mxu1  ;;  %v6952_v0 = vpack.c.bf16 %v5104_v19, %v5103_v27 }
 0x2f1   :  { %v5708_v33 = vadd.f32 %v5707_v5, %v5706_v8  ;;  %6921 = vmatprep.subr.bf16.mxu1 %v6920_v48  ;;  %v5089_v5 = vld [vmem:[%s11049_s11 + $0x210] sm:$0xff] }
 0x2f2   :  { %v2260_v63 = vadd.f32 %v5625_v31, %v9643_v16  ;;  %v5626_v44 = vpop.f32.mrb[92].mxu0  ;;  %6923 = vmatpush3.bf16.msra.mxu1 %v6922_v32  ;;  %6953 = vmatprep.subr.bf16.mxu0 %v6952_v0 }
 0x2f3   :  { %v5627_v11 = vpop.f32.mrb[93].mxu0  ;;  %v5709_v49 = vpop.f32.mrb[126].mxu1  ;;  %6955 = vmatpush3.bf16.msra.mxu0 %v6952_v0 }
 0x2f4   :  { %v9691_v39 = vadd.f32 %v5705_v36, %v2260_v63  ;;  %v5628_v38 = vadd.f32 %v5627_v11, %v5626_v44  ;;  %v5710_v43 = vpop.f32.mrb[127].mxu1  ;;  %v5073_v63 = vld [vmem:[%s11049_s11 + $0x190] sm:$0xff]  ;;  %v5074_v11 = vld [vmem:[%s11049_s11 + $0x198] sm:$0xff] }
 0x2f5   :  { %v5711_v16 = vadd.f32 %v5710_v43, %v5709_v49  ;;  %v5105_v49 = vld [vmem:[%s11049_s11 + $0x290] sm:$0xff]  ;;  %v6926_v47 = vpack.c.bf16 %v5074_v11, %v5073_v63 }
 0x2f6   :  { %v2265_v28 = vadd.f32 %v5628_v38, %v9646_v20  ;;  %v5629_v29 = vpop.f32.mrb[94].mxu0  ;;  %v5106_v38 = vld [vmem:[%s11049_s11 + $0x298] sm:$0xff] }
 0x2f7   :  { %v5630_v13 = vpop.f32.mrb[95].mxu0  ;;  %v5824_v60 = vpop.f32.mrb[128].mxu1  ;;  %v6956_v42 = vpack.c.bf16 %v5106_v38, %v5105_v49 }
 0x2f8   :  { %v9712_v25 = vadd.f32 %v5708_v33, %v2265_v28  ;;  %v5631_v15 = vadd.f32 %v5630_v13, %v5629_v29  ;;  %v5825_v30 = vpop.f32.mrb[129].mxu1  ;;  %v5090_v33 = vld [vmem:[%s11049_s11 + $0x218] sm:$0xff] }
 0x2f9   :  { %v5826_v14 = vadd.f32 %v5825_v30, %v5824_v60  ;;  %v6924_v44 = vpack.c.bf16 %v5090_v33, %v5089_v5  ;;  %6957 = vmatprep.subr.bf16.mxu0 %v6956_v42 }
 0x2fa   :  { %v2270_v36 = vadd.f32 %v5631_v15, %v9649_v10  ;;  %v5744_v40 = vpop.f32.mrb[96].mxu0  ;;  %6959 = vmatpush3.bf16.msra.mxu0 %v6956_v42 }
 0x2fb   :  { %v5745_v51 = vpop.f32.mrb[97].mxu0  ;;  %v5827_v62 = vpop.f32.mrb[130].mxu1  ;;  %6925 = vmatprep.subr.bf16.mxu1 %v6924_v44 }
 0x2fc   :  { %v9715_v20 = vadd.f32 %v5711_v16, %v2270_v36  ;;  %v5746_v8 = vadd.f32 %v5745_v51, %v5744_v40  ;;  %v5828_v31 = vpop.f32.mrb[131].mxu1  ;;  %6927 = vmatpush3.bf16.msra.mxu1 %v6926_v47 }
 0x2fd   :  { %v5829_v10 = vadd.f32 %v5828_v31, %v5827_v62 }
 0x2fe   :  { %v9735_v43 = vadd.f32 %v5826_v14, %v5746_v8  ;;  %v5747_v46 = vpop.f32.mrb[98].mxu0 }
 0x2ff   :  { %v5748_v16 = vpop.f32.mrb[99].mxu0  ;;  %v5830_v48 = vpop.f32.mrb[132].mxu1 }
 0x300   :  { %v5749_v56 = vadd.f32 %v5748_v16, %v5747_v46  ;;  %v5831_v27 = vpop.f32.mrb[133].mxu1 }
 0x301   :  { %v5832_v19 = vadd.f32 %v5831_v27, %v5830_v48 }
 0x302   :  { %v9737_v28 = vadd.f32 %v5829_v10, %v5749_v56  ;;  %v5750_v29 = vpop.f32.mrb[100].mxu0 }
 0x303   :  { %v5751_v32 = vpop.f32.mrb[101].mxu0  ;;  %v5833_v0 = vpop.f32.mrb[134].mxu1 }
 0x304   :  { %v5752_v13 = vadd.f32 %v5751_v32, %v5750_v29  ;;  %v5834_v60 = vpop.f32.mrb[135].mxu1 }
 0x305   :  { %v5835_v15 = vadd.f32 %v5834_v60, %v5833_v0 }
 0x306   :  { %v9739_v30 = vadd.f32 %v5832_v19, %v5752_v13  ;;  %v5753_v14 = vpop.f32.mrb[102].mxu0 }
 0x307   :  { %v5754_v36 = vpop.f32.mrb[103].mxu0  ;;  %v5836_v40 = vpop.f32.mrb[136].mxu1 }
 0x308   :  { %v5755_v51 = vadd.f32 %v5754_v36, %v5753_v14  ;;  %v5837_v62 = vpop.f32.mrb[137].mxu1 }
 0x309   :  { %v5838_v8 = vadd.f32 %v5837_v62, %v5836_v40 }
 0x30a   :  { %v9741_v31 = vadd.f32 %v5835_v15, %v5755_v51  ;;  %v5756_v5 = vpop.f32.mrb[104].mxu0 }
 0x30b   :  { %v5757_v33 = vpop.f32.mrb[105].mxu0  ;;  %v5839_v63 = vpop.f32.mrb[138].mxu1 }
 0x30c   :  { %v5758_v10 = vadd.f32 %v5757_v33, %v5756_v5  ;;  %v5840_v44 = vpop.f32.mrb[139].mxu1 }
 0x30d   :  { %v5841_v11 = vadd.f32 %v5840_v44, %v5839_v63 }
 0x30e   :  { %v9743_v49 = vadd.f32 %v5838_v8, %v5758_v10  ;;  %v5759_v38 = vpop.f32.mrb[106].mxu0 }
 0x30f   :  { %v5760_v46 = vpop.f32.mrb[107].mxu0  ;;  %v5842_v47 = vpop.f32.mrb[140].mxu1 }
 0x310   :  { %v5761_v42 = vadd.f32 %v5760_v46, %v5759_v38  ;;  %v5843_v16 = vpop.f32.mrb[141].mxu1 }
 0x311   :  { %v5844_v48 = vadd.f32 %v5843_v16, %v5842_v47 }
 0x312   :  { %v9745_v56 = vadd.f32 %v5841_v11, %v5761_v42  ;;  %v5762_v27 = vpop.f32.mrb[108].mxu0 }
 0x313   :  { %v5763_v19 = vpop.f32.mrb[109].mxu0  ;;  %v5845_v29 = vpop.f32.mrb[142].mxu1 }
 0x314   :  { %v5764_v32 = vadd.f32 %v5763_v19, %v5762_v27  ;;  %v5846_v0 = vpop.f32.mrb[143].mxu1 }
 0x315   :  { %v5847_v13 = vadd.f32 %v5846_v0, %v5845_v29 }
 0x316   :  { %v9747_v60 = vadd.f32 %v5844_v48, %v5764_v32  ;;  %v5765_v15 = vpop.f32.mrb[110].mxu0 }
 0x317   :  { %v5766_v14 = vpop.f32.mrb[111].mxu0  ;;  %v5848_v36 = vpop.f32.mrb[144].mxu1 }
 0x318   :  { %v5767_v40 = vadd.f32 %v5766_v14, %v5765_v15  ;;  %v5849_v51 = vpop.f32.mrb[145].mxu1 }
 0x319   :  { %v5850_v62 = vadd.f32 %v5849_v51, %v5848_v36 }
 0x31a   :  { %v9749_v8 = vadd.f32 %v5847_v13, %v5767_v40  ;;  %v5768_v5 = vpop.f32.mrb[112].mxu0 }
 0x31b   :  { %v5769_v33 = vpop.f32.mrb[113].mxu0  ;;  %v5851_v63 = vpop.f32.mrb[146].mxu1 }
 0x31c   :  { %v5770_v10 = vadd.f32 %v5769_v33, %v5768_v5  ;;  %v5852_v44 = vpop.f32.mrb[147].mxu1  ;;  %v5091_v5 = vld [vmem:[%s11049_s11 + $0x220] sm:$0xff]  ;;  %v5092_v33 = vld [vmem:[%s11049_s11 + $0x228] sm:$0xff] }
 0x31d   :  { %v5853_v11 = vadd.f32 %v5852_v44, %v5851_v63  ;;  %v5075_v63 = vld [vmem:[%s11049_s11 + $0x1a0] sm:$0xff] }
 0x31e   :  { %v9751_v38 = vadd.f32 %v5850_v62, %v5770_v10  ;;  %v5771_v46 = vpop.f32.mrb[114].mxu0 }
 0x31f   :  { %v5772_v47 = vpop.f32.mrb[115].mxu0  ;;  %v5854_v42 = vpop.f32.mrb[148].mxu1 }
 0x320   :  { %v5773_v16 = vadd.f32 %v5772_v47, %v5771_v46  ;;  %v5855_v48 = vpop.f32.mrb[149].mxu1  ;;  %v5076_v46 = vld [vmem:[%s11049_s11 + $0x1a8] sm:$0xff]  ;;  %v5107_v47 = vld [vmem:[%s11049_s11 + $0x2a0] sm:$0xff] }
 0x321   :  { %v5856_v27 = vadd.f32 %v5855_v48, %v5854_v42  ;;  %v5108_v42 = vld [vmem:[%s11049_s11 + $0x2a8] sm:$0xff]  ;;  %v6930_v48 = vpack.c.bf16 %v5076_v46, %v5075_v63  ;;  %v5079_v46 = vld [vmem:[%s11049_s11 + $0x1c0] sm:$0xff] }
 0x322   :  { %v9753_v19 = vadd.f32 %v5853_v11, %v5773_v16  ;;  %v5774_v29 = vpop.f32.mrb[116].mxu0  ;;  %v6928_v11 = vpack.c.bf16 %v5092_v33, %v5091_v5  ;;  %v5110_v5 = vld [vmem:[%s11049_s11 + $0x2b8] sm:$0xff] }
 0x323   :  { %v5775_v32 = vpop.f32.mrb[117].mxu0  ;;  %v5857_v0 = vpop.f32.mrb[150].mxu1 }
 0x324   :  { %v5776_v13 = vadd.f32 %v5775_v32, %v5774_v29  ;;  %v5858_v15 = vpop.f32.mrb[151].mxu1  ;;  %v5093_v29 = vld [vmem:[%s11049_s11 + $0x230] sm:$0xff]  ;;  %v5094_v32 = vld [vmem:[%s11049_s11 + $0x238] sm:$0xff]  ;;  %6929 = vmatprep.subr.bf16.mxu1 %v6928_v11  ;;  %v5096_v11 = vld [vmem:[%s11049_s11 + $0x248] sm:$0xff] }
 0x325   :  { %v5859_v14 = vadd.f32 %v5858_v15, %v5857_v0  ;;  %v5077_v0 = vld [vmem:[%s11049_s11 + $0x1b0] sm:$0xff]  ;;  %6931 = vmatpush3.bf16.msra.mxu1 %v6930_v48 }
 0x326   :  { %v9755_v36 = vadd.f32 %v5856_v27, %v5776_v13  ;;  %v5777_v40 = vpop.f32.mrb[118].mxu0  ;;  %v6960_v27 = vpack.c.bf16 %v5108_v42, %v5107_v47 }
 0x327   :  { %v5778_v51 = vpop.f32.mrb[119].mxu0  ;;  %v5860_v62 = vpop.f32.mrb[152].mxu1 }
 0x328   :  { %v5779_v10 = vadd.f32 %v5778_v51, %v5777_v40  ;;  %v5861_v44 = vpop.f32.mrb[153].mxu1  ;;  %v6932_v40 = vpack.c.bf16 %v5094_v32, %v5093_v29  ;;  %v5078_v51 = vld [vmem:[%s11049_s11 + $0x1b8] sm:$0xff]  ;;  %6961 = vmatprep.subr.bf16.mxu0 %v6960_v27  ;;  %v5080_v29 = vld [vmem:[%s11049_s11 + $0x1c8] sm:$0xff]  ;;  %v5111_v32 = vld [vmem:[%s11049_s11 + $0x2c0] sm:$0xff] }
 0x329   :  { %v5862_v16 = vadd.f32 %v5861_v44, %v5860_v62  ;;  %v5109_v62 = vld [vmem:[%s11049_s11 + $0x2b0] sm:$0xff]  ;;  %v5095_v44 = vld [vmem:[%s11049_s11 + $0x240] sm:$0xff]  ;;  %6963 = vmatpush3.bf16.msra.mxu0 %v6960_v27 }
 0x32a   :  { %v9784_v13 = vadd.f32 %v5859_v14, %v5779_v10  ;;  %v5780_v15 = vpop.f32.mrb[120].mxu0  ;;  %v6934_v14 = vpack.c.bf16 %v5078_v51, %v5077_v0  ;;  %v6964_v10 = vpack.c.bf16 %v5110_v5, %v5109_v62  ;;  %6933 = vmatprep.subr.bf16.mxu1 %v6932_v40  ;;  %v6936_v48 = vpack.c.bf16 %v5096_v11, %v5095_v44  ;;  %v5112_v0 = vld [vmem:[%s11049_s11 + $0x2c8] sm:$0xff]  ;;  %v5097_v27 = vld [vmem:[%s11049_s11 + $0x250] sm:$0xff] }
 0x32b   :  { %v5781_v33 = vpop.f32.mrb[121].mxu0  ;;  %v5863_v63 = vpop.f32.mrb[154].mxu1  ;;  %v6968_v62 = vpack.c.bf16 %v5112_v0, %v5111_v32 }
 0x32c   :  { %v5782_v47 = vadd.f32 %v5781_v33, %v5780_v15  ;;  %v5864_v42 = vpop.f32.mrb[155].mxu1  ;;  %6965 = vmatprep.subr.bf16.mxu0 %v6964_v10  ;;  %v5098_v15 = vld [vmem:[%s11049_s11 + $0x258] sm:$0xff]  ;;  %v5113_v33 = vld [vmem:[%s11049_s11 + $0x2d0] sm:$0xff]  ;;  %6935 = vmatpush3.bf16.msra.mxu1 %v6934_v14  ;;  %v5099_v14 = vld [vmem:[%s11049_s11 + $0x260] sm:$0xff] }
 0x32d   :  { %v5865_v51 = vadd.f32 %v5864_v42, %v5863_v63  ;;  %v5114_v63 = vld [vmem:[%s11049_s11 + $0x2d8] sm:$0xff]  ;;  %v6938_v42 = vpack.c.bf16 %v5080_v29, %v5079_v46  ;;  %6967 = vmatpush3.bf16.msra.mxu0 %v6964_v10  ;;  %6937 = vmatprep.subr.bf16.mxu1 %v6936_v48  ;;  %v6940_v12 = vpack.c.bf16 %v5098_v15, %v5097_v27  ;;  %v5100_v10 = vld [vmem:[%s11049_s11 + $0x268] sm:$0xff]  ;;  %v5115_v29 = vld [vmem:[%s11049_s11 + $0x2e0] sm:$0xff] }
 0x32e   :  { %v9819_v40 = vadd.f32 %v5862_v16, %v5782_v47  ;;  %v5783_v5 = vpop.f32.mrb[122].mxu0  ;;  %v5081_v16 = vld [vmem:[%s11049_s11 + $0x1d0] sm:$0xff]  ;;  %v5082_v47 = vld [vmem:[%s11049_s11 + $0x1d8] sm:$0xff]  ;;  %6969 = vmatprep.subr.bf16.mxu0 %v6968_v62  ;;  %v6972_v59 = vpack.c.bf16 %v5114_v63, %v5113_v33  ;;  %v5116_v27 = vld [vmem:[%s11049_s11 + $0x2e8] sm:$0xff] }
 0x32f   :  { %v5784_v44 = vpop.f32.mrb[123].mxu0  ;;  %v5866_v11 = vpop.f32.mrb[156].mxu1  ;;  %v6942_v33 = vpack.c.bf16 %v5082_v47, %v5081_v16  ;;  %v6976_v17 = vpack.c.bf16 %v5116_v27, %v5115_v29  ;;  %v5117_v47 = vld [vmem:[%s11049_s11 + $0x2f0] sm:$0xff] }
 0x330   :  { %v5785_v32 = vadd.f32 %v5784_v44, %v5783_v5  ;;  %v5867_v0 = vpop.f32.mrb[157].mxu1  ;;  %6939 = vmatpush3.bf16.msra.mxu1 %v6938_v42  ;;  %v5101_v42 = vld [vmem:[%s11049_s11 + $0x270] sm:$0xff] }
 0x331   :  { %v5868_v18 = vadd.f32 %v5867_v0, %v5866_v11  ;;  %6971 = vmatpush3.bf16.msra.mxu0 %v6968_v62  ;;  %6941 = vmatprep.subr.bf16.mxu1 %v6940_v12  ;;  %v6944_v11 = vpack.c.bf16 %v5100_v10, %v5099_v14  ;;  %v5102_v12 = vld [vmem:[%s11049_s11 + $0x278] sm:$0xff] }
 0x332   :  { %v9839_v46 = vadd.f32 %v5865_v51, %v5785_v32  ;;  %v5786_v48 = vpop.f32.mrb[124].mxu0  ;;  %v5083_v51 = vld [vmem:[%s11049_s11 + $0x1e0] sm:$0xff]  ;;  %v5084_v32 = vld [vmem:[%s11049_s11 + $0x1e8] sm:$0xff]  ;;  %6973 = vmatprep.subr.bf16.mxu0 %v6972_v59  ;;  %v5118_v14 = vld [vmem:[%s11049_s11 + $0x2f8] sm:$0xff]  ;;  %v6948_v27 = vpack.c.bf16 %v5102_v12, %v5101_v42 }
 0x333   :  { %v5787_v15 = vpop.f32.mrb[125].mxu0  ;;  %v5869_v5 = vpop.f32.mrb[158].mxu1 }
 0x334   :  { %v5788_v63 = vadd.f32 %v5787_v15, %v5786_v48  ;;  %v5870_v44 = vpop.f32.mrb[159].mxu1  ;;  %6943 = vmatpush3.bf16.msra.mxu1 %v6942_v33  ;;  %v6946_v48 = vpack.c.bf16 %v5084_v32, %v5083_v51  ;;  %v5086_v15 = vld [vmem:[%s11049_s11 + $0x1f8] sm:$0xff]  ;;  %v3436_v51 = vld [vmem:[%s11049_s11 + $0x108] sm:$0xff] }
 0x335   :  { %v5871_v0 = vadd.f32 %v5870_v44, %v5869_v5  ;;  %6975 = vmatpush3.bf16.msra.mxu0 %v6972_v59  ;;  %6945 = vmatprep.subr.bf16.mxu1 %v6944_v11  ;;  %v6980_v5 = vpack.c.bf16 %v5118_v14, %v5117_v47  ;;  %v3420_v59 = vld [vmem:[%s11049_s11 + $0x88] sm:$0xff]  ;;  %v3435_v11 = vld [vmem:[%s11049_s11 + $0x100] sm:$0xff] }
 0x336   :  { %v9859_v62 = vadd.f32 %v5868_v18, %v5788_v63  ;;  %v5789_v16 = vpop.f32.mrb[126].mxu0  ;;  %v5085_v18 = vld [vmem:[%s11049_s11 + $0x1f0] sm:$0xff]  ;;  %6977 = vmatprep.subr.bf16.mxu0 %v6976_v17  ;;  %v3419_v63 = vld [vmem:[%s11049_s11 + $0x80] sm:$0xff]  ;;  %v9887_v47 = vpack.c.bf16 %v3436_v51, %v3435_v11 }
 0x337   :  { %v5790_v10 = vpop.f32.mrb[127].mxu0  ;;  %v6950_v42 = vpack.c.bf16 %v5086_v15, %v5085_v18 }
 0x338   :  { %v5791_v29 = vadd.f32 %v5790_v10, %v5789_v16  ;;  %6947 = vmatpush3.bf16.msra.mxu1 %v6946_v48  ;;  %v6984_v16 = vpack.c.bf16 %v3420_v59, %v3419_v63 }
 0x339   :  { %6979 = vmatpush3.bf16.msra.mxu0 %v6976_v17  ;;  %6949 = vmatprep.subr.bf16.mxu1 %v6948_v27 }
 0x33a   :  { %v9879_v33 = vadd.f32 %v5871_v0, %v5791_v29  ;;  %v5904_v44 = vpop.f32.mrb[128].mxu0  ;;  %6981 = vmatprep.subr.bf16.mxu0 %v6980_v5 }
 0x33b   :  { %v5905_v32 = vpop.f32.mrb[129].mxu0 }
 0x33c   :  { %v5906_v12 = vadd.f32 %v5905_v32, %v5904_v44  ;;  %6951 = vmatpush3.bf16.msra.mxu1 %v6950_v42 }
 0x33d   :  { %6983 = vmatpush3.bf16.msra.mxu0 %v6980_v5  ;;  %6985 = vmatprep.subr.bf16.mxu1 %v6984_v16 }
 0x33e   :  { %v2916_v0 = vadd.f32 %v5906_v12, %v9735_v43  ;;  %v5907_v14 = vpop.f32.mrb[130].mxu0  ;;  %7017 = vmatprep.subr.bf16.mxu0 %v9887_v47 }
 0x33f   :  { %v5908_v10 = vpop.f32.mrb[131].mxu0 }
 0x340   :  { %v9891_v29 = vadd.f32 %v2916_v0, %v9652_v52  ;;  %v5909_v35 = vadd.f32 %v5908_v10, %v5907_v14 }
 0x342   :  { %v2921_v17 = vadd.f32 %v5909_v35, %v9737_v28  ;;  %v5910_v48 = vpop.f32.mrb[132].mxu0  ;;  %v3033_v43 = vmul.f32 %v9891_v29, %v9891_v29 }
 0x343   :  { %v5911_v27 = vpop.f32.mrb[133].mxu0 }
 0x344   :  { %v9896_v18 = vadd.f32 %v2921_v17, %v9655_v2  ;;  %v5912_v15 = vadd.f32 %v5911_v27, %v5910_v48 }
 0x346   :  { %v3012_v52 = vadd.f32 %v9896_v18, %v9891_v29  ;;  %v3034_v5 = vmul.f32 %v9896_v18, %v9896_v18  ;;  %v2926_v63 = vadd.f32 %v5912_v15, %v9739_v30  ;;  %v5913_v59 = vpop.f32.mrb[134].mxu0 }
 0x347   :  { %v5914_v44 = vpop.f32.mrb[135].mxu0 }
 0x348   :  { %v3049_v35 = vadd.f32 %v3034_v5, %v3033_v43  ;;  %v9906_v28 = vadd.f32 %v2926_v63, %v9658_v21  ;;  %v5915_v2 = vadd.f32 %v5914_v44, %v5913_v59 }
 0x34a   :  { %v3013_v11 = vadd.f32 %v3012_v52, %v9906_v28  ;;  %v3035_v51 = vmul.f32 %v9906_v28, %v9906_v28  ;;  %v2931_v32 = vadd.f32 %v5915_v2, %v9741_v31  ;;  %v5916_v42 = vpop.f32.mrb[136].mxu0 }
 0x34b   :  { %v5917_v12 = vpop.f32.mrb[137].mxu0 }
 0x34c   :  { %v3050_v16 = vadd.f32 %v3049_v35, %v3035_v51  ;;  %v9913_v0 = vadd.f32 %v2931_v32, %v9661_v4  ;;  %v5918_v30 = vadd.f32 %v5917_v12, %v5916_v42 }
 0x34e   :  { %v3014_v14 = vadd.f32 %v3013_v11, %v9913_v0  ;;  %v3036_v21 = vmul.f32 %v9913_v0, %v9913_v0  ;;  %v2936_v10 = vadd.f32 %v5918_v30, %v9743_v49  ;;  %v5919_v17 = vpop.f32.mrb[138].mxu0 }
 0x34f   :  { %v5920_v48 = vpop.f32.mrb[139].mxu0 }
 0x350   :  { %v3051_v27 = vadd.f32 %v3050_v16, %v3036_v21  ;;  %v9920_v15 = vadd.f32 %v2936_v10, %v9664_v41  ;;  %v5921_v31 = vadd.f32 %v5920_v48, %v5919_v17 }
 0x352   :  { %v3015_v43 = vadd.f32 %v3014_v14, %v9920_v15  ;;  %v3037_v4 = vmul.f32 %v9920_v15, %v9920_v15  ;;  %v2941_v52 = vadd.f32 %v5921_v31, %v9745_v56  ;;  %v5922_v5 = vpop.f32.mrb[140].mxu0 }
 0x353   :  { %v5923_v63 = vpop.f32.mrb[141].mxu0 }
 0x354   :  { %v3052_v59 = vadd.f32 %v3051_v27, %v3037_v4  ;;  %v9927_v44 = vadd.f32 %v2941_v52, %v9667_v50  ;;  %v5924_v49 = vadd.f32 %v5923_v63, %v5922_v5 }
 0x356   :  { %v3016_v35 = vadd.f32 %v3015_v43, %v9927_v44  ;;  %v3038_v41 = vmul.f32 %v9927_v44, %v9927_v44  ;;  %v2946_v2 = vadd.f32 %v5924_v49, %v9747_v60  ;;  %v5925_v11 = vpop.f32.mrb[142].mxu0 }
 0x357   :  { %v5926_v51 = vpop.f32.mrb[143].mxu0 }
 0x358   :  { %v3053_v32 = vadd.f32 %v3052_v59, %v3038_v41  ;;  %v9934_v42 = vadd.f32 %v2946_v2, %v9670_v26  ;;  %v5927_v56 = vadd.f32 %v5926_v51, %v5925_v11 }
 0x35a   :  { %v3017_v12 = vadd.f32 %v3016_v35, %v9934_v42  ;;  %v3039_v50 = vmul.f32 %v9934_v42, %v9934_v42  ;;  %v2951_v16 = vadd.f32 %v5927_v56, %v9749_v8  ;;  %v5928_v30 = vpop.f32.mrb[144].mxu0 }
 0x35b   :  { %v5929_v14 = vpop.f32.mrb[145].mxu0 }
 0x35c   :  { %v3054_v21 = vadd.f32 %v3053_v32, %v3039_v50  ;;  %v9941_v10 = vadd.f32 %v2951_v16, %v9673_v22  ;;  %v5930_v60 = vadd.f32 %v5929_v14, %v5928_v30 }
 0x35e   :  { %v3018_v17 = vadd.f32 %v3017_v12, %v9941_v10  ;;  %v3040_v26 = vmul.f32 %v9941_v10, %v9941_v10  ;;  %v2956_v48 = vadd.f32 %v5930_v60, %v9751_v38  ;;  %v5931_v27 = vpop.f32.mrb[146].mxu0 }
 0x35f   :  { %v5932_v31 = vpop.f32.mrb[147].mxu0 }
 0x360   :  { %v3055_v43 = vadd.f32 %v3054_v21, %v3040_v26  ;;  %v9948_v4 = vadd.f32 %v2956_v48, %v9676_v45  ;;  %v5933_v8 = vadd.f32 %v5932_v31, %v5931_v27 }
 0x362   :  { %v3019_v52 = vadd.f32 %v3018_v17, %v9948_v4  ;;  %v3041_v22 = vmul.f32 %v9948_v4, %v9948_v4  ;;  %v2961_v5 = vadd.f32 %v5933_v8, %v9753_v19  ;;  %v5934_v63 = vpop.f32.mrb[148].mxu0 }
 0x363   :  { %v5935_v59 = vpop.f32.mrb[149].mxu0 }
 0x364   :  { %v3056_v49 = vadd.f32 %v3055_v43, %v3041_v22  ;;  %v9955_v35 = vadd.f32 %v2961_v5, %v9679_v58  ;;  %v5936_v38 = vadd.f32 %v5935_v59, %v5934_v63 }
 0x366   :  { %v3020_v41 = vadd.f32 %v3019_v52, %v9955_v35  ;;  %v3042_v45 = vmul.f32 %v9955_v35, %v9955_v35  ;;  %v2966_v2 = vadd.f32 %v5936_v38, %v9755_v36  ;;  %v5937_v11 = vpop.f32.mrb[150].mxu0 }
 0x367   :  { %v5938_v51 = vpop.f32.mrb[151].mxu0 }
 0x368   :  { %v3057_v32 = vadd.f32 %v3056_v49, %v3042_v45  ;;  %v9962_v56 = vadd.f32 %v2966_v2, %v9682_v61  ;;  %v5939_v19 = vadd.f32 %v5938_v51, %v5937_v11 }
 0x36a   :  { %v3021_v12 = vadd.f32 %v3020_v41, %v9962_v56  ;;  %v3043_v58 = vmul.f32 %v9962_v56, %v9962_v56  ;;  %v2971_v50 = vadd.f32 %v5939_v19, %v9784_v13  ;;  %v5940_v16 = vpop.f32.mrb[152].mxu0 }
 0x36b   :  { %v5941_v30 = vpop.f32.mrb[153].mxu0 }
 0x36c   :  { %v3058_v14 = vadd.f32 %v3057_v32, %v3043_v58  ;;  %v9969_v21 = vadd.f32 %v2971_v50, %v9685_v37  ;;  %v5942_v36 = vadd.f32 %v5941_v30, %v5940_v16 }
 0x36e   :  { %v3022_v60 = vadd.f32 %v3021_v12, %v9969_v21  ;;  %v3044_v61 = vmul.f32 %v9969_v21, %v9969_v21  ;;  %v2976_v17 = vadd.f32 %v5942_v36, %v9819_v40  ;;  %v5943_v26 = vpop.f32.mrb[154].mxu0 }
 0x36f   :  { %v5944_v48 = vpop.f32.mrb[155].mxu0 }
 0x370   :  { %v3059_v27 = vadd.f32 %v3058_v14, %v3044_v61  ;;  %v9976_v31 = vadd.f32 %v2976_v17, %v9688_v23  ;;  %v5945_v13 = vadd.f32 %v5944_v48, %v5943_v26 }
 0x372   :  { %v3023_v43 = vadd.f32 %v3022_v60, %v9976_v31  ;;  %v3045_v37 = vmul.f32 %v9976_v31, %v9976_v31  ;;  %v2981_v8 = vadd.f32 %v5945_v13, %v9839_v46  ;;  %v5946_v52 = vpop.f32.mrb[156].mxu0 }
 0x373   :  { %v5947_v22 = vpop.f32.mrb[157].mxu0 }
 0x374   :  { %v3060_v5 = vadd.f32 %v3059_v27, %v3045_v37  ;;  %v9983_v63 = vadd.f32 %v2981_v8, %v9691_v39  ;;  %v5948_v40 = vadd.f32 %v5947_v22, %v5946_v52 }
 0x376   :  { %v3024_v59 = vadd.f32 %v3023_v43, %v9983_v63  ;;  %v3046_v23 = vmul.f32 %v9983_v63, %v9983_v63  ;;  %v2986_v49 = vadd.f32 %v5948_v40, %v9859_v62  ;;  %v5949_v38 = vpop.f32.mrb[158].mxu0 }
 0x377   :  { %v5950_v41 = vpop.f32.mrb[159].mxu0 }
 0x378   :  { %v3061_v45 = vadd.f32 %v3060_v5, %v3046_v23  ;;  %v9990_v2 = vadd.f32 %v2986_v49, %v9712_v25  ;;  %v5951_v46 = vadd.f32 %v5950_v41, %v5949_v38  ;;  %v3010_v41 = vld [vmem:[%s11047_s9] sm:$0x1] }
 0x37a   :  { %v3025_v11 = vadd.f32 %v3024_v59, %v9990_v2  ;;  %v3047_v39 = vmul.f32 %v9990_v2, %v9990_v2  ;;  %v2991_v51 = vadd.f32 %v5951_v46, %v9879_v33 }
 0x37c   :  { %v3062_v32 = vadd.f32 %v3061_v45, %v3047_v39  ;;  %v3009_v19 = vadd.f32 %v2991_v51, %v9715_v20  ;;  %v10041_v51 = vld [vmem:[%s11048_s10] ss:$0 sm:$0xff] }
 0x37e   :  { %v3026_v12 = vadd.f32 %v3025_v11, %v3009_v19  ;;  %v3048_v58 = vmul.f32 %v3009_v19, %v3009_v19  ;;  %v11315_v11 = vld [vmem:[#allocation6_spill] sm:$0xff] }
 0x380   :  { %v3027_v62 = vrot.slane %v3026_v12, 4  ;;  %v3063_v50 = vadd.f32 %v3062_v32, %v3048_v58 }
 0x382   :  { %v3028_v16 = vadd.f32 %v3027_v62, %v3026_v12  ;;  %v3064_v30 = vrot.slane %v3063_v50, 4 }
 0x384   :  { %v3029_v14 = vrot.slane %v3028_v16, 2  ;;  %v3065_v25 = vadd.f32 %v3064_v30, %v3063_v50 }
 0x386   :  { %v3030_v36 = vadd.f32 %v3029_v14, %v3028_v16  ;;  %v3066_v60 = vrot.slane %v3065_v25, 2 }
 0x388   :  { %v3031_v61 = vrot.slane %v3030_v36, 1  ;;  %v3067_v17 = vadd.f32 %v3066_v60, %v3065_v25  ;;  %v3404_v60 = vld [vmem:[%s11049_s11 + $0x8] sm:$0xff] }
 0x38a   :  { %v3032_v26 = vadd.f32 %v3031_v61, %v3030_v36  ;;  %v3068_v48 = vrot.slane %v3067_v17, 1  ;;  %v3403_v36 = vld [vmem:[%s11049_s11] sm:$0xff] }
 0x38c   :  { %v3069_v27 = vadd.f32 %v3068_v48, %v3067_v17  ;;  %v9997_v13 = vmul.f32 0.0078125, %v3032_v26  ;;  %v3437_v26 = vld [vmem:[%s11049_s11 + $0x110] sm:$0xff]  ;;  %v3438_v48 = vld [vmem:[%s11049_s11 + $0x118] sm:$0xff] }
 0x38e   :  { %v3071_v33 = vmul.f32 0.0078125, %v3069_v27  ;;  %v3072_v20 = vmul.f32 %v9997_v13, %v9997_v13  ;;  %v3089_v43 = vsub.f32 %v3009_v19, %v9997_v13  ;;  %v3074_v37 = vsub.f32 %v9891_v29, %v9997_v13 }
 0x38f   :  { %v3075_v8 = vsub.f32 %v9896_v18, %v9997_v13  ;;  %v3076_v52 = vsub.f32 %v9906_v28, %v9997_v13  ;;  %v3077_v22 = vsub.f32 %v9913_v0, %v9997_v13  ;;  %v3078_v5 = vsub.f32 %v9920_v15, %v9997_v13 }
 0x390   :  { %v3073_v40 = vsub.f32 %v3071_v33, %v3072_v20  ;;  %v3079_v59 = vsub.f32 %v9927_v44, %v9997_v13  ;;  %v3080_v23 = vsub.f32 %v9934_v42, %v9997_v13  ;;  %v3081_v29 = vsub.f32 %v9941_v10, %v9997_v13 }
 0x391   :  { %v3082_v18 = vsub.f32 %v9948_v4, %v9997_v13  ;;  %v3083_v28 = vsub.f32 %v9955_v35, %v9997_v13  ;;  %v3084_v0 = vsub.f32 %v9962_v56, %v9997_v13  ;;  %v3085_v15 = vsub.f32 %v9969_v21, %v9997_v13 }
 0x392   :  { %v3090_v49 = vadd.f32 1e-05, %v3073_v40  ;;  %v3086_v44 = vsub.f32 %v9976_v31, %v9997_v13  ;;  %v11316_v31 = vsub.f32 %v9983_v63, %v9997_v13  ;;  %v3444_v63 = vld [vmem:[%s11049_s11 + $0x148] sm:$0xff] }
 0x394   :  { %7222 = vrsqrt.f32 %v3090_v49  ;;  %v3439_v49 = vld [vmem:[%s11049_s11 + $0x120] sm:$0xff] }
 0x39e   :  { %v7223_v45 = vpop.eup %7222 }
 0x39f   :  { %v3092_v46 = vmul.f32 %v7223_v45, %v3010_v41  ;;  %v3440_v41 = vld [vmem:[%s11049_s11 + $0x128] sm:$0xff] }
 0x3a1   :  { %v10036_v39 = vrot.slane %v3092_v46, %v11315_v11  ;;  %v5129_v11 = vld [vmem:[%s11049_s11 + $0x350] sm:$0xff] }
 0x3a3   :  { %v10044_v32 = vmul.f32 %v10036_v39, %v3089_v43  ;;  %v3097_v19 = vmul.f32 %v10036_v39, %v3074_v37  ;;  %v3098_v12 = vmul.f32 %v10036_v39, %v3075_v8  ;;  %v3099_v58 = vmul.f32 %v10036_v39, %v3076_v52  ;;  %v3421_v8 = vld [vmem:[%s11049_s11 + $0x90] sm:$0xff]  ;;  %v3422_v52 = vld [vmem:[%s11049_s11 + $0x98] sm:$0xff] }
 0x3a4   :  { %v3100_v62 = vmul.f32 %v10036_v39, %v3077_v22  ;;  %v3101_v50 = vmul.f32 %v10036_v39, %v3078_v5  ;;  %v3102_v16 = vmul.f32 %v10036_v39, %v3079_v59  ;;  %v3103_v30 = vmul.f32 %v10036_v39, %v3080_v23  ;;  %v10086_v22 = vld [vmem:[%s11049_s11 + $0x10] sm:$0xff]  ;;  %v10095_v23 = vld [vmem:[%s11049_s11 + $0x18] sm:$0xff] }
 0x3a5   :  { %v3119_v14 = vadd.f32 %v10041_v51, %v3097_v19  ;;  %v3120_v25 = vadd.f32 %v10041_v51, %v3098_v12  ;;  %v3121_v61 = vadd.f32 %v10041_v51, %v3099_v58  ;;  %v6986_v5 = vpack.c.bf16 %v3404_v60, %v3403_v36  ;;  %v3423_v36 = vld [vmem:[%s11049_s11 + $0xa0] sm:$0xff]  ;;  %v3424_v60 = vld [vmem:[%s11049_s11 + $0xa8] sm:$0xff] }
 0x3a6   :  { %v3122_v17 = vadd.f32 %v10041_v51, %v3100_v62  ;;  %v3123_v27 = vadd.f32 %v10041_v51, %v3101_v50  ;;  %v3124_v33 = vadd.f32 %v10041_v51, %v3102_v16  ;;  %v3125_v45 = vadd.f32 %v10041_v51, %v3103_v30  ;;  %v3441_v62 = vld [vmem:[%s11049_s11 + $0x130] sm:$0xff]  ;;  %v3442_v50 = vld [vmem:[%s11049_s11 + $0x138] sm:$0xff] }
 0x3a7   :  { %v10071_v20 = vmax.f32 %v3119_v14, 0.0  ;;  %v10073_v43 = vmax.f32 %v3120_v25, 0.0  ;;  %v10075_v37 = vmax.f32 %v3121_v61, 0.0  ;;  %v7020_v30 = vpack.c.bf16 %v3438_v48, %v3437_v26 }
 0x3a8   :  { %v10088_v40 = vmax.f32 %v3122_v17, 0.0  ;;  %v10090_v59 = vmax.f32 %v3123_v27, 0.0  ;;  %v6988_v14 = vpack.c.bf16 %v3422_v52, %v3421_v8  ;;  %v10116_v25 = vmax.f32 %v3124_v33, 0.0  ;;  %v10140_v27 = vld [vmem:[%s11049_s11 + $0x20] sm:$0xff]  ;;  %v10145_v33 = vld [vmem:[%s11049_s11 + $0x28] sm:$0xff] }
 0x3a9   :  { %3586 = vmatprep.mubr.f32.mxu1 %v10071_v20  ;;  %v3263_v46 = vrot.slane %v10071_v20, 7  ;;  %v3342_v19 = vrot.slane %v10071_v20, 1  ;;  %v3345_v12 = vrot.slane %v10073_v43, 1  ;;  %v3348_v58 = vrot.slane %v10075_v37, 1 }
 0x3aa   :  { %v3266_v16 = vrot.slane %v10073_v43, 7  ;;  %v3351_v48 = vrot.slane %v10088_v40, 1  ;;  %v3354_v8 = vrot.slane %v10090_v59, 1  ;;  %v6990_v52 = vpack.c.bf16 %v10095_v23, %v10086_v22 }
 0x3ab   :  { %v10126_v61 = vsel %vm1021_vm0, %v11289_v9, %v3263_v46  ;;  %v10130_v17 = vsel %vm1182_vm1, %v3342_v19, %v8726_v6  ;;  %v10134_v26 = vsel %vm1182_vm1, %v3345_v12, %v8726_v6  ;;  %v10152_v46 = vpack.c.bf16 %v3440_v41, %v3439_v49 }
 0x3ac   :  { %3587 = vmatmul.mubr.f32.vlgmr.msra.gmra.mrb[160].mxu1 %v10126_v61  ;;  %6432 = vmatprep.mubr.f32.mxu0 %v10130_v17  ;;  %v10154_v19 = vpack.c.bf16 %v3442_v50, %v3441_v62  ;;  %v10160_v12 = vsel %vm1182_vm1, %v3348_v58, %v8726_v6  ;;  %v10162_v38 = vmax.f32 %v3125_v45, 0.0  ;;  %v3104_v42 = vmul.f32 %v10036_v39, %v3081_v29 }
 0x3ad   :  { %3591 = vmatprep.mubr.f32.mxu1 %v10073_v43  ;;  %6433 = vmatmul.mubr.f32.vlgmr.msra.gmra.mrb[160].mxu0 %v10134_v26  ;;  %v6992_v22 = vpack.c.bf16 %v3424_v60, %v3423_v36  ;;  %v3269_v23 = vrot.slane %v10075_v37, 7  ;;  %v3105_v49 = vmul.f32 %v10036_v39, %v3082_v18  ;;  %v3106_v41 = vmul.f32 %v10036_v39, %v3083_v28  ;;  %v3425_v18 = vld [vmem:[%s11049_s11 + $0xb0] sm:$0xff]  ;;  %v3443_v60 = vld [vmem:[%s11049_s11 + $0x140] sm:$0xff] }
 0x3ae   :  { %6987 = vmatpush3.bf16.msra.mxu1 %v6986_v5  ;;  %6435 = vmatprep.mubr.f32.mxu0 %v10160_v12  ;;  %v6994_v10 = vpack.c.bf16 %v10145_v33, %v10140_v27  ;;  %v10183_v29 = vsel %vm1021_vm0, %v11289_v9, %v3266_v16  ;;  %v10187_v5 = vsel %vm1182_vm1, %v3351_v48, %v8726_v6  ;;  %v3357_v4 = vrot.slane %v10116_v25, 1  ;;  %v3410_v27 = vld [vmem:[%s11049_s11 + $0x38] sm:$0xff] }
 0x3af   :  { %7019 = vmatpush3.bf16.msra.mxu0 %v9887_v47  ;;  %6989 = vmatprep.subr.bf16.mxu1 %v6988_v14  ;;  %v3126_v35 = vadd.f32 %v10041_v51, %v3104_v42  ;;  %v3426_v47 = vld [vmem:[%s11049_s11 + $0xb8] sm:$0xff]  ;;  %v10200_v28 = vsel %vm1182_vm1, %v3354_v8, %v8726_v6  ;;  %v3127_v45 = vadd.f32 %v10041_v51, %v3105_v49  ;;  %v3360_v42 = vrot.slane %v10162_v38, 1  ;;  %v3427_v49 = vld [vmem:[%s11049_s11 + $0xc0] sm:$0xff] }
 0x3b0   :  { %3592 = vmatmul.mubr.f32.gmra.mrb[162].mxu1 %v10183_v29  ;;  %7021 = vmatprep.subr.bf16.mxu0 %v7020_v30  ;;  %v3128_v58 = vadd.f32 %v10041_v51, %v3106_v41  ;;  %v3107_v50 = vmul.f32 %v10036_v39, %v3084_v0  ;;  %v3108_v16 = vmul.f32 %v10036_v39, %v3085_v15  ;;  %v3272_v15 = vrot.slane %v10088_v40, 7  ;;  %v3428_v41 = vld [vmem:[%s11049_s11 + $0xc8] sm:$0xff] }
 0x3b1   :  { %3596 = vmatprep.mubr.f32.mxu1 %v10075_v37  ;;  %6436 = vmatmul.mubr.f32.gmra.mrb[162].mxu0 %v10187_v5  ;;  %v10207_v62 = vmax.f32 %v3126_v35, 0.0  ;;  %v10220_v14 = vsel %vm1021_vm0, %v11289_v9, %v3269_v23  ;;  %v10222_v36 = vmax.f32 %v3127_v45, 0.0  ;;  %v3109_v56 = vmul.f32 %v10036_v39, %v3086_v44 }
 0x3b2   :  { %6438 = vmatprep.mubr.f32.mxu0 %v10200_v28  ;;  %6991 = vmatpush3.bf16.msra.mxu1 %v6990_v52  ;;  %v6996_v0 = vpack.c.bf16 %v3426_v47, %v3425_v18  ;;  %v10230_v21 = vsel %vm1182_vm1, %v3357_v4, %v8726_v6  ;;  %v3129_v48 = vadd.f32 %v10041_v51, %v3107_v50  ;;  %v10250_v8 = vmax.f32 %v3128_v58, 0.0  ;;  %v3445_v58 = vld [vmem:[%s11049_s11 + $0x150] sm:$0xff] }
 0x3b3   :  { %7023 = vmatpush3.bf16.msra.mxu0 %v7020_v30  ;;  %6993 = vmatprep.subr.bf16.mxu1 %v6992_v22  ;;  %v3110_v44 = vmul.f32 %v10036_v39, %v11316_v31  ;;  %v3409_v30 = vld [vmem:[%s11049_s11 + $0x30] sm:$0xff]  ;;  %v3465_v33 = vrot.slane %v10207_v62, 1  ;;  %v3130_v52 = vadd.f32 %v10041_v51, %v3108_v16  ;;  %v11317_v22 = vsub.f32 %v9990_v2, %v9997_v13 }
 0x3b4   :  { %3597 = vmatmul.mubr.f32.gmra.mrb[164].mxu1 %v10220_v14  ;;  %7025 = vmatprep.subr.bf16.mxu0 %v10152_v46  ;;  %v10270_v4 = vsel %vm1182_vm1, %v3360_v42, %v8726_v6  ;;  %v3366_v2 = vrot.slane %v10222_v36, 1  ;;  %v10273_v13 = vmax.f32 %v3129_v48, 0.0  ;;  %v6998_v35 = vpack.c.bf16 %v3410_v27, %v3409_v30  ;;  %v3430_v48 = vld [vmem:[%s11049_s11 + $0xd8] sm:$0xff] }
 0x3b5   :  { %v3111_v23 = vmul.f32 %v10036_v39, %v11317_v22  ;;  %3601 = vmatprep.mubr.f32.mxu1 %v10088_v40  ;;  %6439 = vmatmul.mubr.f32.gmra.mrb[164].mxu0 %v10230_v21  ;;  %v3131_v39 = vadd.f32 %v10041_v51, %v3109_v56  ;;  %v10280_v18 = vsel %vm1021_vm0, %v11289_v9, %v3272_v15  ;;  %v3275_v47 = vrot.slane %v10090_v59, 7 }
 0x3b6   :  { %6441 = vmatprep.mubr.f32.mxu0 %v10270_v4  ;;  %6995 = vmatpush3.bf16.msra.mxu1 %v6994_v10  ;;  %v7032_v45 = vpack.c.bf16 %v3444_v63, %v3443_v60  ;;  %v7000_v42 = vpack.c.bf16 %v3428_v41, %v3427_v49  ;;  %v3411_v10 = vld [vmem:[%s11049_s11 + $0x40] sm:$0xff]  ;;  %v10295_v50 = vsel %vm1182_vm1, %v3465_v33, %v8726_v6  ;;  %v3369_v16 = vrot.slane %v10250_v8, 1  ;;  %v3429_v60 = vld [vmem:[%s11049_s11 + $0xd0] sm:$0xff] }
 0x3b7   :  { %7027 = vmatpush3.bf16.msra.mxu0 %v10152_v46  ;;  %6997 = vmatprep.subr.bf16.mxu1 %v6996_v0  ;;  %v3412_v46 = vld [vmem:[%s11049_s11 + $0x48] sm:$0xff]  ;;  %11318 = vst [vmem:[#allocation69_spill] sm:$0xff] %v10295_v50  ;;  %v10299_v56 = vmax.f32 %v3130_v52, 0.0  ;;  %v3446_v0 = vld [vmem:[%s11049_s11 + $0x158] sm:$0xff]  ;;  %v3132_v15 = vadd.f32 %v10041_v51, %v3110_v44  ;;  %v10315_v31 = vsel %vm1182_vm1, %v3366_v2, %v8726_v6  ;;  %v3372_v30 = vrot.slane %v10273_v13, 1  ;;  %v3413_v41 = vld [vmem:[%s11049_s11 + $0x50] sm:$0xff] }
 0x3b8   :  { %3602 = vmatmul.mubr.f32.gmra.mrb[166].mxu1 %v10280_v18  ;;  %7029 = vmatprep.subr.bf16.mxu0 %v10154_v19  ;;  %v10318_v27 = vmax.f32 %v3131_v39, 0.0  ;;  %v3133_v44 = vadd.f32 %v10041_v51, %v3111_v23  ;;  %v7002_v33 = vpack.c.bf16 %v3412_v46, %v3411_v10  ;;  %v10325_v63 = vsel %vm1021_vm0, %v11289_v9, %v3275_v47  ;;  %v3414_v23 = vld [vmem:[%s11049_s11 + $0x58] sm:$0xff]  ;;  %v3431_v47 = vld [vmem:[%s11049_s11 + $0xe0] sm:$0xff]  ;;  %v3448_v10 = vld [vmem:[%s11049_s11 + $0x168] sm:$0xff] }
 0x3b9   :  { %3606 = vmatprep.mubr.f32.mxu1 %v10090_v59  ;;  %6442 = vmatmul.mubr.f32.gmra.mrb[166].mxu0 %v10295_v50  ;;  %v3278_v52 = vrot.slane %v10116_v25, 7  ;;  %v7036_v22 = vpack.c.bf16 %v3446_v0, %v3445_v58  ;;  %v7004_v49 = vpack.c.bf16 %v3430_v48, %v3429_v60  ;;  %v10339_v2 = vsel %vm1182_vm1, %v3369_v16, %v8726_v6  ;;  %v3432_v58 = vld [vmem:[%s11049_s11 + $0xe8] sm:$0xff]  ;;  %v3415_v48 = vld [vmem:[%s11049_s11 + $0x60] sm:$0xff] }
 0x3ba   :  { %6444 = vmatprep.mubr.f32.mxu0 %v10315_v31  ;;  %6999 = vmatpush3.bf16.msra.mxu1 %v6998_v35  ;;  %11319 = vst [vmem:[#allocation75_spill] sm:$0xff] %v10339_v2  ;;  %v3375_v39 = vrot.slane %v10299_v56, 1  ;;  %v10342_v35 = vmax.f32 %v3132_v15, 0.0  ;;  %v10363_v46 = vmax.f32 %v3133_v44, 0.0  ;;  %v7006_v16 = vpack.c.bf16 %v3414_v23, %v3413_v41  ;;  %v3434_v41 = vld [vmem:[%s11049_s11 + $0xf8] sm:$0xff] }
 0x3bb   :  { %7031 = vmatpush3.bf16.msra.mxu0 %v10154_v19  ;;  %7001 = vmatprep.subr.bf16.mxu1 %v7000_v42  ;;  %v3134_v19 = vadd.f32 %v10041_v51, %v10044_v32  ;;  %v10354_v51 = vsel %vm1182_vm1, %v3372_v30, %v8726_v6  ;;  %v3378_v32 = vrot.slane %v10318_v27, 1  ;;  %v3447_v42 = vld [vmem:[%s11049_s11 + $0x160] sm:$0xff]  ;;  %v10368_v0 = vsel %vm1021_vm0, %v11289_v9, %v3278_v52  ;;  %v3416_v30 = vld [vmem:[%s11049_s11 + $0x68] sm:$0xff] }
 0x3bc   :  { %3607 = vmatmul.mubr.f32.gmra.mrb[168].mxu1 %v10325_v63  ;;  %7033 = vmatprep.subr.bf16.mxu0 %v7032_v45  ;;  %11320 = vst [vmem:[#allocation14_spill] sm:$0xff] %v10354_v51  ;;  %v3281_v15 = vrot.slane %v10162_v38, 7  ;;  %v7008_v60 = vpack.c.bf16 %v3432_v58, %v3431_v47  ;;  %v7040_v52 = vpack.c.bf16 %v3448_v10, %v3447_v42  ;;  %v3450_v47 = vld [vmem:[%s11049_s11 + $0x178] sm:$0xff] }
 0x3bd   :  { %3611 = vmatprep.mubr.f32.mxu1 %v10116_v25  ;;  %6445 = vmatmul.mubr.f32.gmra.mrb[168].mxu0 %v10339_v2  ;;  %v10377_v44 = vmax.f32 %v3134_v19, 0.0  ;;  %v10395_v23 = vsel %vm1182_vm1, %v3378_v32, %v8726_v6  ;;  %v3384_v19 = vrot.slane %v10363_v46, 1  ;;  %v7010_v58 = vpack.c.bf16 %v3416_v30, %v3415_v48  ;;  %v5135_v48 = vld [vmem:[%s11049_s11 + $0x380] sm:$0xff]  ;;  %v5136_v30 = vld [vmem:[%s11049_s11 + $0x388] sm:$0xff] }
 0x3be   :  { %6447 = vmatprep.mubr.f32.mxu0 %v10354_v51  ;;  %7003 = vmatpush3.bf16.msra.mxu1 %v7002_v33  ;;  %v3381_v33 = vrot.slane %v10342_v35, 1  ;;  %11322 = vst [vmem:[#allocation18_spill] sm:$0xff] %v10395_v23  ;;  %v10407_v42 = vsel %vm1021_vm0, %v11289_v9, %v3281_v15  ;;  %v3456_v32 = vrot.slane %v10207_v62, 7 }
 0x3bf   :  { %7035 = vmatpush3.bf16.msra.mxu0 %v7032_v45  ;;  %7005 = vmatprep.subr.bf16.mxu1 %v7004_v49  ;;  %v10382_v45 = vsel %vm1182_vm1, %v3375_v39, %v8726_v6  ;;  %v3433_v49 = vld [vmem:[%s11049_s11 + $0xf0] sm:$0xff] }
 0x3c0   :  { %3612 = vmatmul.mubr.f32.gmra.mrb[170].mxu1 %v10368_v0  ;;  %11321 = vst [vmem:[#allocation16_spill] sm:$0xff] %v10382_v45  ;;  %7037 = vmatprep.subr.bf16.mxu0 %v7036_v22  ;;  %v3449_v39 = vld [vmem:[%s11049_s11 + $0x170] sm:$0xff]  ;;  %v7012_v10 = vpack.c.bf16 %v3434_v41, %v3433_v49  ;;  %v10437_v49 = vsel %vm1021_vm0, %v11289_v9, %v3456_v32  ;;  %v3287_v41 = vrot.slane %v10222_v36, 7 }
 0x3c1   :  { %3616 = vmatprep.mubr.f32.mxu1 %v10162_v38  ;;  %6448 = vmatmul.mubr.f32.gmra.mrb[170].mxu0 %v10382_v45  ;;  %v7044_v15 = vpack.c.bf16 %v3450_v47, %v3449_v39  ;;  %v7048_v39 = vpack.c.bf16 %v5136_v30, %v5135_v48  ;;  %v5138_v47 = vld [vmem:[%s11049_s11 + $0x398] sm:$0xff]  ;;  %v5121_v48 = vld [vmem:[%s11049_s11 + $0x310] sm:$0xff]  ;;  %v5139_v30 = vld [vmem:[%s11049_s11 + $0x3a0] sm:$0xff] }
 0x3c2   :  { %6450 = vmatprep.mubr.f32.mxu0 %v10395_v23  ;;  %7007 = vmatpush3.bf16.msra.mxu1 %v7006_v16  ;;  %v3468_v16 = vrot.slane %v10377_v44, 1 }
 0x3c3   :  { %7039 = vmatpush3.bf16.msra.mxu0 %v7036_v22  ;;  %7009 = vmatprep.subr.bf16.mxu1 %v7008_v60  ;;  %v10419_v22 = vsel %vm1182_vm1, %v3381_v33, %v8726_v6  ;;  %v10426_v60 = vsel %vm1182_vm1, %v3384_v19, %v8726_v6  ;;  %v7014_v33 = vpack.c.bf16 %v3418_v54, %v3417_v7  ;;  %v5119_v7 = vld [vmem:[%s11049_s11 + $0x300] sm:$0xff]  ;;  %v5120_v54 = vld [vmem:[%s11049_s11 + $0x308] sm:$0xff] }
 0x3c4   :  { %3617 = vmatmul.mubr.f32.gmra.mrb[172].mxu1 %v10407_v42  ;;  %11323 = vst [vmem:[#allocation20_spill] sm:$0xff] %v10419_v22  ;;  %7041 = vmatprep.subr.bf16.mxu0 %v7040_v52  ;;  %v10443_v19 = vsel %vm1182_vm1, %v3468_v16, %v8726_v6  ;;  %v10464_v32 = vpack.c.bf16 %v5120_v54, %v5119_v7  ;;  %v3293_v7 = vrot.slane %v10273_v13, 7 }
 0x3c5   :  { %3621 = vmatprep.mubr.f32.mxu1 %v10207_v62  ;;  %6451 = vmatmul.mubr.f32.gmra.mrb[172].mxu0 %v10419_v22  ;;  %11324 = vst [vmem:[#allocation22_spill] sm:$0xff] %v10443_v19 }
 0x3c6   :  { %6453 = vmatprep.mubr.f32.mxu0 %v10426_v60  ;;  %7011 = vmatpush3.bf16.msra.mxu1 %v7010_v58  ;;  %v10462_v58 = vsel %vm1021_vm0, %v11289_v9, %v3287_v41 }
 0x3c7   :  { %7043 = vmatpush3.bf16.msra.mxu0 %v7040_v52  ;;  %7013 = vmatprep.subr.bf16.mxu1 %v7012_v10  ;;  %v5137_v52 = vld [vmem:[%s11049_s11 + $0x390] sm:$0xff]  ;;  %v3290_v10 = vrot.slane %v10250_v8, 7 }
 0x3c8   :  { %3622 = vmatmul.mubr.f32.gmra.mrb[174].mxu1 %v10437_v49  ;;  %7045 = vmatprep.subr.bf16.mxu0 %v7044_v15  ;;  %v10468_v16 = vpack.c.bf16 %v5138_v47, %v5137_v52  ;;  %v5124_v52 = vld [vmem:[%s11049_s11 + $0x328] sm:$0xff]  ;;  %v5141_v47 = vld [vmem:[%s11049_s11 + $0x3b0] sm:$0xff] }
 0x3c9   :  { %3626 = vmatprep.mubr.f32.mxu1 %v10222_v36  ;;  %6454 = vmatmul.mubr.f32.gmra.mrb[174].mxu0 %v10443_v19  ;;  %v10488_v41 = vsel %vm1021_vm0, %v11289_v9, %v3290_v10  ;;  %v5142_v10 = vld [vmem:[%s11049_s11 + $0x3b8] sm:$0xff]  ;;  %v3305_v19 = vrot.slane %v10363_v46, 7 }
 0x3ca   :  { %6488 = vmatprep.mubr.f32.mxu0 %v8726_v6  ;;  %7015 = vmatpush3.bf16.msra.mxu1 %v7014_v33  ;;  %v5140_v33 = vld [vmem:[%s11049_s11 + $0x3a8] sm:$0xff] }
 0x3cb   :  { %7047 = vmatpush3.bf16.msra.mxu0 %v7044_v15  ;;  %7112 = vmatprep.subr.bf16.mxu1 %v7048_v39  ;;  %v5122_v15 = vld [vmem:[%s11049_s11 + $0x318] sm:$0xff]  ;;  %v10495_v54 = vpack.c.bf16 %v5140_v33, %v5139_v30  ;;  %v3296_v30 = vrot.slane %v10299_v56, 7  ;;  %v10522_v33 = vpack.c.bf16 %v5142_v10, %v5141_v47  ;;  %v10544_v47 = vpack.c.bf16 %v5126_v34, %v5125_v55  ;;  %v5145_v55 = vld [vmem:[%s11049_s11 + $0x3d0] sm:$0xff] }
 0x3cc   :  { %3627 = vmatmul.mubr.f32.gmra.mrb[176].mxu1 %v10462_v58  ;;  %7049 = vmatprep.subr.bf16.mxu0 %v7048_v39  ;;  %v10490_v39 = vpack.c.bf16 %v5122_v15, %v5121_v48  ;;  %v10515_v48 = vsel %vm1021_vm0, %v11289_v9, %v3293_v7  ;;  %v5143_v7 = vld [vmem:[%s11049_s11 + $0x3c0] sm:$0xff]  ;;  %v3299_v10 = vrot.slane %v10318_v27, 7  ;;  %v5146_v34 = vld [vmem:[%s11049_s11 + $0x3d8] sm:$0xff] }
 0x3cd   :  { %3631 = vmatprep.mubr.f32.mxu1 %v10250_v8  ;;  %v10576_v24 = vpack.c.bf16 %v5146_v34, %v5145_v55 }
 0x3ce   :  { %6489 = vmatmul.mubr.f32.vlgmr.msra.gmra.mrb[160].mxu0 %v10130_v17  ;;  %v5123_v17 = vld [vmem:[%s11049_s11 + $0x320] sm:$0xff] }
 0x3cf   :  { %6491 = vmatprep.mubr.f32.mxu0 %v10134_v26  ;;  %7051 = vmatpush3.bf16.msra.mxu0 %v10464_v32  ;;  %v10517_v15 = vpack.c.bf16 %v5124_v52, %v5123_v17  ;;  %v5144_v17 = vld [vmem:[%s11049_s11 + $0x3c8] sm:$0xff]  ;;  %v10542_v52 = vsel %vm1021_vm0, %v11289_v9, %v3296_v30  ;;  %v10568_v30 = vsel %vm1021_vm0, %v11289_v9, %v3299_v10  ;;  %v5130_v10 = vld [vmem:[%s11049_s11 + $0x358] sm:$0xff] }
 0x3d0   :  { %3632 = vmatmul.mubr.f32.gmra.mrb[178].mxu1 %v10488_v41  ;;  %7053 = vmatprep.subr.bf16.mxu0 %v10468_v16  ;;  %v10549_v53 = vpack.c.bf16 %v5144_v17, %v5143_v7  ;;  %v10571_v7 = vpack.c.bf16 %v5128_v3, %v5127_v57  ;;  %v3302_v17 = vrot.slane %v10342_v35, 7  ;;  %v5147_v57 = vld [vmem:[%s11049_s11 + $0x3e0] sm:$0xff]  ;;  %v5148_v3 = vld [vmem:[%s11049_s11 + $0x3e8] sm:$0xff]  ;;  %v10598_v34 = vpack.c.bf16 %v5130_v10, %v5129_v11  ;;  %v5149_v11 = vld [vmem:[%s11049_s11 + $0x3f0] sm:$0xff] }
 0x3d1   :  { %3636 = vmatprep.mubr.f32.mxu1 %v10273_v13  ;;  %v10623_v10 = vsel %vm1021_vm0, %v11289_v9, %v3305_v19  ;;  %v5152_v19 = vld [vmem:[%s11049_s11 + $0x408] sm:$0xff] }
 0x3d2   :  { %6492 = vmatmul.mubr.f32.gmra.mrb[162].mxu0 %v10160_v12  ;;  %v10596_v55 = vsel %vm1021_vm0, %v11289_v9, %v3302_v17  ;;  %v5150_v17 = vld [vmem:[%s11049_s11 + $0x3f8] sm:$0xff] }
 0x3d3   :  { %6494 = vmatprep.mubr.f32.mxu0 %v10187_v5  ;;  %7055 = vmatpush3.bf16.msra.mxu0 %v10490_v39  ;;  %v10630_v50 = vpack.c.bf16 %v5150_v17, %v5149_v11 }
 0x3d4   :  { %3637 = vmatmul.mubr.f32.gmra.mrb[180].mxu1 %v10515_v48  ;;  %7057 = vmatprep.subr.bf16.mxu0 %v10495_v54 }
 0x3d5   :  { %3641 = vmatprep.mubr.f32.mxu1 %v10299_v56 }
 0x3d6   :  { %6495 = vmatmul.mubr.f32.gmra.mrb[164].mxu0 %v10200_v28 }
 0x3d7   :  { %6497 = vmatprep.mubr.f32.mxu0 %v10230_v21  ;;  %7059 = vmatpush3.bf16.msra.mxu0 %v10517_v15 }
 0x3d8   :  { %3642 = vmatmul.mubr.f32.gmra.mrb[182].mxu1 %v10542_v52  ;;  %7061 = vmatprep.subr.bf16.mxu0 %v10522_v33 }
 0x3d9   :  { %3646 = vmatprep.mubr.f32.mxu1 %v10318_v27 }
 0x3da   :  { %6498 = vmatmul.mubr.f32.gmra.mrb[166].mxu0 %v10270_v4 }
 0x3db   :  { %7063 = vmatpush3.bf16.msra.mxu0 %v10544_v47  ;;  %6500 = vmatprep.mubr.f32.mxu0 %v8726_v6  ;;  %v10603_v6 = vpack.c.bf16 %v5148_v3, %v5147_v57  ;;  %v3459_v3 = vrot.slane %v10377_v44, 7 }
 0x3dc   :  { %3647 = vmatmul.mubr.f32.gmra.mrb[184].mxu1 %v10568_v30  ;;  %7065 = vmatprep.subr.bf16.mxu0 %v10549_v53 }
 0x3dd   :  { %3651 = vmatprep.mubr.f32.mxu1 %v10342_v35 }
 0x3de   :  { %6501 = vmatmul.mubr.f32.gmra.mrb[168].mxu0 %v10315_v31  ;;  %v5131_v31 = vld [vmem:[%s11049_s11 + $0x360] sm:$0xff] }
 0x3df   :  { %6503 = vmatprep.mubr.f32.mxu0 %v10339_v2  ;;  %7067 = vmatpush3.bf16.msra.mxu0 %v10571_v7  ;;  %v5132_v2 = vld [vmem:[%s11049_s11 + $0x368] sm:$0xff] }
 0x3e0   :  { %3652 = vmatmul.mubr.f32.gmra.mrb[186].mxu1 %v10596_v55  ;;  %7069 = vmatprep.subr.bf16.mxu0 %v10576_v24  ;;  %v10625_v57 = vpack.c.bf16 %v5132_v2, %v5131_v31  ;;  %v5151_v2 = vld [vmem:[%s11049_s11 + $0x400] sm:$0xff]  ;;  %v10650_v31 = vsel %vm1021_vm0, %v11289_v9, %v3459_v3  ;;  %v5156_v3 = vld [vmem:[%s11049_s11 + $0x428] sm:$0xff] }
 0x3e1   :  { %3656 = vmatprep.mubr.f32.mxu1 %v10363_v46  ;;  %v7080_v17 = vpack.c.bf16 %v5152_v19, %v5151_v2 }
 0x3e2   :  { %6504 = vmatmul.mubr.f32.gmra.mrb[170].mxu0 %v10354_v51  ;;  %v5134_v51 = vld [vmem:[%s11049_s11 + $0x378] sm:$0xff] }
 0x3e3   :  { %6506 = vmatprep.mubr.f32.mxu0 %v10382_v45  ;;  %7071 = vmatpush3.bf16.msra.mxu0 %v10598_v34  ;;  %v5133_v45 = vld [vmem:[%s11049_s11 + $0x370] sm:$0xff] }
 0x3e4   :  { %3657 = vmatmul.mubr.f32.gmra.mrb[188].mxu1 %v10623_v10  ;;  %7073 = vmatprep.subr.bf16.mxu0 %v10603_v6  ;;  %v10652_v11 = vpack.c.bf16 %v5134_v51, %v5133_v45  ;;  %v5155_v45 = vld [vmem:[%s11049_s11 + $0x420] sm:$0xff] }
 0x3e5   :  { %3661 = vmatprep.mubr.f32.mxu1 %v10377_v44 }
 0x3e6   :  { %6507 = vmatmul.mubr.f32.gmra.mrb[172].mxu0 %v10395_v23  ;;  %v5153_v23 = vld [vmem:[%s11049_s11 + $0x410] sm:$0xff] }
 0x3e7   :  { %6509 = vmatprep.mubr.f32.mxu0 %v10419_v22  ;;  %7075 = vmatpush3.bf16.msra.mxu0 %v10625_v57  ;;  %v5154_v22 = vld [vmem:[%s11049_s11 + $0x418] sm:$0xff] }
 0x3e8   :  { %3662 = vmatmul.mubr.f32.gmra.mrb[190].mxu1 %v10650_v31  ;;  %7077 = vmatprep.subr.bf16.mxu0 %v10630_v50  ;;  %v7084_v51 = vpack.c.bf16 %v5154_v22, %v5153_v23  ;;  %v5157_v23 = vld [vmem:[%s11049_s11 + $0x430] sm:$0xff]  ;;  %v5158_v22 = vld [vmem:[%s11049_s11 + $0x438] sm:$0xff] }
 0x3e9   :  { %3876 = vmatprep.mubr.f32.mxu1 %v11261_v1 }
 0x3ea   :  { %6510 = vmatmul.mubr.f32.gmra.mrb[174].mxu0 %v10426_v60 }
 0x3eb   :  { %7079 = vmatpush3.bf16.msra.mxu0 %v10652_v11  ;;  %4237 = vmatprep.mubr.f32.mxu0 %v10073_v43 }
 0x3ec   :  { %3877 = vmatmul.mubr.f32.vlgmr.msra.gmra.mrb[192].mxu1 %v11289_v9  ;;  %7081 = vmatprep.subr.bf16.mxu0 %v7080_v17 }
 0x3ed   :  { %3881 = vmatprep.mubr.f32.mxu1 %v10071_v20  ;;  %7120 = vmatpush3.bf16.msra.mxu1 %v10464_v32  ;;  %v7088_v20 = vpack.c.bf16 %v5156_v3, %v5155_v45  ;;  %v5160_v32 = vld [vmem:[%s11049_s11 + $0x448] sm:$0xff] }
 0x3ee   :  { %4238 = vmatmul.mubr.f32.vlgmr.msra.gmra.mrb[176].mxu0 %v10183_v29  ;;  %7113 = vmatprep.subr.bf16.mxu1 %v10468_v16  ;;  %v5162_v16 = vld [vmem:[%s11049_s11 + $0x458] sm:$0xff] }
 0x3ef   :  { %4242 = vmatprep.mubr.f32.mxu0 %v10075_v37  ;;  %7083 = vmatpush3.bf16.msra.mxu0 %v7080_v17 }
 0x3f0   :  { %3882 = vmatmul.mubr.f32.gmra.mrb[194].mxu1 %v10126_v61  ;;  %7085 = vmatprep.subr.bf16.mxu0 %v7084_v51  ;;  %v5159_v61 = vld [vmem:[%s11049_s11 + $0x440] sm:$0xff] }
 0x3f1   :  { %3886 = vmatprep.mubr.f32.mxu1 %v10073_v43  ;;  %7121 = vmatpush3.bf16.msra.mxu1 %v10490_v39  ;;  %v7092_v43 = vpack.c.bf16 %v5158_v22, %v5157_v23  ;;  %v5164_v39 = vld [vmem:[%s11049_s11 + $0x468] sm:$0xff] }
 0x3f2   :  { %4243 = vmatmul.mubr.f32.gmra.mrb[178].mxu0 %v10220_v14  ;;  %7114 = vmatprep.subr.bf16.mxu1 %v10495_v54 }
 0x3f3   :  { %4247 = vmatprep.mubr.f32.mxu0 %v10088_v40  ;;  %7087 = vmatpush3.bf16.msra.mxu0 %v7084_v51 }
 0x3f4   :  { %3887 = vmatmul.mubr.f32.gmra.mrb[196].mxu1 %v10183_v29  ;;  %7089 = vmatprep.subr.bf16.mxu0 %v7088_v20  ;;  %v5161_v29 = vld [vmem:[%s11049_s11 + $0x450] sm:$0xff] }
 0x3f5   :  { %3891 = vmatprep.mubr.f32.mxu1 %v10075_v37  ;;  %7122 = vmatpush3.bf16.msra.mxu1 %v10517_v15  ;;  %v7096_v37 = vpack.c.bf16 %v5160_v32, %v5159_v61 }
 0x3f6   :  { %4248 = vmatmul.mubr.f32.gmra.mrb[180].mxu0 %v10280_v18  ;;  %7115 = vmatprep.subr.bf16.mxu1 %v10522_v33 }
 0x3f7   :  { %4252 = vmatprep.mubr.f32.mxu0 %v10090_v59  ;;  %7091 = vmatpush3.bf16.msra.mxu0 %v7088_v20 }
 0x3f8   :  { %3892 = vmatmul.mubr.f32.gmra.mrb[198].mxu1 %v10220_v14  ;;  %7093 = vmatprep.subr.bf16.mxu0 %v7092_v43  ;;  %v5163_v14 = vld [vmem:[%s11049_s11 + $0x460] sm:$0xff] }
 0x3f9   :  { %3896 = vmatprep.mubr.f32.mxu1 %v10088_v40  ;;  %7123 = vmatpush3.bf16.msra.mxu1 %v10544_v47  ;;  %v7100_v40 = vpack.c.bf16 %v5162_v16, %v5161_v29 }
 0x3fa   :  { %4253 = vmatmul.mubr.f32.gmra.mrb[182].mxu0 %v10325_v63  ;;  %7116 = vmatprep.subr.bf16.mxu1 %v10549_v53  ;;  %v7104_v53 = vpack.c.bf16 %v5164_v39, %v5163_v14 }
 0x3fb   :  { %4257 = vmatprep.mubr.f32.mxu0 %v10116_v25  ;;  %7095 = vmatpush3.bf16.msra.mxu0 %v7092_v43  ;;  %v7251_v43 = vmov 0  }
 0x3fc   :  { %3897 = vmatmul.mubr.f32.gmra.mrb[200].mxu1 %v10280_v18  ;;  %7097 = vmatprep.subr.bf16.mxu0 %v7096_v37  ;;  %v5166_v18 = vld [vmem:[%s11049_s11 + $0x478] sm:$0xff] }
 0x3fd   :  { %3901 = vmatprep.mubr.f32.mxu1 %v10090_v59  ;;  %7124 = vmatpush3.bf16.msra.mxu1 %v10571_v7  ;;  %v5165_v59 = vld [vmem:[%s11049_s11 + $0x470] sm:$0xff] }
 0x3fe   :  { %4258 = vmatmul.mubr.f32.gmra.mrb[184].mxu0 %v10368_v0  ;;  %7117 = vmatprep.subr.bf16.mxu1 %v10576_v24  ;;  %v7108_v24 = vpack.c.bf16 %v5166_v18, %v5165_v59 }
 0x3ff   :  { %4262 = vmatprep.mubr.f32.mxu0 %v10162_v38  ;;  %7099 = vmatpush3.bf16.msra.mxu0 %v7096_v37 }
 0x400   :  { %3902 = vmatmul.mubr.f32.gmra.mrb[202].mxu1 %v10325_v63  ;;  %7101 = vmatprep.subr.bf16.mxu0 %v7100_v40 }
 0x401   :  { %3906 = vmatprep.mubr.f32.mxu1 %v10116_v25  ;;  %7125 = vmatpush3.bf16.msra.mxu1 %v10598_v34  ;;  %v11327_v25 = vld [vmem:[#allocation75_spill] sm:$0xff] }
 0x402   :  { %4263 = vmatmul.mubr.f32.gmra.mrb[186].mxu0 %v10407_v42  ;;  %7118 = vmatprep.subr.bf16.mxu1 %v10603_v6  ;;  %v11325_v6 = vld [vmem:[#allocation69_spill] sm:$0xff] }
 0x403   :  { %4267 = vmatprep.mubr.f32.mxu0 %v10207_v62  ;;  %7103 = vmatpush3.bf16.msra.mxu0 %v7100_v40  ;;  %v11332_v62 = vld [vmem:[#allocation22_spill] sm:$0xff] }
 0x404   :  { %3907 = vmatmul.mubr.f32.gmra.mrb[204].mxu1 %v10368_v0  ;;  %7105 = vmatprep.subr.bf16.mxu0 %v7104_v53 }
 0x405   :  { %3911 = vmatprep.mubr.f32.mxu1 %v10162_v38  ;;  %7126 = vmatpush3.bf16.msra.mxu1 %v10625_v57  ;;  %v11326_v38 = vld [vmem:[#allocation67_spill] sm:$0xff] }
 0x406   :  { %4268 = vmatmul.mubr.f32.gmra.mrb[188].mxu0 %v10437_v49  ;;  %7119 = vmatprep.subr.bf16.mxu1 %v10630_v50 }
 0x407   :  { %4272 = vmatprep.mubr.f32.mxu0 %v11261_v1  ;;  %7107 = vmatpush3.bf16.msra.mxu0 %v7104_v53 }
 0x408   :  { %3912 = vmatmul.mubr.f32.gmra.mrb[206].mxu1 %v10407_v42  ;;  %7109 = vmatprep.subr.bf16.mxu0 %v7108_v24 }
 0x409   :  { %3916 = vmatprep.mubr.f32.mxu1 %v11261_v1  ;;  %7127 = vmatpush3.bf16.msra.mxu1 %v10652_v11 }
 0x40a   :  { %4273 = vmatmul.mubr.f32.gmra.mrb[190].mxu0 %v11289_v9  ;;  %7215 = vset.pattern.permute.xlu1 %v7251_v43 }
 0x40b   :  { %4277 = vmatprep.mubr.f32.mxu0 %v10250_v8  ;;  %7111 = vmatpush3.bf16.msra.mxu0 %v7108_v24 }
 0x40c   :  { %3917 = vmatmul.mubr.f32.gmra.mrb[208].mxu1 %v11289_v9  ;;  %7214 = vset.pattern.permute.xlu0 %v7251_v43 }
 0x40d   :  { %3921 = vmatprep.mubr.f32.mxu1 %v10222_v36 }
 0x40e   :  { %4278 = vmatmul.mubr.f32.gmra.mrb[192].mxu0 %v10488_v41 }
 0x40f   :  { %4282 = vmatprep.mubr.f32.mxu0 %v10273_v13 }
 0x410   :  { %3922 = vmatmul.mubr.f32.gmra.mrb[210].mxu1 %v10462_v58 }
 0x411   :  { %3926 = vmatprep.mubr.f32.mxu1 %v10250_v8 }
 0x412   :  { %4283 = vmatmul.mubr.f32.gmra.mrb[194].mxu0 %v10515_v48 }
 0x413   :  { %4287 = vmatprep.mubr.f32.mxu0 %v10299_v56 }
 0x414   :  { %3927 = vmatmul.mubr.f32.gmra.mrb[212].mxu1 %v10488_v41 }
 0x415   :  { %3931 = vmatprep.mubr.f32.mxu1 %v10273_v13 }
 0x416   :  { %4288 = vmatmul.mubr.f32.gmra.mrb[196].mxu0 %v10542_v52 }
 0x417   :  { %4292 = vmatprep.mubr.f32.mxu0 %v10318_v27 }
 0x418   :  { %3932 = vmatmul.mubr.f32.gmra.mrb[214].mxu1 %v10515_v48 }
 0x419   :  { %3936 = vmatprep.mubr.f32.mxu1 %v10299_v56 }
 0x41a   :  { %4293 = vmatmul.mubr.f32.gmra.mrb[198].mxu0 %v10568_v30 }
 0x41b   :  { %6544 = vmatprep.mubr.f32.mxu0 %v10134_v26  ;;  %v11328_v26 = vld [vmem:[#allocation14_spill] sm:$0xff] }
 0x41c   :  { %3937 = vmatmul.mubr.f32.gmra.mrb[216].mxu1 %v10542_v52 }
 0x41d   :  { %3941 = vmatprep.mubr.f32.mxu1 %v10318_v27 }
 0x41e   :  { %6545 = vmatmul.mubr.f32.vlgmr.msra.gmra.mrb[160].mxu0 %v10160_v12  ;;  %v11329_v12 = vld [vmem:[#allocation16_spill] sm:$0xff] }
 0x41f   :  { %6547 = vmatprep.mubr.f32.mxu0 %v10187_v5  ;;  %v11330_v5 = vld [vmem:[#allocation18_spill] sm:$0xff] }
 0x420   :  { %3942 = vmatmul.mubr.f32.gmra.mrb[218].mxu1 %v10568_v30 }
 0x421   :  { %3946 = vmatprep.mubr.f32.mxu1 %v10342_v35 }
 0x422   :  { %6548 = vmatmul.mubr.f32.gmra.mrb[162].mxu0 %v10200_v28  ;;  %v11331_v28 = vld [vmem:[#allocation20_spill] sm:$0xff] }
 0x423   :  { %6550 = vmatprep.mubr.f32.mxu0 %v10230_v21 }
 0x424   :  { %3947 = vmatmul.mubr.f32.gmra.mrb[220].mxu1 %v10596_v55 }
 0x425   :  { %3951 = vmatprep.mubr.f32.mxu1 %v10363_v46 }
 0x426   :  { %6551 = vmatmul.mubr.f32.gmra.mrb[164].mxu0 %v10270_v4 }
 0x427   :  { %6553 = vmatprep.mubr.f32.mxu0 %v11325_v6 }
 0x428   :  { %3952 = vmatmul.mubr.f32.gmra.mrb[222].mxu1 %v10623_v10 }
 0x429   :  { %4297 = vmatprep.mubr.f32.mxu1 %v10342_v35 }
 0x42a   :  { %6554 = vmatmul.mubr.f32.gmra.mrb[166].mxu0 %v11326_v38 }
 0x42b   :  { %6556 = vmatprep.mubr.f32.mxu0 %v11327_v25 }
 0x42c   :  { %4298 = vmatmul.mubr.f32.vlgmr.msra.gmra.mrb[224].mxu1 %v10596_v55 }
 0x42d   :  { %4302 = vmatprep.mubr.f32.mxu1 %v10363_v46 }
 0x42e   :  { %6557 = vmatmul.mubr.f32.gmra.mrb[168].mxu0 %v11328_v26 }
 0x42f   :  { %6559 = vmatprep.mubr.f32.mxu0 %v11329_v12 }
 0x430   :  { %4303 = vmatmul.mubr.f32.gmra.mrb[226].mxu1 %v10623_v10 }
 0x431   :  { %4307 = vmatprep.mubr.f32.mxu1 %v10377_v44 }
 0x432   :  { %6560 = vmatmul.mubr.f32.gmra.mrb[170].mxu0 %v11330_v5 }
 0x433   :  { %6562 = vmatprep.mubr.f32.mxu0 %v11331_v28 }
 0x434   :  { %4308 = vmatmul.mubr.f32.gmra.mrb[228].mxu1 %v10650_v31 }
 0x435   :  { %4312 = vmatprep.mubr.f32.mxu1 %v11261_v1 }
 0x436   :  { %6563 = vmatmul.mubr.f32.gmra.mrb[172].mxu0 %v10426_v60 }
 0x437   :  { %6565 = vmatprep.mubr.f32.mxu0 %v11332_v62 }
 0x438   :  { %4313 = vmatmul.mubr.f32.gmra.mrb[230].mxu1 %v11289_v9 }
 0x43a   :  { %6566 = vmatmul.mubr.f32.gmra.mrb[174].mxu0 %v11326_v38 }
 0x47f   :  { %v5984_v36 = vpop.f32.mrb[160].mxu1 }
 0x480   :  { %v5985_v21 = vpop.f32.mrb[161].mxu1 }
 0x481   :  { %v5986_v8 = vadd.f32 %v5985_v21, %v5984_v36 }
 0x483   :  { %v5987_v4 = vpop.f32.mrb[162].mxu1 }
 0x484   :  { %v5988_v13 = vpop.f32.mrb[163].mxu1 }
 0x485   :  { %v5989_v50 = vadd.f32 %v5988_v13, %v5987_v4 }
 0x487   :  { %v5990_v56 = vpop.f32.mrb[164].mxu1 }
 0x488   :  { %v5991_v27 = vpop.f32.mrb[165].mxu1 }
 0x489   :  { %v10795_v63 = vadd.f32 %v5991_v27, %v5990_v56 }
 0x48b   :  { %v5993_v35 = vpop.f32.mrb[166].mxu1 }
 0x48c   :  { %v5994_v1 = vpop.f32.mrb[167].mxu1 }
 0x48d   :  { %v10797_v46 = vadd.f32 %v5994_v1, %v5993_v35 }
 0x48f   :  { %v5996_v0 = vpop.f32.mrb[168].mxu1 }
 0x490   :  { %v5997_v44 = vpop.f32.mrb[169].mxu1 }
 0x491   :  { %v10799_v42 = vadd.f32 %v5997_v44, %v5996_v0 }
 0x493   :  { %v5999_v9 = vpop.f32.mrb[170].mxu1 }
 0x494   :  { %v6000_v60 = vpop.f32.mrb[171].mxu1 }
 0x495   :  { %v10801_v49 = vadd.f32 %v6000_v60, %v5999_v9 }
 0x497   :  { %v6002_v58 = vpop.f32.mrb[172].mxu1 }
 0x498   :  { %v6003_v41 = vpop.f32.mrb[173].mxu1 }
 0x499   :  { %v10803_v54 = vadd.f32 %v6003_v41, %v6002_v58 }
 0x49b   :  { %v6005_v48 = vpop.f32.mrb[174].mxu1 }
 0x49c   :  { %v6006_v15 = vpop.f32.mrb[175].mxu1 }
 0x49d   :  { %v10805_v33 = vadd.f32 %v6006_v15, %v6005_v48 }
 0x49f   :  { %v6008_v52 = vpop.f32.mrb[176].mxu1 }
 0x4a0   :  { %v6009_v47 = vpop.f32.mrb[177].mxu1 }
 0x4a1   :  { %v10807_v30 = vadd.f32 %v6009_v47, %v6008_v52 }
 0x4a3   :  { %v6011_v7 = vpop.f32.mrb[178].mxu1 }
 0x4a4   :  { %v6012_v55 = vpop.f32.mrb[179].mxu1 }
 0x4a5   :  { %v10809_v34 = vadd.f32 %v6012_v55, %v6011_v7 }
 0x4a7   :  { %v6014_v10 = vpop.f32.mrb[180].mxu1 }
 0x4a8   :  { %v6015_v57 = vpop.f32.mrb[181].mxu1 }
 0x4a9   :  { %v10811_v2 = vadd.f32 %v6015_v57, %v6014_v10 }
 0x4ab   :  { %v6017_v19 = vpop.f32.mrb[182].mxu1 }
 0x4ac   :  { %v6018_v31 = vpop.f32.mrb[183].mxu1 }
 0x4ad   :  { %v10813_v11 = vadd.f32 %v6018_v31, %v6017_v19 }
 0x4af   :  { %v6020_v17 = vpop.f32.mrb[184].mxu1 }
 0x4b0   :  { %v6021_v51 = vpop.f32.mrb[185].mxu1 }
 0x4b1   :  { %v10815_v45 = vadd.f32 %v6021_v51, %v6020_v17 }
 0x4b3   :  { %v6023_v3 = vpop.f32.mrb[186].mxu1 }
 0x4b4   :  { %v6024_v20 = vpop.f32.mrb[187].mxu1 }
 0x4b5   :  { %v10817_v23 = vadd.f32 %v6024_v20, %v6023_v3 }
 0x4b7   :  { %v6026_v22 = vpop.f32.mrb[188].mxu1 }
 0x4b8   :  { %v6027_v61 = vpop.f32.mrb[189].mxu1 }
 0x4b9   :  { %v10819_v32 = vadd.f32 %v6027_v61, %v6026_v22 }
 0x4bb   :  { %v6029_v37 = vpop.f32.mrb[190].mxu1 }
 0x4bc   :  { %v6030_v29 = vpop.f32.mrb[191].mxu1 }
 0x4bd   :  { %v10821_v16 = vadd.f32 %v6030_v29, %v6029_v37 }
 0x4bf   :  { %v6096_v40 = vpop.f32.mrb[192].mxu1 }
 0x4c0   :  { %v6097_v14 = vpop.f32.mrb[193].mxu1 }
 0x4c1   :  { %v6098_v39 = vadd.f32 %v6097_v14, %v6096_v40  ;;  %v6208_v53 = vpop.f32.mrb[176].mxu0 }
 0x4c2   :  { %v6209_v59 = vpop.f32.mrb[177].mxu0 }
 0x4c3   :  { %v7131_v18 = vadd.f32 %v6098_v39, %v5986_v8  ;;  %v6210_v24 = vadd.f32 %v6209_v59, %v6208_v53  ;;  %v6099_v6 = vpop.f32.mrb[194].mxu1 }
 0x4c4   :  { %v6100_v38 = vpop.f32.mrb[195].mxu1 }
 0x4c5   :  { %v6101_v25 = vadd.f32 %v6100_v38, %v6099_v6  ;;  %v6211_v26 = vpop.f32.mrb[178].mxu0  ;;  %v10823_v12 = vadd.f32 %v7131_v18, %v6210_v24 }
 0x4c6   :  { %v6212_v5 = vpop.f32.mrb[179].mxu0 }
 0x4c7   :  { %v7128_v28 = vadd.f32 %v6101_v25, %v5989_v50  ;;  %v6213_v62 = vadd.f32 %v6212_v5, %v6211_v26  ;;  %v6102_v36 = vpop.f32.mrb[196].mxu1 }
 0x4c8   :  { %v6103_v21 = vpop.f32.mrb[197].mxu1 }
 0x4c9   :  { %v6104_v4 = vadd.f32 %v6103_v21, %v6102_v36  ;;  %v6214_v13 = vpop.f32.mrb[180].mxu0  ;;  %v10825_v56 = vadd.f32 %v7128_v28, %v6213_v62 }
 0x4ca   :  { %v6215_v27 = vpop.f32.mrb[181].mxu0 }
 0x4cb   :  { %v7137_v35 = vadd.f32 %v6104_v4, %v10795_v63  ;;  %v6216_v8 = vadd.f32 %v6215_v27, %v6214_v13  ;;  %v6105_v1 = vpop.f32.mrb[198].mxu1 }
 0x4cc   :  { %v6106_v0 = vpop.f32.mrb[199].mxu1 }
 0x4cd   :  { %v6107_v44 = vadd.f32 %v6106_v0, %v6105_v1  ;;  %v6217_v9 = vpop.f32.mrb[182].mxu0  ;;  %v10828_v60 = vadd.f32 %v7137_v35, %v6216_v8 }
 0x4ce   :  { %v6218_v58 = vpop.f32.mrb[183].mxu0 }
 0x4cf   :  { %v7134_v50 = vadd.f32 %v6107_v44, %v10797_v46  ;;  %v6219_v41 = vadd.f32 %v6218_v58, %v6217_v9  ;;  %v6108_v48 = vpop.f32.mrb[200].mxu1 }
 0x4d0   :  { %v6109_v15 = vpop.f32.mrb[201].mxu1 }
 0x4d1   :  { %v6110_v52 = vadd.f32 %v6109_v15, %v6108_v48  ;;  %v6220_v47 = vpop.f32.mrb[184].mxu0  ;;  %v10831_v7 = vadd.f32 %v7134_v50, %v6219_v41 }
 0x4d2   :  { %v6221_v55 = vpop.f32.mrb[185].mxu0 }
 0x4d3   :  { %v7143_v63 = vadd.f32 %v6110_v52, %v10799_v42  ;;  %v6222_v10 = vadd.f32 %v6221_v55, %v6220_v47  ;;  %v6111_v57 = vpop.f32.mrb[202].mxu1 }
 0x4d4   :  { %v6112_v19 = vpop.f32.mrb[203].mxu1 }
 0x4d5   :  { %v6113_v31 = vadd.f32 %v6112_v19, %v6111_v57  ;;  %v6223_v17 = vpop.f32.mrb[186].mxu0  ;;  %v10834_v51 = vadd.f32 %v7143_v63, %v6222_v10 }
 0x4d6   :  { %v6224_v3 = vpop.f32.mrb[187].mxu0 }
 0x4d7   :  { %v7140_v46 = vadd.f32 %v6113_v31, %v10801_v49  ;;  %v6225_v20 = vadd.f32 %v6224_v3, %v6223_v17  ;;  %v6114_v22 = vpop.f32.mrb[204].mxu1 }
 0x4d8   :  { %v6115_v43 = vpop.f32.mrb[205].mxu1 }
 0x4d9   :  { %v6116_v61 = vadd.f32 %v6115_v43, %v6114_v22  ;;  %v6226_v37 = vpop.f32.mrb[188].mxu0  ;;  %v10837_v29 = vadd.f32 %v7140_v46, %v6225_v20 }
 0x4da   :  { %v6227_v40 = vpop.f32.mrb[189].mxu0 }
 0x4db   :  { %v7149_v42 = vadd.f32 %v6116_v61, %v10803_v54  ;;  %v6228_v14 = vadd.f32 %v6227_v40, %v6226_v37  ;;  %v6117_v39 = vpop.f32.mrb[206].mxu1 }
 0x4dc   :  { %v6118_v53 = vpop.f32.mrb[207].mxu1 }
 0x4dd   :  { %v6119_v59 = vadd.f32 %v6118_v53, %v6117_v39  ;;  %v6229_v18 = vpop.f32.mrb[190].mxu0  ;;  %v10840_v24 = vadd.f32 %v7149_v42, %v6228_v14 }
 0x4de   :  { %v6230_v6 = vpop.f32.mrb[191].mxu0 }
 0x4df   :  { %v7146_v49 = vadd.f32 %v6119_v59, %v10805_v33  ;;  %v6231_v38 = vadd.f32 %v6230_v6, %v6229_v18  ;;  %v6120_v25 = vpop.f32.mrb[208].mxu1 }
 0x4e0   :  { %v6121_v26 = vpop.f32.mrb[209].mxu1 }
 0x4e1   :  { %v6122_v5 = vadd.f32 %v6121_v26, %v6120_v25  ;;  %v6232_v28 = vpop.f32.mrb[192].mxu0  ;;  %v10843_v62 = vadd.f32 %v7146_v49, %v6231_v38 }
 0x4e2   :  { %v6233_v36 = vpop.f32.mrb[193].mxu0 }
 0x4e3   :  { %v7155_v54 = vadd.f32 %v6122_v5, %v10807_v30  ;;  %v6234_v21 = vadd.f32 %v6233_v36, %v6232_v28  ;;  %v6123_v4 = vpop.f32.mrb[210].mxu1 }
 0x4e4   :  { %v6124_v13 = vpop.f32.mrb[211].mxu1 }
 0x4e5   :  { %v6125_v27 = vadd.f32 %v6124_v13, %v6123_v4  ;;  %v6235_v35 = vpop.f32.mrb[194].mxu0  ;;  %v10846_v8 = vadd.f32 %v7155_v54, %v6234_v21 }
 0x4e6   :  { %v6236_v1 = vpop.f32.mrb[195].mxu0 }
 0x4e7   :  { %v7152_v33 = vadd.f32 %v6125_v27, %v10809_v34  ;;  %v6237_v0 = vadd.f32 %v6236_v1, %v6235_v35  ;;  %v6126_v44 = vpop.f32.mrb[212].mxu1 }
 0x4e8   :  { %v6127_v9 = vpop.f32.mrb[213].mxu1 }
 0x4e9   :  { %v6128_v58 = vadd.f32 %v6127_v9, %v6126_v44  ;;  %v6238_v50 = vpop.f32.mrb[196].mxu0  ;;  %v10849_v41 = vadd.f32 %v7152_v33, %v6237_v0 }
 0x4ea   :  { %v6239_v48 = vpop.f32.mrb[197].mxu0 }
 0x4eb   :  { %v7161_v30 = vadd.f32 %v6128_v58, %v10811_v2  ;;  %v6240_v15 = vadd.f32 %v6239_v48, %v6238_v50  ;;  %v6129_v52 = vpop.f32.mrb[214].mxu1 }
 0x4ec   :  { %v6130_v47 = vpop.f32.mrb[215].mxu1 }
 0x4ed   :  { %v6131_v55 = vadd.f32 %v6130_v47, %v6129_v52  ;;  %v6241_v63 = vpop.f32.mrb[198].mxu0  ;;  %v10852_v10 = vadd.f32 %v7161_v30, %v6240_v15 }
 0x4ee   :  { %v6242_v57 = vpop.f32.mrb[199].mxu0 }
 0x4ef   :  { %v7158_v34 = vadd.f32 %v6131_v55, %v10813_v11  ;;  %v6243_v19 = vadd.f32 %v6242_v57, %v6241_v63  ;;  %v6132_v31 = vpop.f32.mrb[216].mxu1 }
 0x4f0   :  { %v6133_v17 = vpop.f32.mrb[217].mxu1 }
 0x4f1   :  { %v6134_v3 = vadd.f32 %v6133_v17, %v6132_v31  ;;  %v6546_v46 = vpop.f32.mrb[160].mxu0  ;;  %v10855_v20 = vadd.f32 %v7158_v34, %v6243_v19 }
 0x4f2   :  { %v10858_v22 = vadd.f32 %v10825_v56, %v6546_v46  ;;  %v4384_v2 = vpop.f32.mrb[161].mxu0 }
 0x4f3   :  { %v7167_v43 = vadd.f32 %v6134_v3, %v10815_v45  ;;  %v10862_v61 = vadd.f32 %v10823_v12, %v4384_v2  ;;  %v6135_v37 = vpop.f32.mrb[218].mxu1 }
 0x4f4   :  { %v4503_v11 = vmul.f32 %v10858_v22, %v10858_v22  ;;  %v6136_v40 = vpop.f32.mrb[219].mxu1 }
 0x4f5   :  { %v4481_v42 = vadd.f32 %v10862_v61, %v10858_v22  ;;  %v4502_v14 = vmul.f32 %v10862_v61, %v10862_v61  ;;  %v6137_v39 = vadd.f32 %v6136_v40, %v6135_v37  ;;  %v6549_v56 = vpop.f32.mrb[162].mxu0 }
 0x4f6   :  { %v10871_v53 = vadd.f32 %v10831_v7, %v6549_v56  ;;  %v4394_v45 = vpop.f32.mrb[163].mxu0 }
 0x4f7   :  { %v4518_v59 = vadd.f32 %v4503_v11, %v4502_v14  ;;  %v7164_v12 = vadd.f32 %v6137_v39, %v10817_v23  ;;  %v10875_v18 = vadd.f32 %v10828_v60, %v4394_v45  ;;  %v6138_v6 = vpop.f32.mrb[220].mxu1 }
 0x4f8   :  { %v6139_v49 = vpop.f32.mrb[221].mxu1  ;;  %v4505_v7 = vmul.f32 %v10871_v53, %v10871_v53 }
 0x4f9   :  { %v4482_v38 = vadd.f32 %v10875_v18, %v4481_v42  ;;  %v4504_v25 = vmul.f32 %v10875_v18, %v10875_v18  ;;  %v6140_v26 = vadd.f32 %v6139_v49, %v6138_v6  ;;  %v6552_v5 = vpop.f32.mrb[164].mxu0 }
 0x4fa   :  { %v10883_v28 = vadd.f32 %v10837_v29, %v6552_v5  ;;  %v4404_v36 = vpop.f32.mrb[165].mxu0 }
 0x4fb   :  { %v4519_v23 = vadd.f32 %v4518_v59, %v4504_v25  ;;  %v7173_v60 = vadd.f32 %v6140_v26, %v10819_v32  ;;  %v10887_v54 = vadd.f32 %v10834_v51, %v4404_v36  ;;  %v4483_v21 = vadd.f32 %v10871_v53, %v4482_v38  ;;  %v6141_v4 = vpop.f32.mrb[222].mxu1 }
 0x4fc   :  { %v6142_v13 = vpop.f32.mrb[223].mxu1  ;;  %v4507_v0 = vmul.f32 %v10883_v28, %v10883_v28 }
 0x4fd   :  { %v4484_v27 = vadd.f32 %v10887_v54, %v4483_v21  ;;  %v4506_v35 = vmul.f32 %v10887_v54, %v10887_v54  ;;  %v4520_v1 = vadd.f32 %v4519_v23, %v4505_v7  ;;  %v6143_v33 = vadd.f32 %v6142_v13, %v6141_v4  ;;  %v6555_v29 = vpop.f32.mrb[166].mxu0 }
 0x4fe   :  { %v10896_v32 = vadd.f32 %v10843_v62, %v6555_v29  ;;  %v4414_v51 = vpop.f32.mrb[167].mxu0 }
 0x4ff   :  { %v4521_v44 = vadd.f32 %v4520_v1, %v4506_v35  ;;  %v7170_v9 = vadd.f32 %v6143_v33, %v10821_v16  ;;  %v10900_v58 = vadd.f32 %v10840_v24, %v4414_v51  ;;  %v4485_v50 = vadd.f32 %v10883_v28, %v4484_v27  ;;  %v6244_v48 = vpop.f32.mrb[224].mxu1 }
 0x500   :  { %v6245_v30 = vpop.f32.mrb[225].mxu1  ;;  %v4509_v63 = vmul.f32 %v10896_v32, %v10896_v32 }
 0x501   :  { %v4486_v15 = vadd.f32 %v10900_v58, %v4485_v50  ;;  %v4508_v52 = vmul.f32 %v10900_v58, %v10900_v58  ;;  %v4522_v47 = vadd.f32 %v4521_v44, %v4507_v0  ;;  %v6246_v55 = vadd.f32 %v6245_v30, %v6244_v48  ;;  %v6558_v62 = vpop.f32.mrb[168].mxu0 }
 0x502   :  { %v10909_v16 = vadd.f32 %v10849_v41, %v6558_v62  ;;  %v4424_v24 = vpop.f32.mrb[169].mxu0 }
 0x503   :  { %v4523_v57 = vadd.f32 %v4522_v47, %v4508_v52  ;;  %v10912_v34 = vadd.f32 %v10846_v8, %v4424_v24  ;;  %v4487_v19 = vadd.f32 %v10896_v32, %v4486_v15  ;;  %v6247_v31 = vpop.f32.mrb[226].mxu1  ;;  %v7168_v17 = vadd.f32 %v7167_v43, %v6246_v55 }
 0x504   :  { %v6248_v3 = vpop.f32.mrb[227].mxu1  ;;  %v4511_v41 = vmul.f32 %v10909_v16, %v10909_v16 }
 0x505   :  { %v4488_v46 = vadd.f32 %v10912_v34, %v4487_v19  ;;  %v4510_v2 = vmul.f32 %v10912_v34, %v10912_v34  ;;  %v4524_v37 = vadd.f32 %v4523_v57, %v4509_v63  ;;  %v6249_v11 = vadd.f32 %v6248_v3, %v6247_v31  ;;  %v6561_v40 = vpop.f32.mrb[170].mxu0 }
 0x506   :  { %v10921_v42 = vadd.f32 %v10855_v20, %v6561_v40  ;;  %v4434_v8 = vpop.f32.mrb[171].mxu0 }
 0x507   :  { %v4525_v14 = vadd.f32 %v4524_v37, %v4510_v2  ;;  %v10924_v39 = vadd.f32 %v10852_v10, %v4434_v8  ;;  %v4489_v43 = vadd.f32 %v10909_v16, %v4488_v46  ;;  %v6250_v56 = vpop.f32.mrb[228].mxu1  ;;  %v7165_v45 = vadd.f32 %v7164_v12, %v6249_v11 }
 0x508   :  { %v6251_v59 = vpop.f32.mrb[229].mxu1  ;;  %v4513_v20 = vmul.f32 %v10921_v42, %v10921_v42 }
 0x509   :  { %v4490_v6 = vadd.f32 %v10924_v39, %v4489_v43  ;;  %v4512_v49 = vmul.f32 %v10924_v39, %v10924_v39  ;;  %v4526_v38 = vadd.f32 %v4525_v14, %v4511_v41  ;;  %v6252_v25 = vadd.f32 %v6251_v59, %v6250_v56  ;;  %v6564_v26 = vpop.f32.mrb[172].mxu0 }
 0x50a   :  { %v10932_v5 = vadd.f32 %v7165_v45, %v6564_v26  ;;  %v4444_v10 = vpop.f32.mrb[173].mxu0 }
 0x50b   :  { %v4527_v7 = vadd.f32 %v4526_v38, %v4512_v49  ;;  %v10934_v36 = vadd.f32 %v7168_v17, %v4444_v10  ;;  %v4491_v12 = vadd.f32 %v10921_v42, %v4490_v6  ;;  %v6253_v23 = vpop.f32.mrb[230].mxu1  ;;  %v7174_v21 = vadd.f32 %v7173_v60, %v6252_v25 }
 0x50c   :  { %v6254_v4 = vpop.f32.mrb[231].mxu1  ;;  %v4515_v29 = vmul.f32 %v10932_v5, %v10932_v5 }
 0x50d   :  { %v4492_v13 = vadd.f32 %v10934_v36, %v4491_v12  ;;  %v4514_v27 = vmul.f32 %v10934_v36, %v10934_v36  ;;  %v4528_v35 = vadd.f32 %v4527_v7, %v4513_v20  ;;  %v6255_v1 = vadd.f32 %v6254_v4, %v6253_v23  ;;  %v6567_v33 = vpop.f32.mrb[174].mxu0 }
 0x50e   :  { %v4454_v0 = vpop.f32.mrb[175].mxu0 }
 0x50f   :  { %v4529_v51 = vadd.f32 %v4528_v35, %v4514_v27  ;;  %v7171_v44 = vadd.f32 %v7170_v9, %v6255_v1  ;;  %v10942_v50 = vadd.f32 %v7174_v21, %v4454_v0  ;;  %v4493_v48 = vadd.f32 %v10932_v5, %v4492_v13 }
 0x511   :  { %v10945_v60 = vadd.f32 %v7171_v44, %v6567_v33  ;;  %v4494_v30 = vadd.f32 %v10942_v50, %v4493_v48  ;;  %v4516_v15 = vmul.f32 %v10942_v50, %v10942_v50  ;;  %v4530_v52 = vadd.f32 %v4529_v51, %v4515_v29 }
 0x513   :  { %v4517_v47 = vmul.f32 %v10945_v60, %v10945_v60  ;;  %v4495_v55 = vadd.f32 %v10945_v60, %v4494_v30  ;;  %v4531_v62 = vadd.f32 %v4530_v52, %v4516_v15 }
 0x515   :  { %v4496_v63 = vrot.slane %v4495_v55, 4  ;;  %v4532_v9 = vadd.f32 %v4531_v62, %v4517_v47 }
 0x517   :  { %v4497_v24 = vadd.f32 %v4496_v63, %v4495_v55  ;;  %v4533_v57 = vrot.slane %v4532_v9, 4 }
 0x519   :  { %v4498_v19 = vrot.slane %v4497_v24, 2  ;;  %v4534_v31 = vadd.f32 %v4533_v57, %v4532_v9 }
 0x51b   :  { %v4499_v17 = vadd.f32 %v4498_v19, %v4497_v24  ;;  %v4535_v3 = vrot.slane %v4534_v31, 2 }
 0x51d   :  { %v4500_v46 = vrot.slane %v4499_v17, 1  ;;  %v4536_v2 = vadd.f32 %v4535_v3, %v4534_v31 }
 0x51f   :  { %v4501_v37 = vadd.f32 %v4500_v46, %v4499_v17  ;;  %v4537_v11 = vrot.slane %v4536_v2, 1 }
 0x521   :  { %v4538_v40 = vadd.f32 %v4537_v11, %v4536_v2  ;;  %v4539_v41 = vmul.f32 0.0078125, %v4501_v37 }
 0x523   :  { %v4540_v8 = vmul.f32 0.0078125, %v4538_v40  ;;  %v4541_v14 = vmul.f32 %v4539_v41, %v4539_v41  ;;  %v4557_v43 = vsub.f32 %v10942_v50, %v4539_v41  ;;  %v4545_v56 = vsub.f32 %v10875_v18, %v4539_v41 }
 0x524   :  { %v4543_v45 = vsub.f32 %v10862_v61, %v4539_v41  ;;  %v4546_v59 = vsub.f32 %v10871_v53, %v4539_v41  ;;  %v4544_v6 = vsub.f32 %v10858_v22, %v4539_v41  ;;  %v4548_v49 = vsub.f32 %v10883_v28, %v4539_v41 }
 0x525   :  { %v4542_v38 = vsub.f32 %v4540_v8, %v4541_v14  ;;  %v4547_v25 = vsub.f32 %v10887_v54, %v4539_v41  ;;  %v4550_v26 = vsub.f32 %v10896_v32, %v4539_v41  ;;  %v4549_v20 = vsub.f32 %v10900_v58, %v4539_v41  ;;  %v4479_v54 = vld [vmem:[%s11050_s12] sm:$0x1]  ;;  %s7253_s12 = smov [#allocation3]  }
 0x526   :  { %v4552_v10 = vsub.f32 %v10909_v16, %v4539_v41  ;;  %v4551_v7 = vsub.f32 %v10912_v34, %v4539_v41  ;;  %v4554_v18 = vsub.f32 %v10921_v42, %v4539_v41  ;;  %v4553_v61 = vsub.f32 %v10924_v39, %v4539_v41  ;;  %v11333_v16 = vld [vmem:[#allocation6_spill] sm:$0xff] }
 0x527   :  { %v4559_v53 = vadd.f32 1e-05, %v4542_v38  ;;  %v4556_v22 = vsub.f32 %v10932_v5, %v4539_v41  ;;  %v4555_v28 = vsub.f32 %v10934_v36, %v4539_v41  ;;  %v4558_v12 = vsub.f32 %v10945_v60, %v4539_v41  ;;  %v5167_v42 = vld [vmem:[%s11051_s13] ss:$0 sm:$0xff]  ;;  %s4865_s13 = sshll.u32 %s7253_s12, 4  ;;  %s4866_s13 = int_to_ptr.vmem [resolvable:$true] %s4865_s13 }
 0x528   :  { %s7226_s30 = scalar_lea.vmem %s4866_s13, 2048  ;;  %p7231_p1 = scmp.lt.s32.totalorder %s4866_s13, %s4866_s13 }
 0x529   :  { %7224 = vrsqrt.f32 %v4559_v53  ;;  %p7227_p0 = scmp.ne.s32.totalorder %s4866_s13, %s7226_s30  ;;  %p7232_p2 = scmp.lt.s32.totalorder %s7226_s30, %s7226_s30 }
 0x52b   :  { %p7233_p3 = por %p7232_p2, %p7231_p1 }
 0x52d   :  { %p7234_p4 = pnand %p7233_p3, %p7227_p0 }
 0x533   :  { %v7225_v32 = vpop.eup %7224 }
 0x534   :  { %v4561_v58 = vmul.f32 %v7225_v32, %v4479_v54 }
 0x536   :  { %v4565_v34 = vrot.slane %v4561_v58, %v11333_v16 }
 0x538   :  { %v4568_v39 = vmul.f32 %v4565_v34, %v4545_v56  ;;  %v4566_v23 = vmul.f32 %v4565_v34, %v4543_v45  ;;  %v4569_v5 = vmul.f32 %v4565_v34, %v4546_v59  ;;  %v4567_v21 = vmul.f32 %v4565_v34, %v4544_v6 }
 0x539   :  { %v4571_v36 = vmul.f32 %v4565_v34, %v4548_v49  ;;  %v4570_v4 = vmul.f32 %v4565_v34, %v4547_v25  ;;  %v4573_v13 = vmul.f32 %v4565_v34, %v4550_v26  ;;  %v4572_v27 = vmul.f32 %v4565_v34, %v4549_v20 }
 0x53a   :  { %v4590_v35 = vadd.f32 %v5167_v42, %v4568_v39  ;;  %v4588_v1 = vadd.f32 %v5167_v42, %v4566_v23  ;;  %v4591_v0 = vadd.f32 %v5167_v42, %v4569_v5  ;;  %v4589_v51 = vadd.f32 %v5167_v42, %v4567_v21  ;;  %v11334_v21 = vld [vmem:[#allocation7_spill] sm:$0xff] }
 0x53b   :  { %v4593_v44 = vadd.f32 %v5167_v42, %v4571_v36  ;;  %v4575_v50 = vmul.f32 %v4565_v34, %v4552_v10  ;;  %v4574_v48 = vmul.f32 %v4565_v34, %v4551_v7  ;;  %v4577_v60 = vmul.f32 %v4565_v34, %v4554_v18 }
 0x53c   :  { %v4606_v33 = vmax.f32 %v4590_v35, 0.0  ;;  %v4604_v29 = vmax.f32 %v4588_v1, 0.0  ;;  %v4576_v30 = vmul.f32 %v4565_v34, %v4553_v61  ;;  %v4579_v15 = vmul.f32 %v4565_v34, %v4556_v22  ;;  %v11337_v1 = vld [vmem:[#allocation9_spill] sm:$0xff] }
 0x53d   :  { %v4578_v52 = vmul.f32 %v4565_v34, %v4555_v28  ;;  %v4581_v47 = vmul.f32 %v4565_v34, %v4558_v12  ;;  %v4607_v55 = vmax.f32 %v4591_v0, 0.0  ;;  %v4605_v62 = vmax.f32 %v4589_v51, 0.0 }
 0x53e   :  { %4632 = vperm.xlu1 %7215, %v4606_v33   ;;  %4622 = vperm.xlu0 %7214, %v4604_v29   ;;  %v4592_v63 = vadd.f32 %v5167_v42, %v4570_v4  ;;  %v4580_v9 = vmul.f32 %v4565_v34, %v4557_v43  ;;  %v4609_v24 = vmax.f32 %v4593_v44, 0.0  ;;  %v4595_v19 = vadd.f32 %v5167_v42, %v4573_v13  ;;  %v11335_v4 = vld [vmem:[#allocation11_spill] sm:$0xff] }
 0x53f   :  { %v4594_v31 = vadd.f32 %v5167_v42, %v4572_v27  ;;  %v4597_v46 = vadd.f32 %v5167_v42, %v4575_v50  ;;  %v4596_v2 = vadd.f32 %v5167_v42, %v4574_v48  ;;  %v4599_v40 = vadd.f32 %v5167_v42, %v4577_v60  ;;  %v11336_v27 = vld [vmem:[#allocation10_spill] sm:$0xff]  ;;  %v11338_v50 = vld [vmem:[#allocation13_spill] sm:$0xff] }
 0x540   :  { %v4608_v57 = vmax.f32 %v4592_v63, 0.0  ;;  %v4611_v17 = vmax.f32 %v4595_v19, 0.0  ;;  %v4598_v41 = vadd.f32 %v5167_v42, %v4576_v30  ;;  %v4601_v43 = vadd.f32 %v5167_v42, %v4579_v15  ;;  %v11339_v60 = vld [vmem:[#allocation17_spill] sm:$0xff] }
 0x541   :  { %v4610_v3 = vmax.f32 %v4594_v31, 0.0  ;;  %v4613_v37 = vmax.f32 %v4597_v46, 0.0  ;;  %v4612_v11 = vmax.f32 %v4596_v2, 0.0  ;;  %v4615_v8 = vmax.f32 %v4599_v40, 0.0  ;;  %v11343_v2 = vld [vmem:[#allocation21_spill] sm:$0xff] }
 0x542   :  { %4637 = vperm.xlu1 %7215, %v4607_v55   ;;  %4627 = vperm.xlu0 %7214, %v4605_v62   ;;  %v4614_v14 = vmax.f32 %v4598_v41, 0.0  ;;  %v4600_v56 = vadd.f32 %v5167_v42, %v4578_v52  ;;  %v4617_v45 = vmax.f32 %v4601_v43, 0.0  ;;  %v4603_v6 = vadd.f32 %v5167_v42, %v4581_v47 }
 0x543   :  { %v4602_v49 = vadd.f32 %v5167_v42, %v4580_v9  ;;  %v7252_v26 = vmov 1   ;;  %v11341_v9 = vld [vmem:[#allocation15_spill] sm:$0xff] }
 0x544   :  { %v4616_v59 = vmax.f32 %v4600_v56, 0.0  ;;  %v4619_v38 = vmax.f32 %v4603_v6, 0.0  ;;  %v11345_v56 = vld [vmem:[#allocation23_spill] sm:$0xff] }
 0x545   :  { %v4618_v25 = vmax.f32 %v4602_v49, 0.0 }
 0x546   :  { %4647 = vperm.xlu1 %7215, %v4609_v24   ;;  %4642 = vperm.xlu0 %7214, %v4608_v57  }
 0x54a   :  { %4657 = vperm.xlu1 %7215, %v4611_v17   ;;  %4652 = vperm.xlu0 %7214, %v4610_v3  }
 0x54e   :  { %4667 = vperm.xlu1 %7215, %v4613_v37   ;;  %4662 = vperm.xlu0 %7214, %v4612_v11  }
 0x552   :  { %4677 = vperm.xlu1 %7215, %v4615_v8   ;;  %4672 = vperm.xlu0 %7214, %v4614_v14  }
 0x556   :  { %4687 = vperm.xlu1 %7215, %v4617_v45   ;;  %4682 = vperm.xlu0 %7214, %v4616_v59  }
 0x55a   :  { %4697 = vperm.xlu1 %7215, %v4619_v38   ;;  %4692 = vperm.xlu0 %7214, %v4618_v25  }
 0x55e   :  { %7217 = vset.pattern.permute.xlu1 %v7252_v26  ;;  %7216 = vset.pattern.permute.xlu0 %v7252_v26 }
 0x55f   :  { %4721 = vperm.xlu1 %7217, %v4605_v62   ;;  %4717 = vperm.xlu0 %7216, %v4604_v29   ;;  %v11340_v62 = vld [vmem:[#allocation12_spill] sm:$0xff] }
 0x563   :  { %4725 = vperm.xlu1 %7217, %v4606_v33   ;;  %4729 = vperm.xlu0 %7216, %v4607_v55  }
 0x567   :  { %4733 = vperm.xlu1 %7217, %v4608_v57   ;;  %4737 = vperm.xlu0 %7216, %v4609_v24  }
 0x56b   :  { %4741 = vperm.xlu1 %7217, %v4610_v3   ;;  %4745 = vperm.xlu0 %7216, %v4611_v17   ;;  %v11342_v3 = vld [vmem:[#allocation25_spill] sm:$0xff] }
 0x56f   :  { %4749 = vperm.xlu1 %7217, %v4612_v11   ;;  %4753 = vperm.xlu0 %7216, %v4613_v37  }
 0x573   :  { %4757 = vperm.xlu1 %7217, %v4614_v14   ;;  %4761 = vperm.xlu0 %7216, %v4615_v8   ;;  %v11344_v14 = vld [vmem:[#allocation19_spill] sm:$0xff] }
 0x577   :  { %4765 = vperm.xlu1 %7217, %v4616_v59   ;;  %4769 = vperm.xlu0 %7216, %v4617_v45  }
 0x57b   :  { %4773 = vperm.xlu1 %7217, %v4618_v25   ;;  %4777 = vperm.xlu0 %7216, %v4619_v38   ;;  %v11346_v25 = vld [vmem:[#allocation33_spill] sm:$0xff] }
 0x5bd   :  { %v4633_v20 = vpop.permute.xlu1 %4632  ;;  %v4623_v10 = vpop.permute.xlu0 %4622 }
 0x5be   :  { %v4700_v36 = vmul.f32 %v4623_v10, %v11334_v21  ;;  %v4702_v48 = vmul.f32 %v4633_v20, %v11338_v50  ;;  %v11347_v20 = vld [vmem:[#allocation29_spill] sm:$0xff]  ;;  %v11349_v21 = vld [vmem:[#allocation31_spill] sm:$0xff] }
 0x5bf   :  { %v11352_v50 = vld [vmem:[#allocation35_spill] sm:$0xff] }
 0x5c1   :  { %v4638_v7 = vpop.permute.xlu1 %4637  ;;  %v4628_v18 = vpop.permute.xlu0 %4627 }
 0x5c2   :  { %v4701_v13 = vmul.f32 %v4628_v18, %v11335_v4  ;;  %v4703_v30 = vmul.f32 %v4638_v7, %v11339_v60  ;;  %v11353_v60 = vld [vmem:[#allocation39_spill] sm:$0xff] }
 0x5c5   :  { %v4648_v61 = vpop.permute.xlu1 %4647  ;;  %v4643_v53 = vpop.permute.xlu0 %4642 }
 0x5c6   :  { %v4705_v46 = vmul.f32 %v4648_v61, %v11342_v3  ;;  %v4704_v37 = vmul.f32 %v4643_v53, %v11343_v2  ;;  %v11357_v3 = vld [vmem:[#allocation45_spill] sm:$0xff] }
 0x5c9   :  { %v4658_v22 = vpop.permute.xlu1 %4657  ;;  %v4653_v28 = vpop.permute.xlu0 %4652 }
 0x5ca   :  { %v4707_v26 = vmul.f32 %v4658_v22, %v11346_v25  ;;  %v4706_v10 = vmul.f32 %v4653_v28, %v11347_v20 }
 0x5cd   :  { %v4668_v12 = vpop.permute.xlu1 %4667  ;;  %v4663_v54 = vpop.permute.xlu0 %4662 }
 0x5d1   :  { %v10976_v32 = vpop.permute.xlu1 %4677  ;;  %v10978_v58 = vpop.permute.xlu0 %4672 }
 0x5d5   :  { %v10980_v16 = vpop.permute.xlu1 %4687  ;;  %v10982_v34 = vpop.permute.xlu0 %4682 }
 0x5d9   :  { %v10984_v42 = vpop.permute.xlu1 %4697  ;;  %v10986_v39 = vpop.permute.xlu0 %4692 }
 0x5de   :  { %v4722_v23 = vpop.permute.xlu1 %4721  ;;  %v4718_v5 = vpop.permute.xlu0 %4717 }
 0x5df   :  { %v4781_v35 = vmul.f32 %v4722_v23, %v11336_v27  ;;  %v4780_v33 = vmul.f32 %v4718_v5, %v11337_v1  ;;  %v11348_v23 = vld [vmem:[#allocation27_spill] sm:$0xff]  ;;  %v11350_v1 = vld [vmem:[#allocation41_spill] sm:$0xff] }
 0x5e1   :  { %v4797_v29 = vadd.f32 %v4781_v35, %v4701_v13  ;;  %v4813_v0 = vmul.f32 %v4781_v35, %v4701_v13  ;;  %v4796_v51 = vadd.f32 %v4780_v33, %v4700_v36  ;;  %v4812_v44 = vmul.f32 %v4780_v33, %v4700_v36 }
 0x5e2   :  { %v4726_v15 = vpop.permute.xlu1 %4725  ;;  %v4730_v52 = vpop.permute.xlu0 %4729  ;;  %v4709_v33 = vmul.f32 %v4668_v12, %v11350_v1  ;;  %v11355_v12 = vld [vmem:[#allocation43_spill] sm:$0xff] }
 0x5e3   :  { %v4829_v47 = vadd.f32 %v4813_v0, %v4797_v29  ;;  %v4828_v55 = vadd.f32 %v4812_v44, %v4796_v51  ;;  %v4782_v63 = vmul.f32 %v4726_v15, %v11340_v62  ;;  %v4783_v24 = vmul.f32 %v4730_v52, %v11341_v9  ;;  %v11351_v29 = vld [vmem:[#allocation37_spill] sm:$0xff]  ;;  %v11354_v62 = vld [vmem:[#allocation47_spill] sm:$0xff] }
 0x5e4   :  { %v4708_v22 = vmul.f32 %v4663_v54, %v11351_v29  ;;  %v4710_v54 = vmul.f32 %v10978_v58, %v11355_v12 }
 0x5e5   :  { %4845 = vst [vmem:[#allocation3 + $0x8] sm:$0xff] %v4829_v47  ;;  %4844 = vst [vmem:[#allocation3] sm:$0xff] %v4828_v55  ;;  %v4798_v57 = vadd.f32 %v4782_v63, %v4702_v48  ;;  %v4814_v19 = vmul.f32 %v4782_v63, %v4702_v48  ;;  %v4799_v31 = vadd.f32 %v4783_v24, %v4703_v30 }
 0x5e6   :  { %v4815_v17 = vmul.f32 %v4783_v24, %v4703_v30  ;;  %v4734_v11 = vpop.permute.xlu1 %4733  ;;  %v4738_v40 = vpop.permute.xlu0 %4737  ;;  %v4711_v63 = vmul.f32 %v10976_v32, %v11354_v62 }
 0x5e7   :  { %v4830_v41 = vadd.f32 %v4814_v19, %v4798_v57  ;;  %v4784_v43 = vmul.f32 %v4734_v11, %v11344_v14  ;;  %v4785_v45 = vmul.f32 %v4738_v40, %v11345_v56 }
 0x5e8   :  { %v4831_v8 = vadd.f32 %v4815_v17, %v4799_v31  ;;  %v11356_v31 = vld [vmem:[#allocation42_spill] sm:$0xff] }
 0x5e9   :  { %4846 = vst [vmem:[#allocation3 + $0x10] sm:$0xff] %v4830_v41  ;;  %v4800_v59 = vadd.f32 %v4784_v43, %v4704_v37  ;;  %v4816_v6 = vmul.f32 %v4784_v43, %v4704_v37  ;;  %v4801_v49 = vadd.f32 %v4785_v45, %v4705_v46  ;;  %v4817_v38 = vmul.f32 %v4785_v45, %v4705_v46  ;;  %v11358_v41 = vld [vmem:[#allocation55_spill] sm:$0xff] }
 0x5ea   :  { %4847 = vst [vmem:[#allocation3 + $0x18] sm:$0xff] %v4831_v8  ;;  %v4742_v7 = vpop.permute.xlu1 %4741  ;;  %v4746_v18 = vpop.permute.xlu0 %4745  ;;  %v4713_v32 = vmul.f32 %v10980_v16, %v11358_v41  ;;  %v11359_v8 = vld [vmem:[#allocation51_spill] sm:$0xff] }
 0x5eb   :  { %v4832_v61 = vadd.f32 %v4816_v6, %v4800_v59  ;;  %v4833_v53 = vadd.f32 %v4817_v38, %v4801_v49  ;;  %v4786_v5 = vmul.f32 %v4742_v7, %v11348_v23  ;;  %v4787_v36 = vmul.f32 %v4746_v18, %v11349_v21  ;;  %v11360_v59 = vld [vmem:[#allocation49_spill] sm:$0xff]  ;;  %v11362_v7 = vld [vmem:[#allocation63_spill] sm:$0xff]  ;;  %v11363_v18 = vld [vmem:[#allocation58_spill] sm:$0xff] }
 0x5ec   :  { %v4712_v58 = vmul.f32 %v10982_v34, %v11359_v8  ;;  %v11361_v49 = vld [vmem:[#allocation53_spill] sm:$0xff]  ;;  %v4715_v16 = vmul.f32 %v10984_v42, %v11362_v7  ;;  %v4714_v34 = vmul.f32 %v10986_v39, %v11363_v18  ;;  %v11364_v21 = vld [vmem:[#allocation56_spill] sm:$0xff] }
 0x5ed   :  { %4848 = vst [vmem:[#allocation3 + $0x20] sm:$0xff] %v4832_v61  ;;  %4849 = vst [vmem:[#allocation3 + $0x28] sm:$0xff] %v4833_v53  ;;  %v4802_v4 = vadd.f32 %v4786_v5, %v4706_v10  ;;  %v4818_v13 = vmul.f32 %v4786_v5, %v4706_v10  ;;  %v4803_v27 = vadd.f32 %v4787_v36, %v4707_v26 }
 0x5ee   :  { %v4819_v35 = vmul.f32 %v4787_v36, %v4707_v26  ;;  %v4750_v0 = vpop.permute.xlu1 %4749  ;;  %v4754_v28 = vpop.permute.xlu0 %4753 }
 0x5ef   :  { %v4834_v51 = vadd.f32 %v4818_v13, %v4802_v4  ;;  %v4788_v48 = vmul.f32 %v4750_v0, %v11352_v50  ;;  %v4789_v30 = vmul.f32 %v4754_v28, %v11353_v60  ;;  %v11365_v4 = vld [vmem:[#allocation61_spill] sm:$0xff] }
 0x5f0   :  { %v4835_v44 = vadd.f32 %v4819_v35, %v4803_v27 }
 0x5f1   :  { %4850 = vst [vmem:[#allocation3 + $0x30] sm:$0xff] %v4834_v51  ;;  %v4804_v15 = vadd.f32 %v4788_v48, %v4708_v22  ;;  %v4820_v52 = vmul.f32 %v4788_v48, %v4708_v22  ;;  %v4805_v47 = vadd.f32 %v4789_v30, %v4709_v33  ;;  %v4821_v55 = vmul.f32 %v4789_v30, %v4709_v33 }
 0x5f2   :  { %4851 = vst [vmem:[#allocation3 + $0x38] sm:$0xff] %v4835_v44  ;;  %v4758_v9 = vpop.permute.xlu1 %4757  ;;  %v4762_v24 = vpop.permute.xlu0 %4761 }
 0x5f3   :  { %v4836_v57 = vadd.f32 %v4820_v52, %v4804_v15  ;;  %v4837_v19 = vadd.f32 %v4821_v55, %v4805_v47  ;;  %v4790_v17 = vmul.f32 %v4758_v9, %v11356_v31  ;;  %v4791_v46 = vmul.f32 %v4762_v24, %v11357_v3 }
 0x5f5   :  { %4852 = vst [vmem:[#allocation3 + $0x40] sm:$0xff] %v4836_v57  ;;  %4853 = vst [vmem:[#allocation3 + $0x48] sm:$0xff] %v4837_v19  ;;  %v4806_v2 = vadd.f32 %v4790_v17, %v4710_v54  ;;  %v4822_v37 = vmul.f32 %v4790_v17, %v4710_v54  ;;  %v4807_v11 = vadd.f32 %v4791_v46, %v4711_v63 }
 0x5f6   :  { %v4823_v40 = vmul.f32 %v4791_v46, %v4711_v63  ;;  %v4766_v14 = vpop.permute.xlu1 %4765  ;;  %v4770_v43 = vpop.permute.xlu0 %4769 }
 0x5f7   :  { %v4838_v56 = vadd.f32 %v4822_v37, %v4806_v2  ;;  %v4792_v6 = vmul.f32 %v4766_v14, %v11360_v59  ;;  %v4793_v38 = vmul.f32 %v4770_v43, %v11361_v49 }
 0x5f8   :  { %v4839_v45 = vadd.f32 %v4823_v40, %v4807_v11 }
 0x5f9   :  { %4854 = vst [vmem:[#allocation3 + $0x50] sm:$0xff] %v4838_v56  ;;  %v4808_v25 = vadd.f32 %v4792_v6, %v4712_v58  ;;  %v4824_v26 = vmul.f32 %v4792_v6, %v4712_v58  ;;  %v4809_v20 = vadd.f32 %v4793_v38, %v4713_v32  ;;  %v4825_v10 = vmul.f32 %v4793_v38, %v4713_v32 }
 0x5fa   :  { %4855 = vst [vmem:[#allocation3 + $0x58] sm:$0xff] %v4839_v45  ;;  %v4774_v61 = vpop.permute.xlu1 %4773  ;;  %v4778_v53 = vpop.permute.xlu0 %4777 }
 0x5fb   :  { %v4840_v23 = vadd.f32 %v4824_v26, %v4808_v25  ;;  %v4841_v5 = vadd.f32 %v4825_v10, %v4809_v20  ;;  %v4794_v36 = vmul.f32 %v4774_v61, %v11364_v21  ;;  %v4795_v13 = vmul.f32 %v4778_v53, %v11365_v4 }
 0x5fd   :  { %4856 = vst [vmem:[#allocation3 + $0x60] sm:$0xff] %v4840_v23  ;;  %4857 = vst [vmem:[#allocation3 + $0x68] sm:$0xff] %v4841_v5  ;;  %v4810_v27 = vadd.f32 %v4794_v36, %v4714_v34  ;;  %v4826_v35 = vmul.f32 %v4794_v36, %v4714_v34  ;;  %v4811_v1 = vadd.f32 %v4795_v13, %v4715_v16 }
 0x5fe   :  { %v4827_v33 = vmul.f32 %v4795_v13, %v4715_v16 }
 0x5ff   :  { %v4842_v42 = vadd.f32 %v4826_v35, %v4810_v27 }
 0x600   :  { %v4843_v29 = vadd.f32 %v4827_v33, %v4811_v1 }
 0x601   :  { %4858 = vst [vmem:[#allocation3 + $0x70] sm:$0xff] %v4842_v42 }
 0x602   :  { %4859 = vst [vmem:[#allocation3 + $0x78] sm:$0xff] %v4843_v29 }
 0x603   :  { %7237 = shalt.err (!%p7234_p4)
}
 0x604   :  { %s7238_s10 = scalar_lea.hbm %s11052_s14, 2048 }
 0x605   :  { %p7239_p5 = scmp.ne.s32.totalorder %s11052_s14, %s7238_s10  ;;  %p7242_p6 = scmp.lt.u32.totalorder %s7238_s10, %s11052_s14 }
 0x607   :  { %p7244_p7 = pnand %p7242_p6, %p7239_p5 }
 0x609   :  { %7247 = shalt.err (!%p7244_p7)
}
 0x60a   :  { %s7254_s18 = smov 128   ;;  %s7255_s19 = smov 8  }
 0x60b   :  { %4871 = dma.vmem_to_hbm [thread:$0]  %s4866_s13, 2048, %s11052_s14, [#allocation4], %s7254_s18, %s7254_s18, %s7255_s19  }
 0x60c   :  { %7248 = dma.done.wait [#allocation4], 2048  }
 0x60d   :  { %7249 = vsyncadd [#allocation4], 4294965248 }
 0x60e   :  { %4875 = vsyncpa [#allocation4], 1 }

</bundles_post_ra>
